<compile_context>
chip_gen: v6e
topology: v6e:2x2x1
jax: 0.10.0
libtpu: 0.0.40
codegen_flags: <defaults>
</compile_context>

<pallas_src>
import functools

import jax
import jax.numpy as jnp
from jax.experimental import pallas as pl
from jax.experimental.pallas import tpu as pltpu


# ---------------------------------------------------------------------------
# Helpers
# ---------------------------------------------------------------------------
def _round_up(x, m):
    return (x + m - 1) // m * m


def _vmem_capacity_bytes():
    try:
        info = pltpu.get_tpu_info()
        for attr in ("vmem_capacity_bytes", "vmem_size_bytes", "vmem_bytes"):
            v = getattr(info, attr, None)
            if v:
                return int(v)
    except Exception:
        pass
    return 128 * 1024 * 1024


def _pick_row_tile(H, W, Cmax, budget_bytes):
    """Largest TH dividing H whose im2col tile (9*Cmax, TH*W) bf16 fits budget."""
    bytes_per_row = 9 * Cmax * W * 2
    max_rows = max(1, budget_bytes // max(bytes_per_row, 1))
    if H <= max_rows:
        return H
    best = 1
    for t in range(1, min(H, max_rows) + 1):
        if H % t == 0:
            best = t
    return best


def _est_vmem_bytes(Cin, Cout, F, Cmax, H, W, Hbuf, TH):
    """Rough lane/sublane-padded VMEM footprint (scratch + double-buffered IO)."""
    def pad2(r, c, item, sub):
        return _round_up(r, sub) * _round_up(c, 128) * item
    scratch = (pad2(9 * Cmax, TH * W, 2, 16)          # col (bf16)
               + pad2(Cin, Hbuf * W, 4, 8)            # padded input (f32)
               + 2 * pad2(F, Hbuf * W, 2, 16))        # ping/pong (bf16)
    io = 2 * (pad2(Cin, H * W, 4, 8) + pad2(Cout, H * W, 4, 8))
    return scratch + io


# ---------------------------------------------------------------------------
# Fused convBlock kernel
# ---------------------------------------------------------------------------
def _conv_block_kernel(x_ref, *refs, H, W, Cin, F, Cout, dils, PADV, TH):
    # x_ref : (1, Cin, H*W)       f32  channel-major input (lane-dense)
    # refs  : w0, b0, ..., w_{L-1}, b_{L-1}, o_ref, col, in_buf, buf_a, buf_b
    #   w_i : (cout_i, 9*cin_i)   bf16 (rows ordered tap-major: (ky,kx,cin))
    #   b_i : (cout_i, 1)         f32
    # o_ref : (1, Cout, H*W)      f32  lane-dense output
    # col   : (9*Cmax, TH*W)      bf16 im2col staging
    # in_buf: (Cin, Hbuf*W)       f32  vertically padded input (exact residual)
    # buf_a/buf_b: (F, Hbuf*W)    bf16 ping-pong activations (vertically padded)
    L = len(dils)
    w_refs = refs[0:2 * L:2]
    b_refs = refs[1:2 * L:2]
    o_ref = refs[2 * L]
    col, in_buf, buf_a, buf_b = refs[2 * L + 1:2 * L + 5]

    thw = TH * W
    n_tiles = H // TH
    pad = PADV * W

    # Zero ONLY the vertical padding border rows (top/bottom); the interior is
    # fully overwritten every layer.  Unconditional -> megacore-safe.
    for buf, c in ((in_buf, Cin), (buf_a, F), (buf_b, F)):
        buf[:, 0:pad] = jnp.zeros((c, pad), buf.dtype)
        buf[:, (PADV + H) * W:(PADV + H) * W + pad] = jnp.zeros((c, pad), buf.dtype)

    # Seed the padded input buffer (f32: the residual add stays exact).
    in_buf[:, pad:pad + H * W] = x_ref[0]

    # Column-in-row index, reused for the horizontal zero-padding masks.
    colpos = jax.lax.broadcasted_iota(jnp.int32, (1, thw), 1) % W

    src, src_c = in_buf, Cin
    for li in range(L):
        d = dils[li]
        last = li == L - 1
        cin = src_c
        cout = Cout if last else F
        dst = buf_a if (li % 2 == 0) else buf_b
        w_mat = w_refs[li][...]            # (cout, 9*cin) bf16, loaded once/layer
        bias = b_refs[li][...]             # (cout, 1) f32
        lkeep = colpos >= d                # valid output columns for kx == 0 taps
        rkeep = colpos < (W - d)           # valid output columns for kx == 2 taps

        def do_tile(y0, d=d, last=last, cin=cin, dst=dst,
                    w_mat=w_mat, bias=bias, lkeep=lkeep, rkeep=rkeep, src=src):
            o0 = (PADV + y0) * W           # flat offset of this tile's first output
            # im2col: each dilated tap is one full-lane-width contiguous copy;
            # the horizontal zero padding is applied by masking the edge taps.
            for ky in range(3):
                for kx in range(3):
                    t = ky * 3 + kx
                    off = (ky - 1) * d * W + (kx - 1) * d
                    blk = src[:, pl.ds(o0 + off, thw)]
                    if kx == 0:
                        blk = jnp.where(lkeep, blk, 0)
                    elif kx == 2:
                        blk = jnp.where(rkeep, blk, 0)
                    col[t * cin:(t + 1) * cin, :] = blk.astype(col.dtype)
            # One MXU matmul per tile: (cout, 9*cin) x (9*cin, TH*W), N lane-dense.
            acc = jnp.dot(w_mat, col[0:9 * cin, :],
                          preferred_element_type=jnp.float32) + bias
            if not last:
                acc = jnp.maximum(acc, 0.0)
                dst[:, pl.ds(o0, thw)] = acc.astype(dst.dtype)
            else:
                acc = acc + in_buf[0:Cout, pl.ds(o0, thw)]      # exact f32 residual
                o_ref[0, :, pl.ds(y0 * W, thw)] = acc.astype(o_ref.dtype)

        if n_tiles <= 8:
            for ti in range(n_tiles):       # few tiles: static unroll
                do_tile(ti * TH)
        else:
            # many tiles: counted loop keeps code size / live ranges flat
            def body(ti, carry):
                do_tile(pl.multiple_of(ti * TH, TH))
                return carry
            jax.lax.fori_loop(0, n_tiles, body, 0)

        src, src_c = dst, F


# ---------------------------------------------------------------------------
# Wrapper: full convBlock forward in one pallas_call
# ---------------------------------------------------------------------------
def conv_block_forward(x_nchw, params, dilations, *, row_tile=None):
    """Matches convBlock.forward. x_nchw: (N, C, H, W) float32."""
    (w1, b1), mids, (w2, b2) = params
    N, Cin, H, W = x_nchw.shape
    F = w1.shape[3]
    Cout = w2.shape[3]
    assert Cout <= Cin, "residual add requires outChannel <= inChannel"
    L = 2 + len(mids)
    dils = (1,) + tuple(dilations) + (1,)
    P = max(dils)
    assert P < W and P < H, "dilation must be smaller than the spatial dims"
    PADV = P + 1                       # +1 guard row: edge-tap lane wrap stays in-bounds
    Hbuf = H + 2 * PADV
    Cmax = max(F, Cin)

    cap = _vmem_capacity_bytes()
    if row_tile is None:
        TH = _pick_row_tile(H, W, Cmax, min(8 << 20, cap // 12))
    else:
        TH = row_tile
        assert H % TH == 0, "row_tile must divide H"

    # Channel-major, lane-dense input; weights reshaped to (cout, 9*cin) with
    # rows ordered tap-major to match the kernel's im2col row layout.
    layer_ws = [w1] + [w for (w, _) in mids] + [w2]
    layer_bs = [b1] + [b for (_, b) in mids] + [b2]

    args = [x_nchw.reshape(N, Cin, H * W)]
    in_specs = [pl.BlockSpec((1, Cin, H * W), lambda n: (n, 0, 0))]
    for w, b in zip(layer_ws, layer_bs):
        cin_l, cout_l = w.shape[2], w.shape[3]
        w_arg = jnp.transpose(w, (3, 0, 1, 2)).reshape(cout_l, 9 * cin_l)
        w_arg = w_arg.astype(jnp.bfloat16)
        b_arg = b.reshape(cout_l, 1).astype(jnp.float32)
        args += [w_arg, b_arg]
        in_specs += [
            pl.BlockSpec(w_arg.shape, lambda n: (0, 0)),
            pl.BlockSpec(b_arg.shape, lambda n: (0, 0)),
        ]

    est = _est_vmem_bytes(Cin, Cout, F, Cmax, H, W, Hbuf, TH)
    vmem_limit = int(min(int(cap * 0.85), max(32 << 20, est + (16 << 20))))

    kernel = functools.partial(
        _conv_block_kernel,
        H=H, W=W, Cin=Cin, F=F, Cout=Cout, dils=dils, PADV=PADV, TH=TH)

    out = pl.pallas_call(
        kernel,
        out_shape=jax.ShapeDtypeStruct((N, Cout, H * W), x_nchw.dtype),
        grid=(N,),
        in_specs=in_specs,
        out_specs=pl.BlockSpec((1, Cout, H * W), lambda n: (n, 0, 0)),
        scratch_shapes=[
            pltpu.VMEM((9 * Cmax, TH * W), jnp.bfloat16),   # im2col staging
            pltpu.VMEM((Cin, Hbuf * W), jnp.float32),       # padded input (residual)
            pltpu.VMEM((F, Hbuf * W), jnp.bfloat16),        # activation ping
            pltpu.VMEM((F, Hbuf * W), jnp.bfloat16),        # activation pong
        ],
        compiler_params=pltpu.CompilerParams(
            dimension_semantics=("parallel",),
            vmem_limit_bytes=vmem_limit),
    )(*args)

    return out.reshape(N, Cout, H, W)   # free reshape; already channel-major


# ---------------------------------------------------------------------------
# Parameter init mirroring the PyTorch module's shapes (HWIO weights)
# ---------------------------------------------------------------------------
def init_conv_block_params(key, in_channel, out_channel, f, i_conv_num,
                           dilation_layer=False):
    def init_conv(k, cin, cout):
        kw, kb = jax.random.split(k)
        bound = 1.0 / jnp.sqrt(cin * 9.0)
        w = jax.random.uniform(kw, (3, 3, cin, cout), jnp.float32, -bound, bound)
        b = jax.random.uniform(kb, (cout,), jnp.float32, -bound, bound)
        return w, b

    keys = jax.random.split(key, i_conv_num)
    conv1 = init_conv(keys[0], in_channel, f)
    dilate = 1
    dilate_multi = 2 if dilation_layer else 1
    mids, dilations = [], []
    for i in range(1, i_conv_num - 1):
        mids.append(init_conv(keys[i], f, f))
        dilations.append(dilate)
        dilate *= dilate_multi
    conv2 = init_conv(keys[i_conv_num - 1], f, out_channel)
    return (conv1, mids, conv2), dilations


# ---------------------------------------------------------------------------
# Reference (lax.conv) with matching bf16 matmuls; residual kept exact f32
# ---------------------------------------------------------------------------
def conv_block_reference(x_nchw, params, dilations):
    (w1, b1), mids, (w2, b2) = params

    def conv(h, w, b, d):
        y = jax.lax.conv_general_dilated(
            h.astype(jnp.bfloat16), w.astype(jnp.bfloat16),
            window_strides=(1, 1),
            padding=((d, d), (d, d)), rhs_dilation=(d, d),
            dimension_numbers=("NHWC", "HWIO", "NHWC"),
            preferred_element_type=jnp.float32)
        return y + b[None, None, None, :]

    x = jnp.transpose(x_nchw, (0, 2, 3, 1))
    h = jax.nn.relu(conv(x, w1, b1, 1))
    for (w, b), d in zip(mids, dilations):
        h = jax.nn.relu(conv(h, w, b, d))
    out_c = w2.shape[3]
    out = conv(h, w2, b2, 1) + x[..., :out_c]
    return jnp.transpose(out, (0, 3, 1, 2))


# ---------------------------------------------------------------------------
if __name__ == "__main__":
    # Small config consistent with convBlock(ioChannel=4, iConvNum=4, f=32)
    N, C, H, W = 2, 4, 16, 16
    F_CH, I_CONV_NUM = 32, 4

    key = jax.random.PRNGKey(0)
    k_x, k_p1, k_p2 = jax.random.split(key, 3)
    x = jax.random.normal(k_x, (N, C, H, W), jnp.float32)   # NCHW like PyTorch

    configs = [
        (False, k_p1, None),   # plain layerList, single row tile
        (True, k_p2, None),    # dilated layerList, single row tile
        (True, k_p2, 8),       # dilated + multi row-tile (exercises tiling/halo)
    ]
    for dil_layer, kp, row_tile in configs:
        params, dils = init_conv_block_params(
            kp, in_channel=C, out_channel=C, f=F_CH,
            i_conv_num=I_CONV_NUM, dilation_layer=dil_layer)

        out = jax.block_until_ready(
            conv_block_forward(x, params, dils, row_tile=row_tile))
        assert out.shape == (N, C, H, W) and out.dtype == jnp.float32

        ref = jax.block_until_ready(conv_block_reference(x, params, dils))
        err = jnp.max(jnp.abs(out - ref))
        assert jnp.allclose(out, ref, rtol=2e-2, atol=2e-2), (
            f"mismatch vs reference (dilation_layer={dil_layer}, "
            f"row_tile={row_tile}), max err={err}")

    print("KERNEL_OK")
</pallas_src>

<mosaic_0001>
module attributes {stable_mosaic.version = 11 : i64} {
  func.func @_conv_block_kernel(%arg0: i32, %arg1: memref<1x4x256xf32, #tpu.memory_space<vmem>>, %arg2: memref<32x36xbf16, #tpu.memory_space<vmem>>, %arg3: memref<32x1xf32, #tpu.memory_space<vmem>>, %arg4: memref<32x288xbf16, #tpu.memory_space<vmem>>, %arg5: memref<32x1xf32, #tpu.memory_space<vmem>>, %arg6: memref<32x288xbf16, #tpu.memory_space<vmem>>, %arg7: memref<32x1xf32, #tpu.memory_space<vmem>>, %arg8: memref<4x288xbf16, #tpu.memory_space<vmem>>, %arg9: memref<4x1xf32, #tpu.memory_space<vmem>>, %arg10: memref<1x4x256xf32, #tpu.memory_space<vmem>>, %arg11: memref<288x256xbf16, #tpu.memory_space<vmem>>, %arg12: memref<4x320xf32, #tpu.memory_space<vmem>>, %arg13: memref<32x320xbf16, #tpu.memory_space<vmem>>, %arg14: memref<32x320xbf16, #tpu.memory_space<vmem>>) attributes {dimension_semantics = [#tpu.dimension_semantics<parallel>], iteration_bounds = array<i64: 2>, scalar_prefetch = 0 : i64, scratch_operands = 4 : i64, tpu.core_type = #tpu.core_type<tc>, window_params = [{transform_indices = @transform_0, window_bounds = array<i64: 1, 4, 256>}, {pipeline_mode = #tpu.pipeline_mode<synchronous>, transform_indices = @transform_1, window_bounds = array<i64: 32, 36>}, {pipeline_mode = #tpu.pipeline_mode<synchronous>, transform_indices = @transform_2, window_bounds = array<i64: 32, 1>}, {pipeline_mode = #tpu.pipeline_mode<synchronous>, transform_indices = @transform_3, window_bounds = array<i64: 32, 288>}, {pipeline_mode = #tpu.pipeline_mode<synchronous>, transform_indices = @transform_4, window_bounds = array<i64: 32, 1>}, {pipeline_mode = #tpu.pipeline_mode<synchronous>, transform_indices = @transform_5, window_bounds = array<i64: 32, 288>}, {pipeline_mode = #tpu.pipeline_mode<synchronous>, transform_indices = @transform_6, window_bounds = array<i64: 32, 1>}, {pipeline_mode = #tpu.pipeline_mode<synchronous>, transform_indices = @transform_7, window_bounds = array<i64: 4, 288>}, {pipeline_mode = #tpu.pipeline_mode<synchronous>, transform_indices = @transform_8, window_bounds = array<i64: 4, 1>}, {transform_indices = @transform_9, window_bounds = array<i64: 1, 4, 256>}]} {
    %cst = arith.constant 0.000000e+00 : f32
    %0 = vector.broadcast %cst : f32 to vector<4x32xf32>
    %c0 = arith.constant 0 : index
    %c0_0 = arith.constant 0 : index
    %1 = vector.load %arg12[%c0, %c0_0] : memref<4x320xf32, #tpu.memory_space<vmem>>, vector<4x32xf32>
    tpu.vector_store %arg12[%c0, %c0_0], %0 {strides = array<i32>} : memref<4x320xf32, #tpu.memory_space<vmem>>, vector<4x32xf32>,
    %cst_1 = arith.constant 0.000000e+00 : f32
    %2 = vector.broadcast %cst_1 : f32 to vector<4x32xf32>
    %c0_2 = arith.constant 0 : index
    %c288 = arith.constant 288 : index
    %3 = vector.load %arg12[%c0_2, %c288] : memref<4x320xf32, #tpu.memory_space<vmem>>, vector<4x32xf32>
    tpu.vector_store %arg12[%c0_2, %c288], %2 {strides = array<i32>} : memref<4x320xf32, #tpu.memory_space<vmem>>, vector<4x32xf32>,
    %cst_3 = arith.constant 0.000000e+00 : bf16
    %4 = vector.broadcast %cst_3 : bf16 to vector<32x32xbf16>
    %c0_4 = arith.constant 0 : index
    %c0_5 = arith.constant 0 : index
    %5 = vector.load %arg13[%c0_4, %c0_5] : memref<32x320xbf16, #tpu.memory_space<vmem>>, vector<32x32xbf16>
    tpu.vector_store %arg13[%c0_4, %c0_5], %4 {strides = array<i32>} : memref<32x320xbf16, #tpu.memory_space<vmem>>, vector<32x32xbf16>,
    %cst_6 = arith.constant 0.000000e+00 : bf16
    %6 = vector.broadcast %cst_6 : bf16 to vector<32x32xbf16>
    %c0_7 = arith.constant 0 : index
    %c288_8 = arith.constant 288 : index
    %7 = vector.load %arg13[%c0_7, %c288_8] : memref<32x320xbf16, #tpu.memory_space<vmem>>, vector<32x32xbf16>
    tpu.vector_store %arg13[%c0_7, %c288_8], %6 {strides = array<i32>} : memref<32x320xbf16, #tpu.memory_space<vmem>>, vector<32x32xbf16>,
    %cst_9 = arith.constant 0.000000e+00 : bf16
    %8 = vector.broadcast %cst_9 : bf16 to vector<32x32xbf16>
    %c0_10 = arith.constant 0 : index
    %c0_11 = arith.constant 0 : index
    %9 = vector.load %arg14[%c0_10, %c0_11] : memref<32x320xbf16, #tpu.memory_space<vmem>>, vector<32x32xbf16>
    tpu.vector_store %arg14[%c0_10, %c0_11], %8 {strides = array<i32>} : memref<32x320xbf16, #tpu.memory_space<vmem>>, vector<32x32xbf16>,
    %cst_12 = arith.constant 0.000000e+00 : bf16
    %10 = vector.broadcast %cst_12 : bf16 to vector<32x32xbf16>
    %c0_13 = arith.constant 0 : index
    %c288_14 = arith.constant 288 : index
    %11 = vector.load %arg14[%c0_13, %c288_14] : memref<32x320xbf16, #tpu.memory_space<vmem>>, vector<32x32xbf16>
    tpu.vector_store %arg14[%c0_13, %c288_14], %10 {strides = array<i32>} : memref<32x320xbf16, #tpu.memory_space<vmem>>, vector<32x32xbf16>,
    %c0_15 = arith.constant 0 : index
    %c0_16 = arith.constant 0 : index
    %c0_17 = arith.constant 0 : index
    %12 = vector.load %arg1[%c0_15, %c0_16, %c0_17] : memref<1x4x256xf32, #tpu.memory_space<vmem>>, vector<1x4x256xf32>
    %13 = vector.shape_cast %12 : vector<1x4x256xf32> to vector<4x256xf32>
    %c0_18 = arith.constant 0 : index
    %c32 = arith.constant 32 : index
    %14 = vector.load %arg12[%c0_18, %c32] : memref<4x320xf32, #tpu.memory_space<vmem>>, vector<4x256xf32>
    tpu.vector_store %arg12[%c0_18, %c32], %13 {strides = array<i32>} : memref<4x320xf32, #tpu.memory_space<vmem>>, vector<4x256xf32>,
    %15 = tpu.iota {dimensions = array<i32: 1>} : vector<1x256xi32>
    %c16_i32 = arith.constant 16 : i32
    %c0_i32 = arith.constant 0 : i32
    %16 = arith.cmpi eq, %c16_i32, %c0_i32 : i32
    %c1_i32 = arith.constant 1 : i32
    %17 = arith.select %16, %c1_i32, %c16_i32 : i32
    %18 = vector.broadcast %17 : i32 to vector<1x256xi32>
    %19 = arith.remsi %15, %18 : vector<1x256xi32>
    %c0_i32_19 = arith.constant 0 : i32
    %20 = vector.broadcast %c0_i32_19 : i32 to vector<1x256xi32>
    %21 = arith.cmpi ne, %19, %20 : vector<1x256xi32>
    %c0_i32_20 = arith.constant 0 : i32
    %22 = vector.broadcast %c0_i32_20 : i32 to vector<1x256xi32>
    %23 = arith.cmpi slt, %19, %22 : vector<1x256xi32>
    %c0_i32_21 = arith.constant 0 : i32
    %24 = arith.cmpi slt, %17, %c0_i32_21 : i32
    %25 = vector.broadcast %24 : i1 to vector<1x256xi1>
    %26 = vector.broadcast %25 : vector<1x256xi1> to vector<1x256xi1>
    %27 = arith.xori %23, %26 : vector<1x256xi1>
    %28 = arith.andi %27, %21 : vector<1x256xi1>
    %29 = vector.broadcast %17 : i32 to vector<1x256xi32>
    %30 = arith.addi %19, %29 : vector<1x256xi32>
    %31 = arith.select %28, %30, %19 : vector<1x256xi1>, vector<1x256xi32>
    %c0_22 = arith.constant 0 : index
    %c0_23 = arith.constant 0 : index
    %32 = vector.load %arg2[%c0_22, %c0_23] : memref<32x36xbf16, #tpu.memory_space<vmem>>, vector<32x36xbf16>
    %c0_24 = arith.constant 0 : index
    %c0_25 = arith.constant 0 : index
    %33 = vector.load %arg3[%c0_24, %c0_25] : memref<32x1xf32, #tpu.memory_space<vmem>>, vector<32x1xf32>
    %c1_i32_26 = arith.constant 1 : i32
    %34 = vector.broadcast %c1_i32_26 : i32 to vector<1x256xi32>
    %35 = arith.cmpi sge, %31, %34 : vector<1x256xi32>
    %c15_i32 = arith.constant 15 : i32
    %36 = vector.broadcast %c15_i32 : i32 to vector<1x256xi32>
    %37 = arith.cmpi slt, %31, %36 : vector<1x256xi32>
    %c0_27 = arith.constant 0 : index
    %c15 = arith.constant 15 : index
    %38 = vector.load %arg12[%c0_27, %c15] : memref<4x320xf32, #tpu.memory_space<vmem>>, vector<4x256xf32>
    %c0_i32_28 = arith.constant 0 : i32
    %39 = arith.sitofp %c0_i32_28 : i32 to f32
    %40 = vector.shape_cast %35 : vector<1x256xi1> to vector<1x256xi1>
    %41 = vector.broadcast %40 : vector<1x256xi1> to vector<4x256xi1>
    %42 = vector.broadcast %39 : f32 to vector<4x256xf32>
    %43 = arith.select %41, %38, %42 : vector<4x256xi1>, vector<4x256xf32>
    %44 = arith.truncf %43 : vector<4x256xf32> to vector<4x256xbf16>
    %c0_29 = arith.constant 0 : index
    %c0_30 = arith.constant 0 : index
    %45 = vector.load %arg11[%c0_29, %c0_30] : memref<288x256xbf16, #tpu.memory_space<vmem>>, vector<4x256xbf16>
    tpu.vector_store %arg11[%c0_29, %c0_30], %44 {strides = array<i32>} : memref<288x256xbf16, #tpu.memory_space<vmem>>, vector<4x256xbf16>,
    %c0_31 = arith.constant 0 : index
    %c16 = arith.constant 16 : index
    %46 = vector.load %arg12[%c0_31, %c16] : memref<4x320xf32, #tpu.memory_space<vmem>>, vector<4x256xf32>
    %47 = arith.truncf %46 : vector<4x256xf32> to vector<4x256xbf16>
    %c4 = arith.constant 4 : index
    %c0_32 = arith.constant 0 : index
    %48 = vector.load %arg11[%c4, %c0_32] : memref<288x256xbf16, #tpu.memory_space<vmem>>, vector<4x256xbf16>
    tpu.vector_store %arg11[%c4, %c0_32], %47 {strides = array<i32>} : memref<288x256xbf16, #tpu.memory_space<vmem>>, vector<4x256xbf16>,
    %c0_33 = arith.constant 0 : index
    %c17 = arith.constant 17 : index
    %49 = vector.load %arg12[%c0_33, %c17] : memref<4x320xf32, #tpu.memory_space<vmem>>, vector<4x256xf32>
    %c0_i32_34 = arith.constant 0 : i32
    %50 = arith.sitofp %c0_i32_34 : i32 to f32
    %51 = vector.shape_cast %37 : vector<1x256xi1> to vector<1x256xi1>
    %52 = vector.broadcast %51 : vector<1x256xi1> to vector<4x256xi1>
    %53 = vector.broadcast %50 : f32 to vector<4x256xf32>
    %54 = arith.select %52, %49, %53 : vector<4x256xi1>, vector<4x256xf32>
    %55 = arith.truncf %54 : vector<4x256xf32> to vector<4x256xbf16>
    %c8 = arith.constant 8 : index
    %c0_35 = arith.constant 0 : index
    %56 = vector.load %arg11[%c8, %c0_35] : memref<288x256xbf16, #tpu.memory_space<vmem>>, vector<4x256xbf16>
    tpu.vector_store %arg11[%c8, %c0_35], %55 {strides = array<i32>} : memref<288x256xbf16, #tpu.memory_space<vmem>>, vector<4x256xbf16>,
    %c0_36 = arith.constant 0 : index
    %c31 = arith.constant 31 : index
    %57 = vector.load %arg12[%c0_36, %c31] : memref<4x320xf32, #tpu.memory_space<vmem>>, vector<4x256xf32>
    %c0_i32_37 = arith.constant 0 : i32
    %58 = arith.sitofp %c0_i32_37 : i32 to f32
    %59 = vector.shape_cast %35 : vector<1x256xi1> to vector<1x256xi1>
    %60 = vector.broadcast %59 : vector<1x256xi1> to vector<4x256xi1>
    %61 = vector.broadcast %58 : f32 to vector<4x256xf32>
    %62 = arith.select %60, %57, %61 : vector<4x256xi1>, vector<4x256xf32>
    %63 = arith.truncf %62 : vector<4x256xf32> to vector<4x256xbf16>
    %c12 = arith.constant 12 : index
    %c0_38 = arith.constant 0 : index
    %64 = vector.load %arg11[%c12, %c0_38] : memref<288x256xbf16, #tpu.memory_space<vmem>>, vector<4x256xbf16>
    tpu.vector_store %arg11[%c12, %c0_38], %63 {strides = array<i32>} : memref<288x256xbf16, #tpu.memory_space<vmem>>, vector<4x256xbf16>,
    %c0_39 = arith.constant 0 : index
    %c32_40 = arith.constant 32 : index
    %65 = vector.load %arg12[%c0_39, %c32_40] : memref<4x320xf32, #tpu.memory_space<vmem>>, vector<4x256xf32>
    %66 = arith.truncf %65 : vector<4x256xf32> to vector<4x256xbf16>
    %c16_41 = arith.constant 16 : index
    %c0_42 = arith.constant 0 : index
    %67 = vector.load %arg11[%c16_41, %c0_42] : memref<288x256xbf16, #tpu.memory_space<vmem>>, vector<4x256xbf16>
    tpu.vector_store %arg11[%c16_41, %c0_42], %66 {strides = array<i32>} : memref<288x256xbf16, #tpu.memory_space<vmem>>, vector<4x256xbf16>,
    %c0_43 = arith.constant 0 : index
    %c33 = arith.constant 33 : index
    %68 = vector.load %arg12[%c0_43, %c33] : memref<4x320xf32, #tpu.memory_space<vmem>>, vector<4x256xf32>
    %c0_i32_44 = arith.constant 0 : i32
    %69 = arith.sitofp %c0_i32_44 : i32 to f32
    %70 = vector.shape_cast %37 : vector<1x256xi1> to vector<1x256xi1>
    %71 = vector.broadcast %70 : vector<1x256xi1> to vector<4x256xi1>
    %72 = vector.broadcast %69 : f32 to vector<4x256xf32>
    %73 = arith.select %71, %68, %72 : vector<4x256xi1>, vector<4x256xf32>
    %74 = arith.truncf %73 : vector<4x256xf32> to vector<4x256xbf16>
    %c20 = arith.constant 20 : index
    %c0_45 = arith.constant 0 : index
    %75 = vector.load %arg11[%c20, %c0_45] : memref<288x256xbf16, #tpu.memory_space<vmem>>, vector<4x256xbf16>
    tpu.vector_store %arg11[%c20, %c0_45], %74 {strides = array<i32>} : memref<288x256xbf16, #tpu.memory_space<vmem>>, vector<4x256xbf16>,
    %c0_46 = arith.constant 0 : index
    %c47 = arith.constant 47 : index
    %76 = vector.load %arg12[%c0_46, %c47] : memref<4x320xf32, #tpu.memory_space<vmem>>, vector<4x256xf32>
    %c0_i32_47 = arith.constant 0 : i32
    %77 = arith.sitofp %c0_i32_47 : i32 to f32
    %78 = vector.shape_cast %35 : vector<1x256xi1> to vector<1x256xi1>
    %79 = vector.broadcast %78 : vector<1x256xi1> to vector<4x256xi1>
    %80 = vector.broadcast %77 : f32 to vector<4x256xf32>
    %81 = arith.select %79, %76, %80 : vector<4x256xi1>, vector<4x256xf32>
    %82 = arith.truncf %81 : vector<4x256xf32> to vector<4x256xbf16>
    %c24 = arith.constant 24 : index
    %c0_48 = arith.constant 0 : index
    %83 = vector.load %arg11[%c24, %c0_48] : memref<288x256xbf16, #tpu.memory_space<vmem>>, vector<4x256xbf16>
    tpu.vector_store %arg11[%c24, %c0_48], %82 {strides = array<i32>} : memref<288x256xbf16, #tpu.memory_space<vmem>>, vector<4x256xbf16>,
    %c0_49 = arith.constant 0 : index
    %c48 = arith.constant 48 : index
    %84 = vector.load %arg12[%c0_49, %c48] : memref<4x320xf32, #tpu.memory_space<vmem>>, vector<4x256xf32>
    %85 = arith.truncf %84 : vector<4x256xf32> to vector<4x256xbf16>
    %c28 = arith.constant 28 : index
    %c0_50 = arith.constant 0 : index
    %86 = vector.load %arg11[%c28, %c0_50] : memref<288x256xbf16, #tpu.memory_space<vmem>>, vector<4x256xbf16>
    tpu.vector_store %arg11[%c28, %c0_50], %85 {strides = array<i32>} : memref<288x256xbf16, #tpu.memory_space<vmem>>, vector<4x256xbf16>,
    %c0_51 = arith.constant 0 : index
    %c49 = arith.constant 49 : index
    %87 = vector.load %arg12[%c0_51, %c49] : memref<4x320xf32, #tpu.memory_space<vmem>>, vector<4x256xf32>
    %c0_i32_52 = arith.constant 0 : i32
    %88 = arith.sitofp %c0_i32_52 : i32 to f32
    %89 = vector.shape_cast %37 : vector<1x256xi1> to vector<1x256xi1>
    %90 = vector.broadcast %89 : vector<1x256xi1> to vector<4x256xi1>
    %91 = vector.broadcast %88 : f32 to vector<4x256xf32>
    %92 = arith.select %90, %87, %91 : vector<4x256xi1>, vector<4x256xf32>
    %93 = arith.truncf %92 : vector<4x256xf32> to vector<4x256xbf16>
    %c32_53 = arith.constant 32 : index
    %c0_54 = arith.constant 0 : index
    %94 = vector.load %arg11[%c32_53, %c0_54] : memref<288x256xbf16, #tpu.memory_space<vmem>>, vector<4x256xbf16>
    tpu.vector_store %arg11[%c32_53, %c0_54], %93 {strides = array<i32>} : memref<288x256xbf16, #tpu.memory_space<vmem>>, vector<4x256xbf16>,
    %c0_55 = arith.constant 0 : index
    %c0_56 = arith.constant 0 : index
    %95 = vector.load %arg11[%c0_55, %c0_56] : memref<288x256xbf16, #tpu.memory_space<vmem>>, vector<36x256xbf16>
    %cst_57 = arith.constant dense<0.000000e+00> : vector<32x256xf32>
    %96 = tpu.matmul %32, %95, %cst_57 {dimension_numbers = #tpu.dot_dimension_numbers<[1], [0], [0], [1], [0, 0, 1, 1], [], []>} : vector<32x36xbf16>, vector<36x256xbf16>, vector<32x256xf32> -> vector<32x256xf32>
    %97 = vector.broadcast %33 : vector<32x1xf32> to vector<32x256xf32>
    %98 = arith.addf %96, %97 : vector<32x256xf32>
    %cst_58 = arith.constant 0.000000e+00 : f32
    %99 = vector.broadcast %cst_58 : f32 to vector<32x256xf32>
    %100 = arith.maximumf %98, %99 : vector<32x256xf32>
    %101 = arith.truncf %100 : vector<32x256xf32> to vector<32x256xbf16>
    %c0_59 = arith.constant 0 : index
    %c32_60 = arith.constant 32 : index
    %102 = vector.load %arg13[%c0_59, %c32_60] : memref<32x320xbf16, #tpu.memory_space<vmem>>, vector<32x256xbf16>
    tpu.vector_store %arg13[%c0_59, %c32_60], %101 {strides = array<i32>} : memref<32x320xbf16, #tpu.memory_space<vmem>>, vector<32x256xbf16>,
    %c0_61 = arith.constant 0 : index
    %c0_62 = arith.constant 0 : index
    %103 = vector.load %arg4[%c0_61, %c0_62] : memref<32x288xbf16, #tpu.memory_space<vmem>>, vector<32x288xbf16>
    %c0_63 = arith.constant 0 : index
    %c0_64 = arith.constant 0 : index
    %104 = vector.load %arg5[%c0_63, %c0_64] : memref<32x1xf32, #tpu.memory_space<vmem>>, vector<32x1xf32>
    %c1_i32_65 = arith.constant 1 : i32
    %105 = vector.broadcast %c1_i32_65 : i32 to vector<1x256xi32>
    %106 = arith.cmpi sge, %31, %105 : vector<1x256xi32>
    %c15_i32_66 = arith.constant 15 : i32
    %107 = vector.broadcast %c15_i32_66 : i32 to vector<1x256xi32>
    %108 = arith.cmpi slt, %31, %107 : vector<1x256xi32>
    %c0_67 = arith.constant 0 : index
    %c15_68 = arith.constant 15 : index
    %109 = vector.load %arg13[%c0_67, %c15_68] : memref<32x320xbf16, #tpu.memory_space<vmem>>, vector<32x256xbf16>
    %c0_i32_69 = arith.constant 0 : i32
    %110 = arith.sitofp %c0_i32_69 : i32 to bf16
    %111 = vector.shape_cast %106 : vector<1x256xi1> to vector<1x256xi1>
    %112 = vector.broadcast %111 : vector<1x256xi1> to vector<32x256xi1>
    %113 = vector.broadcast %110 : bf16 to vector<32x256xbf16>
    %114 = arith.select %112, %109, %113 : vector<32x256xi1>, vector<32x256xbf16>
    %c0_70 = arith.constant 0 : index
    %c0_71 = arith.constant 0 : index
    %115 = vector.load %arg11[%c0_70, %c0_71] : memref<288x256xbf16, #tpu.memory_space<vmem>>, vector<32x256xbf16>
    tpu.vector_store %arg11[%c0_70, %c0_71], %114 {strides = array<i32>} : memref<288x256xbf16, #tpu.memory_space<vmem>>, vector<32x256xbf16>,
    %c0_72 = arith.constant 0 : index
    %c16_73 = arith.constant 16 : index
    %116 = vector.load %arg13[%c0_72, %c16_73] : memref<32x320xbf16, #tpu.memory_space<vmem>>, vector<32x256xbf16>
    %c32_74 = arith.constant 32 : index
    %c0_75 = arith.constant 0 : index
    %117 = vector.load %arg11[%c32_74, %c0_75] : memref<288x256xbf16, #tpu.memory_space<vmem>>, vector<32x256xbf16>
    tpu.vector_store %arg11[%c32_74, %c0_75], %116 {strides = array<i32>} : memref<288x256xbf16, #tpu.memory_space<vmem>>, vector<32x256xbf16>,
    %c0_76 = arith.constant 0 : index
    %c17_77 = arith.constant 17 : index
    %118 = vector.load %arg13[%c0_76, %c17_77] : memref<32x320xbf16, #tpu.memory_space<vmem>>, vector<32x256xbf16>
    %c0_i32_78 = arith.constant 0 : i32
    %119 = arith.sitofp %c0_i32_78 : i32 to bf16
    %120 = vector.shape_cast %108 : vector<1x256xi1> to vector<1x256xi1>
    %121 = vector.broadcast %120 : vector<1x256xi1> to vector<32x256xi1>
    %122 = vector.broadcast %119 : bf16 to vector<32x256xbf16>
    %123 = arith.select %121, %118, %122 : vector<32x256xi1>, vector<32x256xbf16>
    %c64 = arith.constant 64 : index
    %c0_79 = arith.constant 0 : index
    %124 = vector.load %arg11[%c64, %c0_79] : memref<288x256xbf16, #tpu.memory_space<vmem>>, vector<32x256xbf16>
    tpu.vector_store %arg11[%c64, %c0_79], %123 {strides = array<i32>} : memref<288x256xbf16, #tpu.memory_space<vmem>>, vector<32x256xbf16>,
    %c0_80 = arith.constant 0 : index
    %c31_81 = arith.constant 31 : index
    %125 = vector.load %arg13[%c0_80, %c31_81] : memref<32x320xbf16, #tpu.memory_space<vmem>>, vector<32x256xbf16>
    %c0_i32_82 = arith.constant 0 : i32
    %126 = arith.sitofp %c0_i32_82 : i32 to bf16
    %127 = vector.shape_cast %106 : vector<1x256xi1> to vector<1x256xi1>
    %128 = vector.broadcast %127 : vector<1x256xi1> to vector<32x256xi1>
    %129 = vector.broadcast %126 : bf16 to vector<32x256xbf16>
    %130 = arith.select %128, %125, %129 : vector<32x256xi1>, vector<32x256xbf16>
    %c96 = arith.constant 96 : index
    %c0_83 = arith.constant 0 : index
    %131 = vector.load %arg11[%c96, %c0_83] : memref<288x256xbf16, #tpu.memory_space<vmem>>, vector<32x256xbf16>
    tpu.vector_store %arg11[%c96, %c0_83], %130 {strides = array<i32>} : memref<288x256xbf16, #tpu.memory_space<vmem>>, vector<32x256xbf16>,
    %c0_84 = arith.constant 0 : index
    %c32_85 = arith.constant 32 : index
    %132 = vector.load %arg13[%c0_84, %c32_85] : memref<32x320xbf16, #tpu.memory_space<vmem>>, vector<32x256xbf16>
    %c128 = arith.constant 128 : index
    %c0_86 = arith.constant 0 : index
    %133 = vector.load %arg11[%c128, %c0_86] : memref<288x256xbf16, #tpu.memory_space<vmem>>, vector<32x256xbf16>
    tpu.vector_store %arg11[%c128, %c0_86], %132 {strides = array<i32>} : memref<288x256xbf16, #tpu.memory_space<vmem>>, vector<32x256xbf16>,
    %c0_87 = arith.constant 0 : index
    %c33_88 = arith.constant 33 : index
    %134 = vector.load %arg13[%c0_87, %c33_88] : memref<32x320xbf16, #tpu.memory_space<vmem>>, vector<32x256xbf16>
    %c0_i32_89 = arith.constant 0 : i32
    %135 = arith.sitofp %c0_i32_89 : i32 to bf16
    %136 = vector.shape_cast %108 : vector<1x256xi1> to vector<1x256xi1>
    %137 = vector.broadcast %136 : vector<1x256xi1> to vector<32x256xi1>
    %138 = vector.broadcast %135 : bf16 to vector<32x256xbf16>
    %139 = arith.select %137, %134, %138 : vector<32x256xi1>, vector<32x256xbf16>
    %c160 = arith.constant 160 : index
    %c0_90 = arith.constant 0 : index
    %140 = vector.load %arg11[%c160, %c0_90] : memref<288x256xbf16, #tpu.memory_space<vmem>>, vector<32x256xbf16>
    tpu.vector_store %arg11[%c160, %c0_90], %139 {strides = array<i32>} : memref<288x256xbf16, #tpu.memory_space<vmem>>, vector<32x256xbf16>,
    %c0_91 = arith.constant 0 : index
    %c47_92 = arith.constant 47 : index
    %141 = vector.load %arg13[%c0_91, %c47_92] : memref<32x320xbf16, #tpu.memory_space<vmem>>, vector<32x256xbf16>
    %c0_i32_93 = arith.constant 0 : i32
    %142 = arith.sitofp %c0_i32_93 : i32 to bf16
    %143 = vector.shape_cast %106 : vector<1x256xi1> to vector<1x256xi1>
    %144 = vector.broadcast %143 : vector<1x256xi1> to vector<32x256xi1>
    %145 = vector.broadcast %142 : bf16 to vector<32x256xbf16>
    %146 = arith.select %144, %141, %145 : vector<32x256xi1>, vector<32x256xbf16>
    %c192 = arith.constant 192 : index
    %c0_94 = arith.constant 0 : index
    %147 = vector.load %arg11[%c192, %c0_94] : memref<288x256xbf16, #tpu.memory_space<vmem>>, vector<32x256xbf16>
    tpu.vector_store %arg11[%c192, %c0_94], %146 {strides = array<i32>} : memref<288x256xbf16, #tpu.memory_space<vmem>>, vector<32x256xbf16>,
    %c0_95 = arith.constant 0 : index
    %c48_96 = arith.constant 48 : index
    %148 = vector.load %arg13[%c0_95, %c48_96] : memref<32x320xbf16, #tpu.memory_space<vmem>>, vector<32x256xbf16>
    %c224 = arith.constant 224 : index
    %c0_97 = arith.constant 0 : index
    %149 = vector.load %arg11[%c224, %c0_97] : memref<288x256xbf16, #tpu.memory_space<vmem>>, vector<32x256xbf16>
    tpu.vector_store %arg11[%c224, %c0_97], %148 {strides = array<i32>} : memref<288x256xbf16, #tpu.memory_space<vmem>>, vector<32x256xbf16>,
    %c0_98 = arith.constant 0 : index
    %c49_99 = arith.constant 49 : index
    %150 = vector.load %arg13[%c0_98, %c49_99] : memref<32x320xbf16, #tpu.memory_space<vmem>>, vector<32x256xbf16>
    %c0_i32_100 = arith.constant 0 : i32
    %151 = arith.sitofp %c0_i32_100 : i32 to bf16
    %152 = vector.shape_cast %108 : vector<1x256xi1> to vector<1x256xi1>
    %153 = vector.broadcast %152 : vector<1x256xi1> to vector<32x256xi1>
    %154 = vector.broadcast %151 : bf16 to vector<32x256xbf16>
    %155 = arith.select %153, %150, %154 : vector<32x256xi1>, vector<32x256xbf16>
    %c256 = arith.constant 256 : index
    %c0_101 = arith.constant 0 : index
    %156 = vector.load %arg11[%c256, %c0_101] : memref<288x256xbf16, #tpu.memory_space<vmem>>, vector<32x256xbf16>
    tpu.vector_store %arg11[%c256, %c0_101], %155 {strides = array<i32>} : memref<288x256xbf16, #tpu.memory_space<vmem>>, vector<32x256xbf16>,
    %c0_102 = arith.constant 0 : index
    %c0_103 = arith.constant 0 : index
    %157 = vector.load %arg11[%c0_102, %c0_103] : memref<288x256xbf16, #tpu.memory_space<vmem>>, vector<288x256xbf16>
    %cst_104 = arith.constant dense<0.000000e+00> : vector<32x256xf32>
    %158 = tpu.matmul %103, %157, %cst_104 {dimension_numbers = #tpu.dot_dimension_numbers<[1], [0], [0], [1], [0, 0, 1, 1], [], []>} : vector<32x288xbf16>, vector<288x256xbf16>, vector<32x256xf32> -> vector<32x256xf32>
    %159 = vector.broadcast %104 : vector<32x1xf32> to vector<32x256xf32>
    %160 = arith.addf %158, %159 : vector<32x256xf32>
    %cst_105 = arith.constant 0.000000e+00 : f32
    %161 = vector.broadcast %cst_105 : f32 to vector<32x256xf32>
    %162 = arith.maximumf %160, %161 : vector<32x256xf32>
    %163 = arith.truncf %162 : vector<32x256xf32> to vector<32x256xbf16>
    %c0_106 = arith.constant 0 : index
    %c32_107 = arith.constant 32 : index
    %164 = vector.load %arg14[%c0_106, %c32_107] : memref<32x320xbf16, #tpu.memory_space<vmem>>, vector<32x256xbf16>
    tpu.vector_store %arg14[%c0_106, %c32_107], %163 {strides = array<i32>} : memref<32x320xbf16, #tpu.memory_space<vmem>>, vector<32x256xbf16>,
    %c0_108 = arith.constant 0 : index
    %c0_109 = arith.constant 0 : index
    %165 = vector.load %arg6[%c0_108, %c0_109] : memref<32x288xbf16, #tpu.memory_space<vmem>>, vector<32x288xbf16>
    %c0_110 = arith.constant 0 : index
    %c0_111 = arith.constant 0 : index
    %166 = vector.load %arg7[%c0_110, %c0_111] : memref<32x1xf32, #tpu.memory_space<vmem>>, vector<32x1xf32>
    %c1_i32_112 = arith.constant 1 : i32
    %167 = vector.broadcast %c1_i32_112 : i32 to vector<1x256xi32>
    %168 = arith.cmpi sge, %31, %167 : vector<1x256xi32>
    %c15_i32_113 = arith.constant 15 : i32
    %169 = vector.broadcast %c15_i32_113 : i32 to vector<1x256xi32>
    %170 = arith.cmpi slt, %31, %169 : vector<1x256xi32>
    %c0_114 = arith.constant 0 : index
    %c15_115 = arith.constant 15 : index
    %171 = vector.load %arg14[%c0_114, %c15_115] : memref<32x320xbf16, #tpu.memory_space<vmem>>, vector<32x256xbf16>
    %c0_i32_116 = arith.constant 0 : i32
    %172 = arith.sitofp %c0_i32_116 : i32 to bf16
    %173 = vector.shape_cast %168 : vector<1x256xi1> to vector<1x256xi1>
    %174 = vector.broadcast %173 : vector<1x256xi1> to vector<32x256xi1>
    %175 = vector.broadcast %172 : bf16 to vector<32x256xbf16>
    %176 = arith.select %174, %171, %175 : vector<32x256xi1>, vector<32x256xbf16>
    %c0_117 = arith.constant 0 : index
    %c0_118 = arith.constant 0 : index
    %177 = vector.load %arg11[%c0_117, %c0_118] : memref<288x256xbf16, #tpu.memory_space<vmem>>, vector<32x256xbf16>
    tpu.vector_store %arg11[%c0_117, %c0_118], %176 {strides = array<i32>} : memref<288x256xbf16, #tpu.memory_space<vmem>>, vector<32x256xbf16>,
    %c0_119 = arith.constant 0 : index
    %c16_120 = arith.constant 16 : index
    %178 = vector.load %arg14[%c0_119, %c16_120] : memref<32x320xbf16, #tpu.memory_space<vmem>>, vector<32x256xbf16>
    %c32_121 = arith.constant 32 : index
    %c0_122 = arith.constant 0 : index
    %179 = vector.load %arg11[%c32_121, %c0_122] : memref<288x256xbf16, #tpu.memory_space<vmem>>, vector<32x256xbf16>
    tpu.vector_store %arg11[%c32_121, %c0_122], %178 {strides = array<i32>} : memref<288x256xbf16, #tpu.memory_space<vmem>>, vector<32x256xbf16>,
    %c0_123 = arith.constant 0 : index
    %c17_124 = arith.constant 17 : index
    %180 = vector.load %arg14[%c0_123, %c17_124] : memref<32x320xbf16, #tpu.memory_space<vmem>>, vector<32x256xbf16>
    %c0_i32_125 = arith.constant 0 : i32
    %181 = arith.sitofp %c0_i32_125 : i32 to bf16
    %182 = vector.shape_cast %170 : vector<1x256xi1> to vector<1x256xi1>
    %183 = vector.broadcast %182 : vector<1x256xi1> to vector<32x256xi1>
    %184 = vector.broadcast %181 : bf16 to vector<32x256xbf16>
    %185 = arith.select %183, %180, %184 : vector<32x256xi1>, vector<32x256xbf16>
    %c64_126 = arith.constant 64 : index
    %c0_127 = arith.constant 0 : index
    %186 = vector.load %arg11[%c64_126, %c0_127] : memref<288x256xbf16, #tpu.memory_space<vmem>>, vector<32x256xbf16>
    tpu.vector_store %arg11[%c64_126, %c0_127], %185 {strides = array<i32>} : memref<288x256xbf16, #tpu.memory_space<vmem>>, vector<32x256xbf16>,
    %c0_128 = arith.constant 0 : index
    %c31_129 = arith.constant 31 : index
    %187 = vector.load %arg14[%c0_128, %c31_129] : memref<32x320xbf16, #tpu.memory_space<vmem>>, vector<32x256xbf16>
    %c0_i32_130 = arith.constant 0 : i32
    %188 = arith.sitofp %c0_i32_130 : i32 to bf16
    %189 = vector.shape_cast %168 : vector<1x256xi1> to vector<1x256xi1>
    %190 = vector.broadcast %189 : vector<1x256xi1> to vector<32x256xi1>
    %191 = vector.broadcast %188 : bf16 to vector<32x256xbf16>
    %192 = arith.select %190, %187, %191 : vector<32x256xi1>, vector<32x256xbf16>
    %c96_131 = arith.constant 96 : index
    %c0_132 = arith.constant 0 : index
    %193 = vector.load %arg11[%c96_131, %c0_132] : memref<288x256xbf16, #tpu.memory_space<vmem>>, vector<32x256xbf16>
    tpu.vector_store %arg11[%c96_131, %c0_132], %192 {strides = array<i32>} : memref<288x256xbf16, #tpu.memory_space<vmem>>, vector<32x256xbf16>,
    %c0_133 = arith.constant 0 : index
    %c32_134 = arith.constant 32 : index
    %194 = vector.load %arg14[%c0_133, %c32_134] : memref<32x320xbf16, #tpu.memory_space<vmem>>, vector<32x256xbf16>
    %c128_135 = arith.constant 128 : index
    %c0_136 = arith.constant 0 : index
    %195 = vector.load %arg11[%c128_135, %c0_136] : memref<288x256xbf16, #tpu.memory_space<vmem>>, vector<32x256xbf16>
    tpu.vector_store %arg11[%c128_135, %c0_136], %194 {strides = array<i32>} : memref<288x256xbf16, #tpu.memory_space<vmem>>, vector<32x256xbf16>,
    %c0_137 = arith.constant 0 : index
    %c33_138 = arith.constant 33 : index
    %196 = vector.load %arg14[%c0_137, %c33_138] : memref<32x320xbf16, #tpu.memory_space<vmem>>, vector<32x256xbf16>
    %c0_i32_139 = arith.constant 0 : i32
    %197 = arith.sitofp %c0_i32_139 : i32 to bf16
    %198 = vector.shape_cast %170 : vector<1x256xi1> to vector<1x256xi1>
    %199 = vector.broadcast %198 : vector<1x256xi1> to vector<32x256xi1>
    %200 = vector.broadcast %197 : bf16 to vector<32x256xbf16>
    %201 = arith.select %199, %196, %200 : vector<32x256xi1>, vector<32x256xbf16>
    %c160_140 = arith.constant 160 : index
    %c0_141 = arith.constant 0 : index
    %202 = vector.load %arg11[%c160_140, %c0_141] : memref<288x256xbf16, #tpu.memory_space<vmem>>, vector<32x256xbf16>
    tpu.vector_store %arg11[%c160_140, %c0_141], %201 {strides = array<i32>} : memref<288x256xbf16, #tpu.memory_space<vmem>>, vector<32x256xbf16>,
    %c0_142 = arith.constant 0 : index
    %c47_143 = arith.constant 47 : index
    %203 = vector.load %arg14[%c0_142, %c47_143] : memref<32x320xbf16, #tpu.memory_space<vmem>>, vector<32x256xbf16>
    %c0_i32_144 = arith.constant 0 : i32
    %204 = arith.sitofp %c0_i32_144 : i32 to bf16
    %205 = vector.shape_cast %168 : vector<1x256xi1> to vector<1x256xi1>
    %206 = vector.broadcast %205 : vector<1x256xi1> to vector<32x256xi1>
    %207 = vector.broadcast %204 : bf16 to vector<32x256xbf16>
    %208 = arith.select %206, %203, %207 : vector<32x256xi1>, vector<32x256xbf16>
    %c192_145 = arith.constant 192 : index
    %c0_146 = arith.constant 0 : index
    %209 = vector.load %arg11[%c192_145, %c0_146] : memref<288x256xbf16, #tpu.memory_space<vmem>>, vector<32x256xbf16>
    tpu.vector_store %arg11[%c192_145, %c0_146], %208 {strides = array<i32>} : memref<288x256xbf16, #tpu.memory_space<vmem>>, vector<32x256xbf16>,
    %c0_147 = arith.constant 0 : index
    %c48_148 = arith.constant 48 : index
    %210 = vector.load %arg14[%c0_147, %c48_148] : memref<32x320xbf16, #tpu.memory_space<vmem>>, vector<32x256xbf16>
    %c224_149 = arith.constant 224 : index
    %c0_150 = arith.constant 0 : index
    %211 = vector.load %arg11[%c224_149, %c0_150] : memref<288x256xbf16, #tpu.memory_space<vmem>>, vector<32x256xbf16>
    tpu.vector_store %arg11[%c224_149, %c0_150], %210 {strides = array<i32>} : memref<288x256xbf16, #tpu.memory_space<vmem>>, vector<32x256xbf16>,
    %c0_151 = arith.constant 0 : index
    %c49_152 = arith.constant 49 : index
    %212 = vector.load %arg14[%c0_151, %c49_152] : memref<32x320xbf16, #tpu.memory_space<vmem>>, vector<32x256xbf16>
    %c0_i32_153 = arith.constant 0 : i32
    %213 = arith.sitofp %c0_i32_153 : i32 to bf16
    %214 = vector.shape_cast %170 : vector<1x256xi1> to vector<1x256xi1>
    %215 = vector.broadcast %214 : vector<1x256xi1> to vector<32x256xi1>
    %216 = vector.broadcast %213 : bf16 to vector<32x256xbf16>
    %217 = arith.select %215, %212, %216 : vector<32x256xi1>, vector<32x256xbf16>
    %c256_154 = arith.constant 256 : index
    %c0_155 = arith.constant 0 : index
    %218 = vector.load %arg11[%c256_154, %c0_155] : memref<288x256xbf16, #tpu.memory_space<vmem>>, vector<32x256xbf16>
    tpu.vector_store %arg11[%c256_154, %c0_155], %217 {strides = array<i32>} : memref<288x256xbf16, #tpu.memory_space<vmem>>, vector<32x256xbf16>,
    %c0_156 = arith.constant 0 : index
    %c0_157 = arith.constant 0 : index
    %219 = vector.load %arg11[%c0_156, %c0_157] : memref<288x256xbf16, #tpu.memory_space<vmem>>, vector<288x256xbf16>
    %cst_158 = arith.constant dense<0.000000e+00> : vector<32x256xf32>
    %220 = tpu.matmul %165, %219, %cst_158 {dimension_numbers = #tpu.dot_dimension_numbers<[1], [0], [0], [1], [0, 0, 1, 1], [], []>} : vector<32x288xbf16>, vector<288x256xbf16>, vector<32x256xf32> -> vector<32x256xf32>
    %221 = vector.broadcast %166 : vector<32x1xf32> to vector<32x256xf32>
    %222 = arith.addf %220, %221 : vector<32x256xf32>
    %cst_159 = arith.constant 0.000000e+00 : f32
    %223 = vector.broadcast %cst_159 : f32 to vector<32x256xf32>
    %224 = arith.maximumf %222, %223 : vector<32x256xf32>
    %225 = arith.truncf %224 : vector<32x256xf32> to vector<32x256xbf16>
    %c0_160 = arith.constant 0 : index
    %c32_161 = arith.constant 32 : index
    %226 = vector.load %arg13[%c0_160, %c32_161] : memref<32x320xbf16, #tpu.memory_space<vmem>>, vector<32x256xbf16>
    tpu.vector_store %arg13[%c0_160, %c32_161], %225 {strides = array<i32>} : memref<32x320xbf16, #tpu.memory_space<vmem>>, vector<32x256xbf16>,
    %c0_162 = arith.constant 0 : index
    %c0_163 = arith.constant 0 : index
    %227 = vector.load %arg8[%c0_162, %c0_163] : memref<4x288xbf16, #tpu.memory_space<vmem>>, vector<4x288xbf16>
    %c0_164 = arith.constant 0 : index
    %c0_165 = arith.constant 0 : index
    %228 = vector.load %arg9[%c0_164, %c0_165] : memref<4x1xf32, #tpu.memory_space<vmem>>, vector<4x1xf32>
    %c1_i32_166 = arith.constant 1 : i32
    %229 = vector.broadcast %c1_i32_166 : i32 to vector<1x256xi32>
    %230 = arith.cmpi sge, %31, %229 : vector<1x256xi32>
    %c15_i32_167 = arith.constant 15 : i32
    %231 = vector.broadcast %c15_i32_167 : i32 to vector<1x256xi32>
    %232 = arith.cmpi slt, %31, %231 : vector<1x256xi32>
    %c0_168 = arith.constant 0 : index
    %c15_169 = arith.constant 15 : index
    %233 = vector.load %arg13[%c0_168, %c15_169] : memref<32x320xbf16, #tpu.memory_space<vmem>>, vector<32x256xbf16>
    %c0_i32_170 = arith.constant 0 : i32
    %234 = arith.sitofp %c0_i32_170 : i32 to bf16
    %235 = vector.shape_cast %230 : vector<1x256xi1> to vector<1x256xi1>
    %236 = vector.broadcast %235 : vector<1x256xi1> to vector<32x256xi1>
    %237 = vector.broadcast %234 : bf16 to vector<32x256xbf16>
    %238 = arith.select %236, %233, %237 : vector<32x256xi1>, vector<32x256xbf16>
    %c0_171 = arith.constant 0 : index
    %c0_172 = arith.constant 0 : index
    %239 = vector.load %arg11[%c0_171, %c0_172] : memref<288x256xbf16, #tpu.memory_space<vmem>>, vector<32x256xbf16>
    tpu.vector_store %arg11[%c0_171, %c0_172], %238 {strides = array<i32>} : memref<288x256xbf16, #tpu.memory_space<vmem>>, vector<32x256xbf16>,
    %c0_173 = arith.constant 0 : index
    %c16_174 = arith.constant 16 : index
    %240 = vector.load %arg13[%c0_173, %c16_174] : memref<32x320xbf16, #tpu.memory_space<vmem>>, vector<32x256xbf16>
    %c32_175 = arith.constant 32 : index
    %c0_176 = arith.constant 0 : index
    %241 = vector.load %arg11[%c32_175, %c0_176] : memref<288x256xbf16, #tpu.memory_space<vmem>>, vector<32x256xbf16>
    tpu.vector_store %arg11[%c32_175, %c0_176], %240 {strides = array<i32>} : memref<288x256xbf16, #tpu.memory_space<vmem>>, vector<32x256xbf16>,
    %c0_177 = arith.constant 0 : index
    %c17_178 = arith.constant 17 : index
    %242 = vector.load %arg13[%c0_177, %c17_178] : memref<32x320xbf16, #tpu.memory_space<vmem>>, vector<32x256xbf16>
    %c0_i32_179 = arith.constant 0 : i32
    %243 = arith.sitofp %c0_i32_179 : i32 to bf16
    %244 = vector.shape_cast %232 : vector<1x256xi1> to vector<1x256xi1>
    %245 = vector.broadcast %244 : vector<1x256xi1> to vector<32x256xi1>
    %246 = vector.broadcast %243 : bf16 to vector<32x256xbf16>
    %247 = arith.select %245, %242, %246 : vector<32x256xi1>, vector<32x256xbf16>
    %c64_180 = arith.constant 64 : index
    %c0_181 = arith.constant 0 : index
    %248 = vector.load %arg11[%c64_180, %c0_181] : memref<288x256xbf16, #tpu.memory_space<vmem>>, vector<32x256xbf16>
    tpu.vector_store %arg11[%c64_180, %c0_181], %247 {strides = array<i32>} : memref<288x256xbf16, #tpu.memory_space<vmem>>, vector<32x256xbf16>,
    %c0_182 = arith.constant 0 : index
    %c31_183 = arith.constant 31 : index
    %249 = vector.load %arg13[%c0_182, %c31_183] : memref<32x320xbf16, #tpu.memory_space<vmem>>, vector<32x256xbf16>
    %c0_i32_184 = arith.constant 0 : i32
    %250 = arith.sitofp %c0_i32_184 : i32 to bf16
    %251 = vector.shape_cast %230 : vector<1x256xi1> to vector<1x256xi1>
    %252 = vector.broadcast %251 : vector<1x256xi1> to vector<32x256xi1>
    %253 = vector.broadcast %250 : bf16 to vector<32x256xbf16>
    %254 = arith.select %252, %249, %253 : vector<32x256xi1>, vector<32x256xbf16>
    %c96_185 = arith.constant 96 : index
    %c0_186 = arith.constant 0 : index
    %255 = vector.load %arg11[%c96_185, %c0_186] : memref<288x256xbf16, #tpu.memory_space<vmem>>, vector<32x256xbf16>
    tpu.vector_store %arg11[%c96_185, %c0_186], %254 {strides = array<i32>} : memref<288x256xbf16, #tpu.memory_space<vmem>>, vector<32x256xbf16>,
    %c0_187 = arith.constant 0 : index
    %c32_188 = arith.constant 32 : index
    %256 = vector.load %arg13[%c0_187, %c32_188] : memref<32x320xbf16, #tpu.memory_space<vmem>>, vector<32x256xbf16>
    %c128_189 = arith.constant 128 : index
    %c0_190 = arith.constant 0 : index
    %257 = vector.load %arg11[%c128_189, %c0_190] : memref<288x256xbf16, #tpu.memory_space<vmem>>, vector<32x256xbf16>
    tpu.vector_store %arg11[%c128_189, %c0_190], %256 {strides = array<i32>} : memref<288x256xbf16, #tpu.memory_space<vmem>>, vector<32x256xbf16>,
    %c0_191 = arith.constant 0 : index
    %c33_192 = arith.constant 33 : index
    %258 = vector.load %arg13[%c0_191, %c33_192] : memref<32x320xbf16, #tpu.memory_space<vmem>>, vector<32x256xbf16>
    %c0_i32_193 = arith.constant 0 : i32
    %259 = arith.sitofp %c0_i32_193 : i32 to bf16
    %260 = vector.shape_cast %232 : vector<1x256xi1> to vector<1x256xi1>
    %261 = vector.broadcast %260 : vector<1x256xi1> to vector<32x256xi1>
    %262 = vector.broadcast %259 : bf16 to vector<32x256xbf16>
    %263 = arith.select %261, %258, %262 : vector<32x256xi1>, vector<32x256xbf16>
    %c160_194 = arith.constant 160 : index
    %c0_195 = arith.constant 0 : index
    %264 = vector.load %arg11[%c160_194, %c0_195] : memref<288x256xbf16, #tpu.memory_space<vmem>>, vector<32x256xbf16>
    tpu.vector_store %arg11[%c160_194, %c0_195], %263 {strides = array<i32>} : memref<288x256xbf16, #tpu.memory_space<vmem>>, vector<32x256xbf16>,
    %c0_196 = arith.constant 0 : index
    %c47_197 = arith.constant 47 : index
    %265 = vector.load %arg13[%c0_196, %c47_197] : memref<32x320xbf16, #tpu.memory_space<vmem>>, vector<32x256xbf16>
    %c0_i32_198 = arith.constant 0 : i32
    %266 = arith.sitofp %c0_i32_198 : i32 to bf16
    %267 = vector.shape_cast %230 : vector<1x256xi1> to vector<1x256xi1>
    %268 = vector.broadcast %267 : vector<1x256xi1> to vector<32x256xi1>
    %269 = vector.broadcast %266 : bf16 to vector<32x256xbf16>
    %270 = arith.select %268, %265, %269 : vector<32x256xi1>, vector<32x256xbf16>
    %c192_199 = arith.constant 192 : index
    %c0_200 = arith.constant 0 : index
    %271 = vector.load %arg11[%c192_199, %c0_200] : memref<288x256xbf16, #tpu.memory_space<vmem>>, vector<32x256xbf16>
    tpu.vector_store %arg11[%c192_199, %c0_200], %270 {strides = array<i32>} : memref<288x256xbf16, #tpu.memory_space<vmem>>, vector<32x256xbf16>,
    %c0_201 = arith.constant 0 : index
    %c48_202 = arith.constant 48 : index
    %272 = vector.load %arg13[%c0_201, %c48_202] : memref<32x320xbf16, #tpu.memory_space<vmem>>, vector<32x256xbf16>
    %c224_203 = arith.constant 224 : index
    %c0_204 = arith.constant 0 : index
    %273 = vector.load %arg11[%c224_203, %c0_204] : memref<288x256xbf16, #tpu.memory_space<vmem>>, vector<32x256xbf16>
    tpu.vector_store %arg11[%c224_203, %c0_204], %272 {strides = array<i32>} : memref<288x256xbf16, #tpu.memory_space<vmem>>, vector<32x256xbf16>,
    %c0_205 = arith.constant 0 : index
    %c49_206 = arith.constant 49 : index
    %274 = vector.load %arg13[%c0_205, %c49_206] : memref<32x320xbf16, #tpu.memory_space<vmem>>, vector<32x256xbf16>
    %c0_i32_207 = arith.constant 0 : i32
    %275 = arith.sitofp %c0_i32_207 : i32 to bf16
    %276 = vector.shape_cast %232 : vector<1x256xi1> to vector<1x256xi1>
    %277 = vector.broadcast %276 : vector<1x256xi1> to vector<32x256xi1>
    %278 = vector.broadcast %275 : bf16 to vector<32x256xbf16>
    %279 = arith.select %277, %274, %278 : vector<32x256xi1>, vector<32x256xbf16>
    %c256_208 = arith.constant 256 : index
    %c0_209 = arith.constant 0 : index
    %280 = vector.load %arg11[%c256_208, %c0_209] : memref<288x256xbf16, #tpu.memory_space<vmem>>, vector<32x256xbf16>
    tpu.vector_store %arg11[%c256_208, %c0_209], %279 {strides = array<i32>} : memref<288x256xbf16, #tpu.memory_space<vmem>>, vector<32x256xbf16>,
    %c0_210 = arith.constant 0 : index
    %c0_211 = arith.constant 0 : index
    %281 = vector.load %arg11[%c0_210, %c0_211] : memref<288x256xbf16, #tpu.memory_space<vmem>>, vector<288x256xbf16>
    %cst_212 = arith.constant dense<0.000000e+00> : vector<4x256xf32>
    %282 = tpu.matmul %227, %281, %cst_212 {dimension_numbers = #tpu.dot_dimension_numbers<[1], [0], [0], [1], [0, 0, 1, 1], [], []>} : vector<4x288xbf16>, vector<288x256xbf16>, vector<4x256xf32> -> vector<4x256xf32>
    %283 = vector.broadcast %228 : vector<4x1xf32> to vector<4x256xf32>
    %284 = arith.addf %282, %283 : vector<4x256xf32>
    %c0_213 = arith.constant 0 : index
    %c32_214 = arith.constant 32 : index
    %285 = vector.load %arg12[%c0_213, %c32_214] : memref<4x320xf32, #tpu.memory_space<vmem>>, vector<4x256xf32>
    %286 = arith.addf %284, %285 : vector<4x256xf32>
    %c0_215 = arith.constant 0 : index
    %c0_216 = arith.constant 0 : index
    %c0_217 = arith.constant 0 : index
    %287 = vector.load %arg10[%c0_215, %c0_216, %c0_217] : memref<1x4x256xf32, #tpu.memory_space<vmem>>, vector<1x4x256xf32>
    %288 = vector.shape_cast %287 : vector<1x4x256xf32> to vector<4x256xf32>
    %289 = vector.shape_cast %286 : vector<4x256xf32> to vector<1x4x256xf32>
    tpu.vector_store %arg10[%c0_215, %c0_216, %c0_217], %289 {strides = array<i32>} : memref<1x4x256xf32, #tpu.memory_space<vmem>>, vector<1x4x256xf32>,
    return
  }
  func.func @transform_0(%arg0: i32) -> (i32, i32, i32) {
    %c0_i32 = arith.constant 0 : i32
    %c0_i32_0 = arith.constant 0 : i32
    %c0_i32_1 = arith.constant 0 : i32
    return %arg0, %c0_i32, %c0_i32_0 : i32, i32, i32
  }
  func.func @transform_1(%arg0: i32) -> (i32, i32) {
    %c0_i32 = arith.constant 0 : i32
    %c0_i32_0 = arith.constant 0 : i32
    %c0_i32_1 = arith.constant 0 : i32
    return %c0_i32, %c0_i32_0 : i32, i32
  }
  func.func @transform_2(%arg0: i32) -> (i32, i32) {
    %c0_i32 = arith.constant 0 : i32
    %c0_i32_0 = arith.constant 0 : i32
    %c0_i32_1 = arith.constant 0 : i32
    return %c0_i32, %c0_i32_0 : i32, i32
  }
  func.func @transform_3(%arg0: i32) -> (i32, i32) {
    %c0_i32 = arith.constant 0 : i32
    %c0_i32_0 = arith.constant 0 : i32
    %c0_i32_1 = arith.constant 0 : i32
    return %c0_i32, %c0_i32_0 : i32, i32
  }
  func.func @transform_4(%arg0: i32) -> (i32, i32) {
    %c0_i32 = arith.constant 0 : i32
    %c0_i32_0 = arith.constant 0 : i32
    %c0_i32_1 = arith.constant 0 : i32
    return %c0_i32, %c0_i32_0 : i32, i32
  }
  func.func @transform_5(%arg0: i32) -> (i32, i32) {
    %c0_i32 = arith.constant 0 : i32
    %c0_i32_0 = arith.constant 0 : i32
    %c0_i32_1 = arith.constant 0 : i32
    return %c0_i32, %c0_i32_0 : i32, i32
  }
  func.func @transform_6(%arg0: i32) -> (i32, i32) {
    %c0_i32 = arith.constant 0 : i32
    %c0_i32_0 = arith.constant 0 : i32
    %c0_i32_1 = arith.constant 0 : i32
    return %c0_i32, %c0_i32_0 : i32, i32
  }
  func.func @transform_7(%arg0: i32) -> (i32, i32) {
    %c0_i32 = arith.constant 0 : i32
    %c0_i32_0 = arith.constant 0 : i32
    %c0_i32_1 = arith.constant 0 : i32
    return %c0_i32, %c0_i32_0 : i32, i32
  }
  func.func @transform_8(%arg0: i32) -> (i32, i32) {
    %c0_i32 = arith.constant 0 : i32
    %c0_i32_0 = arith.constant 0 : i32
    %c0_i32_1 = arith.constant 0 : i32
    return %c0_i32, %c0_i32_0 : i32, i32
  }
  func.func @transform_9(%arg0: i32) -> (i32, i32, i32) {
    %c0_i32 = arith.constant 0 : i32
    %c0_i32_0 = arith.constant 0 : i32
    %c0_i32_1 = arith.constant 0 : i32
    return %arg0, %c0_i32, %c0_i32_0 : i32, i32, i32
  }
}

</mosaic_0001>

<bundles_post_ra>
// kernel: tpu_custom_call.1
= control target key start
LH: loop header
LB: loop body
LE: loop exit
PB: predicated region body
PF: predicated region fallthrough
CT: control target
= control target key end

     0   :  { %s6231_s0 = inlined_call_operand.hbm [shape: f32[2,4,256], index: 0, kind: input, shape index: {}]   ;;  %s6232_s1 = inlined_call_operand.hbm [shape: bf16[32,36], index: 1, kind: input, shape index: {}]   ;;  %s6233_s2 = inlined_call_operand.vmem [shape: f32[32,1], index: 2, kind: input, shape index: {}]   ;;  %s6234_s3 = inlined_call_operand.vmem [shape: bf16[32,288], index: 3, kind: input, shape index: {}]   ;;  %s6235_s4 = inlined_call_operand.vmem [shape: f32[32,1], index: 4, kind: input, shape index: {}]   ;;  %s6236_s5 = inlined_call_operand.vmem [shape: bf16[32,288], index: 5, kind: input, shape index: {}]   ;;  %s6237_s6 = inlined_call_operand.vmem [shape: f32[32,1], index: 6, kind: input, shape index: {}]   ;;  %s6238_s7 = inlined_call_operand.vmem [shape: bf16[4,288], index: 7, kind: input, shape index: {}]   ;;  %s6239_s8 = inlined_call_operand.vmem [shape: f32[4,1], index: 8, kind: input, shape index: {}]   ;;  %s6240_s9 = inlined_call_operand.hbm [shape: f32[2,4,256], index: 9, kind: output, shape index: {}]  }
   0x1   :  { %6292 = sst [smem:[#allocation23_spill]] %s6232_s1 }
   0x2   :  { %14 = vsyncpa [#allocation7], 0 }
   0x3   :  { %16 = vsyncpa [#allocation7 + $0x1], 0 }
   0x4   :  { %17 = vsyncpa [#allocation10], 0 }
   0x5   :  { %18 = vsyncpa [#allocation8], 0 }
   0x6   :  { %20 = vsyncpa [#allocation8 + $0x1], 0  ;;  %s4475_s30 = smov 0   ;;  %s4477_s10 = smov 0  }
   0x7   :  { %s4479_s11 = smov 0   ;;  %s4481_s12 = smov 0  }
   0x8 LB: > { %s4496_s13 = sadd.s32 4294967295, %s4399_s12   ;;  %s3939_s14 = sadd.s32 4294967294, %s4399_s12   ;;  %s4399_s12 = sphi %s4481_s12, %s6550_s12   ;;  %s4395_s11 = sphi %s4479_s11, %s6554_s11   ;;  %s4391_s10 = sphi %s4477_s10, %s6553_s10   ;;  %s4387_s30 = sphi %s4475_s30, %s6552_s30  }
   0x9   : > { %p46_p0 = scmp.ne.s32.totalorder %s4391_s10, %s4387_s30  ;;  %p6244_p1 = scmp.eq.s32.totalorder %s4496_s13, 0 }
   0xa   : > { %p244_p3 = scmp.eq.s32.totalorder %s3939_s14, 1  ;;  %p3940_p5 = scmp.ge.s32.totalorder %s4399_s12, 1 }
   0xb   : > { %p4505_p4 = por %p6244_p1, %p46_p0  ;;  %p251_p7 = scmp.lt.s32.totalorder %s4399_s12, 3 }
   0xc   : > { %p4510_p6 = por %p244_p3, %p46_p0  ;;  %s4401_s18 = smov [#allocation9]  }
   0xd   : > { %s6293_s15 = scalar_select %p4505_p4, 1, 0 }
   0xe   : > { %s6294_s16 = scalar_select %p4510_p6, 1, 0 }
   0xf   : > { %p4515_p8 = pnand %p3940_p5, %p251_p7  ;;  %s263_s19 = sshll.u32 %s4401_s18, 4  ;;  %s264_s19 = int_to_ptr.vmem [resolvable:$true] %s263_s19 }
  0x10   : > { %6295 = sst [smem:[#allocation15_spill]] %s6294_s16  ;;  %s4529_s21 = sadd.s32 1, %s4399_s12  }
  0x11   : > { %s6296_s17 = scalar_select %p4515_p8, 1, 0 }
  0x12   : > { %p4149_p9 = pneg %p4515_p8  ;;  %6298 = sst [smem:[#allocation16_spill]] %s4529_s21 }
  0x13   : > { %s33_s22 = sadd.s32 1, %s4395_s11  ;;  %s30_s23 = ssub.s32 %s4399_s12, %s4529_s21 }
  0x14   : > { %p4524_p11 = pnand %p4149_p9, %p6244_p1  ;;  %s4288_s24 = scalar_lea.vmem %s264_s19, 256 }
  0x15   : > { %p4289_p13 = scmp.ne.s32.totalorder %s264_s19, %s4288_s24  ;;  %p4296_p5 = scmp.lt.s32.totalorder %s264_s19, %s264_s19 }
  0x16   : > { %p4279_p12 = pneg %p4524_p11  ;;  %p4297_p7 = scmp.lt.s32.totalorder %s4288_s24, %s4288_s24 }
  0x18   : > { %p4291_p0 = pnand %p4289_p13, %p4279_p12  ;;  %p4298_p10 = por %p4297_p7, %p4296_p5 }
  0x1a   : > { %p4292_p3 = pneg %p4291_p0 }
  0x1c   : > { %p4299_p2 = pnand %p4298_p10, %p4292_p3 }
  0x1e   : > { %4302 = shalt.err (!%p4299_p2)
}
  0x1f   : > { %s4402_s25 = smov 64   ;;  %s4403_s26 = smov 4  }
  0x20   : > { %s6299_s1 = sld [smem:[#allocation23_spill]]  ;;  %p31_p9 = scmp.eq.s32.totalorder %s30_s23, 0 }
  0x21   : > { %p40_p12 = scmp.ne.s32.totalorder %s4395_s11, %s4391_s10  ;;  %p41_p10 = scmp.eq.s32.totalorder %s4399_s12, 0 }
  0x22   : > { %p4162_p2 = scmp.lt.s32.totalorder %s4399_s12, 2  ;;  %p6301_p0 = scmp.eq.s32.totalorder %s4496_s13, 1 }
  0x23   : > { %s4546_s29 = scalar_select %p31_p9, %s4395_s11, %s33_s22  }
  0x24   : > { %p42_p13 = por %p41_p10, %p40_p12  ;;  %p4550_p3 = por %p6301_p0, %p40_p12 }
  0x25   : > { %6300 = sst [smem:[#allocation17_spill]] %s4546_s29  ;;  %s298_s18 = sand.u32 1, %s4395_s11  }
  0x26   : > { %4152 = dma.hbm_to_vmem [thread:$0]  (!%p4524_p11), %s6299_s1, 256, %s264_s19, [#allocation10], %s4402_s25, %s4402_s25, %s4403_s26  }
  0x27   : > { %s6302_s14 = scalar_select %p4550_p3, 1, 0 }
  0x28   : > { %s4115_s24 = sshll.u32 %s4399_s12, 7  ;;  %s3943_s21 = sshll.u32 %s298_s18, 3 }
  0x29   : > { %s4559_s27 = scalar_lea.hbm %s6231_s0, %s4115_s24  ;;  %s302_s19 = scalar_lea.vmem [#allocation6], %s3943_s21 }
  0x2a   : > { %s310_s22 = sshll.u32 %s302_s19, 4  ;;  %p4561_p11 = pnand %p4162_p2, %p42_p13  ;;  %s311_s22 = int_to_ptr.vmem [resolvable:$true] %s310_s22 }
  0x2b   : > { %s299_s25 = scalar_lea.sflag [#allocation7], %s298_s18  ;;  %s4303_s26 = scalar_lea.hbm %s4559_s27, 128 }
  0x2c   : > { %p4304_p5 = scmp.ne.s32.totalorder %s4559_s27, %s4303_s26  ;;  %p4305_p7 = pneg %p4561_p11 }
  0x2d   : > { %s4308_s24 = scalar_lea.hbm %s6231_s0, 256  ;;  %p4309_p10 = scmp.lt.s32.totalorder %s4559_s27, %s6231_s0 }
  0x2e   : > { %p4306_p9 = pnand %p4305_p7, %p4304_p5  ;;  %p4310_p2 = scmp.lt.s32.totalorder %s4308_s24, %s4303_s26 }
  0x30   : > { %p4307_p12 = pneg %p4306_p9  ;;  %p4311_p13 = por %p4310_p2, %p4309_p10 }
  0x32   : > { %p4312_p0 = pnand %p4311_p13, %p4307_p12 }
  0x34   : > { %4315 = shalt.err (!%p4312_p0)
}
  0x35   : > { %s4316_s19 = scalar_lea.vmem %s311_s22, 128  ;;  %s4404_s18 = smov [#allocation6]  }
  0x36   : > { %p4317_p1 = scmp.ne.s32.totalorder %s311_s22, %s4316_s19  ;;  %s4321_s1 = sshll.u32 %s4404_s18, 4  ;;  %s4322_s1 = int_to_ptr.vmem [resolvable:$false] %s4321_s1 }
  0x37   : > { %s4323_s29 = scalar_lea.vmem %s4322_s1, 256  ;;  %p4324_p5 = scmp.lt.s32.totalorder %s311_s22, %s4322_s1 }
  0x38   : > { %p4319_p6 = pnand %p4317_p1, %p4305_p7  ;;  %p4325_p9 = scmp.lt.s32.totalorder %s4323_s29, %s4316_s19 }
  0x3a   : > { %p4320_p3 = pneg %p4319_p6  ;;  %p4326_p4 = por %p4325_p9, %p4324_p5 }
  0x3c   : > { %p4327_p8 = pnand %p4326_p4, %p4320_p3 }
  0x3e   : > { %4330 = shalt.err (!%p4327_p8)
}
  0x3f   : > { %4156 = dma.hbm_to_vmem [thread:$0]  (!%p4561_p11), %s4559_s27, 128, %s311_s22, %s299_s25  }
  0x40   : > { %p6304_p12 = scmp.ne.s32.totalorder %s6296_s17, 0 }
  0x42   : > { %319 = sbr.rel (%p6304_p12) target bundleno = 2375 (0x947), region = 56 }
  0x47   : > { %s4582_s26 = sand.u32 1, %s4391_s10   ;;  %p6305_p1 = scmp.ne.s32.totalorder %s6293_s15, 0 }
  0x48   : > { %s6248_s16 = sshll.u32 %s4582_s26, 3  ;;  %s322_s1 = scalar_lea.sflag [#allocation7], %s4582_s26 }
  0x49   : > { %s325_s29 = scalar_lea.vmem [#allocation6], %s6248_s16 }
  0x4a   : > { %4374 = dma.done.wait (%p6305_p1), %s322_s1, 128  }
  0x4b   : > { %4376 = vsyncadd (%p6305_p1), %s322_s1, 4294967168  ;;  %p6306_p4 = scmp.eq.s32.totalorder %s4496_s13, 0 }
  0x4d   : > { %4378 = dma.done.wait (%p6306_p4), [#allocation10], 256   ;;  %p6307_p6 = pmov %p6306_p4 }
  0x4e   : > { %vm6252_vm0 = vcmask 257024   ;;  %vm369_vm1 = vcmask 519424   ;;  %v4405_v0 = vmov 0.0   ;;  %v387_v1 = vld [vmem:[%s325_s29] sm:$0xff]  ;;  %s4406_s17 = smov 32   ;;  %vm396_vm2 = vcmask 1043712  }
  0x4f   : > { %4380 = vsyncadd (%p6307_p6), [#allocation10], 4294967040  ;;  %368 = vst.msk [vmem:[#allocation3] sm:$0xf] %vm6252_vm0, %v4405_v0  ;;  %389 = vrot.lane.b32.xlu0 %v387_v1, %s4406_s17  ;;  %vm397_vm3 = vcmask 1047556   ;;  %vm6253_vm4 = vcmask 261120   ;;  %v6266_v25 = vlaneseq }
  0x50   : > { %370 = vst.msk [vmem:[#allocation3 + $0x8] sm:$0xf] %vm369_vm1, %v4405_v0  ;;  %vm4599_vm5 = vmor %vm397_vm3, %vm396_vm2  ;;  %s6249_s15 = smov 79   ;;  %s6262_s27 = smov 95   ;;  %v6267_v27 = vmov 0   ;;  %v434_v33 = vld [vmem:[%s6233_s2 + $0x10] sm:$0xff] }
  0x51   : > { %s6264_s22 = smov 81   ;;  %s6289_s23 = smov 97   ;;  %v402_v26 = vand.u32 127, %v6266_v25  ;;  %804 = vmatprep.mubr.bf16.mxu0 %v6267_v27  ;;  %371 = vst.msk [vmem:[#allocation4] sm:$0xf] %vm6252_vm0, %v6267_v27  ;;  %4249 = vset.pattern.permute.xlu1 %v6267_v27  ;;  %v435_v34 = vld [vmem:[%s6233_s2 + $0x18] sm:$0xff] }
  0x52   : > { %s6285_s25 = smov 113   ;;  %s6260_s28 = smov 96   ;;  %372 = vst.msk [vmem:[#allocation4 + $0xc] sm:$0xf] %vm6252_vm0, %v6267_v27  ;;  %373 = vst.msk [vmem:[#allocation4 + $0x18] sm:$0xf] %vm6252_vm0, %v6267_v27  ;;  %4250 = vset.pattern.permute.xlu0 %v6267_v27 }
  0x53   : > { %s4413_s24 = smov 80   ;;  %s4414_s20 = smov 112   ;;  %374 = vst.msk [vmem:[#allocation4 + $0x24] sm:$0xf] %vm6252_vm0, %v6267_v27  ;;  %379 = vst.msk [vmem:[#allocation5] sm:$0xf] %vm6252_vm0, %v6267_v27 }
  0x54   : > { %s6287_s21 = smov 111   ;;  %375 = vst.msk [vmem:[#allocation4 + $0x8] sm:$0xf] %vm369_vm1, %v6267_v27  ;;  %376 = vst.msk [vmem:[#allocation4 + $0x14] sm:$0xf] %vm369_vm1, %v6267_v27  ;;  %v403_v28 = vadd.s32 128, %v402_v26 }
  0x55   : > { %377 = vst.msk [vmem:[#allocation4 + $0x20] sm:$0xf] %vm369_vm1, %v6267_v27  ;;  %378 = vst.msk [vmem:[#allocation4 + $0x2c] sm:$0xf] %vm369_vm1, %v6267_v27  ;;  %v408_v29 = vand.u32 15, %v402_v26  ;;  %v432_v35 = vld [vmem:[%s6233_s2] sm:$0xff] }
  0x56   : > { %380 = vst.msk [vmem:[#allocation5 + $0xc] sm:$0xf] %vm6252_vm0, %v6267_v27  ;;  %381 = vst.msk [vmem:[#allocation5 + $0x18] sm:$0xf] %vm6252_vm0, %v6267_v27  ;;  %v415_v30 = vand.u32 15, %v403_v28  ;;  %v433_v37 = vld [vmem:[%s6233_s2 + $0x8] sm:$0xff] }
  0x57   : > { %382 = vst.msk [vmem:[#allocation5 + $0x24] sm:$0xf] %vm6252_vm0, %v6267_v27  ;;  %vm4661_vm6 = vcmp.ge.s32.totalorder %v408_v29, 1  ;;  %s4417_s1 = smov 31   ;;  %s4418_s29 = smov 15   ;;  %vm6255_vm9 = vcmask 777216  }
  0x58   : > { %383 = vst.msk [vmem:[#allocation5 + $0x8] sm:$0xf] %vm369_vm1, %v6267_v27  ;;  %384 = vst.msk [vmem:[#allocation5 + $0x14] sm:$0xf] %vm369_vm1, %v6267_v27  ;;  %vm4665_vm7 = vcmp.ge.s32.totalorder %v415_v30, 1  ;;  %vm4690_vm10 = vcmp.lt.s32.totalorder %v408_v29, 15 }
  0x59   : > { %385 = vst.msk [vmem:[#allocation5 + $0x20] sm:$0xf] %vm369_vm1, %v6267_v27  ;;  %386 = vst.msk [vmem:[#allocation5 + $0x2c] sm:$0xf] %vm369_vm1, %v6267_v27  ;;  %vm4694_vm11 = vcmp.lt.s32.totalorder %v415_v30, 15  ;;  %vm6256_vm12 = vcmask 662528  }
  0x5a   : > { %vm906_vm8 = vmpackc.low %vm4665_vm7, %vm4661_vm6  ;;  %vm6283_vm13 = vcmask 793600   ;;  %vm6280_vm14 = vcmask 924672   ;;  %vm6251_vm15 = vcmask 646144   ;;  %vm6284_vm1 = vcmask 1043456   ;;  %s4419_s16 = smov 17   ;;  %s4421_s19 = smov 47  }
  0x5b   : > { %v4683_v36 = vsel %vm906_vm8, 65537, %v6267_v27  ;;  %vm6254_vm2 = vcmask 785408   ;;  %vm6279_vm3 = vcmask 654336   ;;  %vm765_vm8 = vcmask 1041408   ;;  %s4422_s18 = smov 49   ;;  %p6546_p3 = scmp.ne.s32.totalorder %s6302_s14, 0 }
  0xc1   : > { %v390_v2 = vpop.permute.xlu0 %389 }
  0xc2   : > { %v391_v4 = vrot.slane %v390_v2, 4 }
  0xc4   : > { %v393_v5 = vsel %vm6253_vm4, %v391_v4, %v390_v2  ;;  %400 = vst.msk [vmem:[#allocation3 + $0x8] sm:$0xf] %vm6252_vm0, %v391_v4 }
  0xc5   : > { %399 = vst.msk [vmem:[#allocation3] sm:$0xff] %vm4599_vm5, %v393_v5 }
  0xcb   : > { %v672_v6 = vld [vmem:[#allocation3 + $0x8] sm:$0xf] }
  0xcc   : > { %v588_v7 = vld [vmem:[#allocation3 + $0x8] sm:$0xf]  ;;  %680 = vrot.lane.b32.xlu1 %v672_v6, %s6249_s15  ;;  %v587_v8 = vld [vmem:[#allocation3] sm:$0xff] }
  0xcd   : > { %596 = vrot.lane.b32.xlu0 %v588_v7, %s6262_s27  ;;  %v591_v9 = vcombine.high %v587_v8, %v587_v8  ;;  %v616_v10 = vld [vmem:[#allocation3 + $0x8] sm:$0xf] }
  0xce   : > { %v533_v12 = vld [vmem:[#allocation3 + $0x8] sm:$0xf] }
  0xcf   : > { %v4224_v11 = vpack.i.bf16 %v591_v9, %v587_v8  ;;  %v441_v13 = vld [vmem:[#allocation3 + $0x8] sm:$0xf]  ;;  %v4121_v18 = vpack.c.bf16 %v591_v9, %v587_v8 }
  0xd0   : > { %v561_v14 = vld [vmem:[#allocation3 + $0x8] sm:$0xf] }
  0xd1   : > { %624 = vrot.lane.b32.xlu0 %v616_v10, %s6264_s22  ;;  %4225 = vrot.lane.b32.xlu1 %v4224_v11, %s6262_s27  ;;  %v4122_v15 = vpack.c.bf16 %v561_v14, %v561_v14  ;;  %v643_v16 = vld [vmem:[#allocation3 + $0x8] sm:$0xf]  ;;  %v658_v22 = vrot.slane %v4121_v18, 6 }
  0xd2   : > { %v4126_v17 = vpack.c.bf16 %v643_v16, %v643_v16  ;;  %v472_v19 = vld [vmem:[#allocation3 + $0x8] sm:$0xf] }
  0xd3   : > { %v4118_v21 = vpack.c.bf16 %v472_v19, %v472_v19  ;;  %v502_v24 = vld [vmem:[#allocation3 + $0x8] sm:$0xf] }
  0xd4   : > { %v659_v20 = vrot.slane %v4126_v17, 6 }
  0xd5   : > { %541 = vrot.lane.b32.xlu0 %v533_v12, %s6289_s23  ;;  %4230 = vrot.lane.b32.xlu1 %v4224_v11, %s6264_s22  ;;  %v488_v23 = vrot.slane %v4118_v21, 6 }
  0xd9   : > { %453 = vrot.lane.b32.xlu0 %v441_v13, %s6285_s25  ;;  %4235 = vrot.lane.b32.xlu1 %v4224_v11, %s6289_s23 }
  0xdd   : > { %578 = vrot.lane.b32.xlu0 %v4122_v15, %s6260_s28  ;;  %4240 = vrot.lane.b32.xlu1 %v4224_v11, %s6285_s25 }
  0xe1   : > { %4220 = vrot.lane.b32.xlu0 %v4224_v11, %s6249_s15  ;;  %576 = vrot.lane.b32.xlu1 %v4121_v18, %s6260_s28  ;;  %s4420_s15 = smov 33  }
  0xe5   : > { %662 = vrot.lane.b32.xlu0 %v659_v20, %s4413_s24  ;;  %660 = vrot.lane.b32.xlu1 %v658_v22, %s4413_s24 }
  0xe9   : > { %491 = vrot.lane.b32.xlu0 %v488_v23, %s4414_s20  ;;  %489 = vrot.lane.b32.xlu1 %v658_v22, %s4414_s20 }
  0xed   : > { %514 = vrot.lane.b32.xlu0 %v502_v24, %s6287_s21  ;;  %4245 = vrot.lane.b32.xlu1 %v4224_v11, %s6287_s21 }
  0xf1   : > { %715 = vperm.xlu1 %4249, %v434_v33   ;;  %720 = vperm.xlu0 %4250, %v435_v34  }
  0xf5   : > { %705 = vperm.xlu1 %4249, %v432_v35   ;;  %1110 = vrot.lane.b32.xlu0 %v4683_v36, %s4417_s1  ;;  %s6332_s1 = smov 79  }
  0xf9   : > { %710 = vperm.xlu1 %4249, %v433_v37   ;;  %908 = vrot.lane.b32.xlu0 %v4683_v36, %s4418_s29 }
 0x13e   : > { %v681_v38 = vpop.permute.xlu1 %680 }
 0x13f   : > { %v597_v39 = vpop.permute.xlu0 %596 }
 0x143   : > { %v625_v40 = vpop.permute.xlu0 %624  ;;  %v4226_v41 = vpop.permute.xlu1 %4225 }
 0x144   : > { %v4228_v44 = vunpack.i.h.bf16 %v4226_v41  ;;  %v4227_v45 = vunpack.i.l.bf16 %v4226_v41 }
 0x146   : > { %v600_v46 = vsel %vm6255_vm9, %v4228_v44, %v597_v39  ;;  %v599_v47 = vsel %vm6255_vm9, %v4227_v45, %v4228_v44 }
 0x147   : > { %v542_v48 = vpop.permute.xlu0 %541  ;;  %v604_v49 = vsel %vm4694_vm11, %v600_v46, 0.0  ;;  %v603_v50 = vsel %vm4690_vm10, %v599_v47, 0.0  ;;  %v4231_v51 = vpop.permute.xlu1 %4230 }
 0x148   : > { %v4123_v52 = vpack.c.bf16 %v604_v49, %v603_v50  ;;  %v4233_v53 = vunpack.i.h.bf16 %v4231_v51  ;;  %v4232_v54 = vunpack.i.l.bf16 %v4231_v51 }
 0x14a   : > { %v612_v55 = vrot.slane %v4123_v52, 6  ;;  %v628_v56 = vsel %vm6256_vm12, %v4233_v53, %v625_v40  ;;  %v627_v57 = vsel %vm6256_vm12, %v4232_v54, %v4233_v53 }
 0x14b   : > { %v454_v58 = vpop.permute.xlu0 %453  ;;  %v632_v59 = vsel %vm4665_vm7, %v628_v56, 0.0  ;;  %v631_v60 = vsel %vm4661_vm6, %v627_v57, 0.0  ;;  %v4236_v61 = vpop.permute.xlu1 %4235 }
 0x14c   : > { %614 = vst [vmem:[#allocation2 + $0x10] sm:$0xcc] %v612_v55  ;;  %v4124_v62 = vpack.c.bf16 %v632_v59, %v631_v60  ;;  %v4238_v63 = vunpack.i.h.bf16 %v4236_v61  ;;  %v4237_v0 = vunpack.i.l.bf16 %v4236_v61 }
 0x14e   : > { %641 = vst [vmem:[#allocation2 + $0x48] sm:$0x33] %v4124_v62  ;;  %v545_v1 = vsel %vm6283_vm13, %v4238_v63, %v542_v48  ;;  %v544_v2 = vsel %vm6283_vm13, %v4237_v0, %v4238_v63 }
 0x14f   : > { %v579_v4 = vpop.permute.xlu0 %578  ;;  %v549_v5 = vsel %vm4665_vm7, %v545_v1, 0.0  ;;  %v548_v6 = vsel %vm4661_vm6, %v544_v2, 0.0  ;;  %v4241_v7 = vpop.permute.xlu1 %4240  ;;  %v4257_v2 = vld [vmem:[#allocation9] sm:$0xff]  }
 0x150   : > { %v4120_v8 = vpack.c.bf16 %v549_v5, %v548_v6  ;;  %v4243_v9 = vunpack.i.h.bf16 %v4241_v7  ;;  %v4242_v10 = vunpack.i.l.bf16 %v4241_v7  ;;  %v581_v20 = vrot.slane %v579_v4, 4  ;;  %v4258_v4 = vld [vmem:[#allocation9 + $0x8] sm:$0xff]  }
 0x152   : > { %v557_v11 = vrot.slane %v4120_v8, 6  ;;  %v457_v12 = vsel %vm6280_vm14, %v4243_v9, %v454_v58  ;;  %v456_v13 = vsel %vm6280_vm14, %v4242_v10, %v4243_v9 }
 0x153   : > { %v4221_v14 = vpop.permute.xlu0 %4220  ;;  %v461_v15 = vsel %vm4665_vm7, %v457_v12, 0.0  ;;  %v460_v16 = vsel %vm4661_vm6, %v456_v13, 0.0  ;;  %v577_v19 = vpop.permute.xlu1 %576  ;;  %vm6281_vm6 = vcmask 916480   ;;  %vm6282_vm7 = vcmask 908288  }
 0x154   : > { %v4223_v17 = vunpack.i.h.bf16 %v4221_v14  ;;  %v4222_v18 = vunpack.i.l.bf16 %v4221_v14  ;;  %559 = vst [vmem:[#allocation2 + $0xd0] sm:$0xcc] %v557_v11  ;;  %v4116_v21 = vpack.c.bf16 %v461_v15, %v460_v16  ;;  %v580_v22 = vrot.slane %v577_v19, 4 }
 0x156   : > { %v684_v23 = vsel %vm6251_vm15, %v4223_v17, %v681_v38  ;;  %v683_v24 = vsel %vm6251_vm15, %v4222_v18, %v4223_v17  ;;  %470 = vst [vmem:[#allocation2 + $0xb0] sm:$0x33] %v4116_v21  ;;  %v582_v29 = vsel %vm6284_vm1, %v580_v22, %v581_v20  ;;  %vm758_vm15 = vcmask 293888  }
 0x157   : > { %v688_v26 = vsel %vm4694_vm11, %v684_v23, 0.0  ;;  %v687_v28 = vsel %vm4690_vm10, %v683_v24, 0.0  ;;  %v663_v30 = vpop.permute.xlu0 %662  ;;  %v584_v32 = vsel %vm6254_vm2, %v577_v19, %v582_v29  ;;  %v661_v34 = vpop.permute.xlu1 %660 }
 0x158   : > { %v4127_v31 = vpack.c.bf16 %v688_v26, %v687_v28  ;;  %v665_v33 = vrot.slane %v663_v30, 4  ;;  %586 = vst [vmem:[#allocation2 + $0x10] sm:$0x33] %v584_v32  ;;  %v664_v35 = vrot.slane %v661_v34, 4 }
 0x15a   : > { %697 = vst [vmem:[#allocation2 + $0x108] sm:$0x33] %v4127_v31  ;;  %v666_v37 = vsel %vm6284_vm1, %v664_v35, %v665_v33 }
 0x15b   : > { %v492_v38 = vpop.permute.xlu0 %491  ;;  %v668_v39 = vsel %vm6279_vm3, %v661_v34, %v666_v37  ;;  %v490_v41 = vpop.permute.xlu1 %489 }
 0x15c   : > { %v494_v40 = vrot.slane %v492_v38, 4  ;;  %670 = vst [vmem:[#allocation2 + $0x48] sm:$0xcc] %v668_v39  ;;  %v493_v44 = vrot.slane %v490_v41, 4 }
 0x15e   : > { %v496_v45 = vsel %vm6284_vm1, %v493_v44, %v494_v40 }
 0x15f   : > { %v498_v46 = vsel %vm6281_vm6, %v490_v41, %v496_v45  ;;  %v4246_v47 = vpop.permute.xlu1 %4245  ;;  %v515_v51 = vpop.permute.xlu0 %514 }
 0x160   : > { %500 = vst [vmem:[#allocation2 + $0xb0] sm:$0xcc] %v498_v46  ;;  %v4248_v48 = vunpack.i.h.bf16 %v4246_v47  ;;  %v4247_v49 = vunpack.i.l.bf16 %v4246_v47 }
 0x161   : > { %v702_v50 = vld [vmem:[#allocation2 + $0x108] sm:$0x33] }
 0x162   : > { %v3969_v52 = vcombine.high %v702_v50, %v702_v50  ;;  %v3968_v53 = vcombine.low %v702_v50, %v702_v50  ;;  %v518_v54 = vsel %vm6282_vm7, %v4248_v48, %v515_v51  ;;  %v517_v55 = vsel %vm6282_vm7, %v4247_v49, %v4248_v48 }
 0x163   : > { %v522_v56 = vsel %vm4694_vm11, %v518_v54, 0.0  ;;  %v521_v57 = vsel %vm4690_vm10, %v517_v55, 0.0  ;;  %v4254_v59 = vld [vmem:[#allocation2 + $0x14] ss:$56 sps:$4 sm:$0xff]   ;;  %v4256_v61 = vld [vmem:[#allocation2 + $0x10] ss:$56 sps:$4 sm:$0xff]  }
 0x164   : > { %3970 = vmatprep.subr.msk.bf16.mxu0 %vm765_vm8, %v3969_v52  ;;  %v767_v58 = vsel %vm765_vm8, %v3968_v53, 0  ;;  %v4119_v60 = vpack.c.bf16 %v522_v56, %v521_v57  ;;  %vm1036_vm8 = vmpackc.low %vm4694_vm11, %vm4690_vm10  ;;  %vm1113_vm10 = vcmask 252928   ;;  %vm1041_vm11 = vcmask 138240  }
 0x165   : > { %783 = vmatpush1.bf16.msra.mxu0 %v767_v58  ;;  %v1037_v5 = vsel %vm1036_vm8, 65537, %v6267_v27 }
 0x166   : > { %784 = vmatprep.subr.bf16.mxu0 %v4254_v59  ;;  %531 = vst [vmem:[#allocation2 + $0xd0] sm:$0x33] %v4119_v60  ;;  %1038 = vrot.lane.b32.xlu1 %v1037_v5, %s4419_s16  ;;  %s6459_s16 = smov 113  }
 0x167   : > { %v698_v62 = vld [vmem:[#allocation2 + $0xb0] sm:$0xff]  ;;  %1238 = vrot.lane.b32.xlu0 %v1037_v5, %s4420_s15  ;;  %s6374_s15 = smov 95  }
 0x169   : > { %785 = vmatpush1.bf16.msra.mxu0 %v4256_v61 }
 0x16a   : > { %1310 = vrot.lane.b32.xlu1 %v4683_v36, %s4421_s19  ;;  %s6376_s19 = smov 96  }
 0x16c   : > { %v716_v6 = vpop.permute.xlu1 %715  ;;  %v721_v22 = vpop.permute.xlu0 %720 }
 0x16d   : > { %v699_v63 = vld [vmem:[#allocation2 + $0xd0] sm:$0xff] }
 0x16e   : > { %v3965_v0 = vcombine.high %v698_v62, %v699_v63  ;;  %v3964_v1 = vcombine.low %v698_v62, %v699_v63  ;;  %1438 = vrot.lane.b32.xlu1 %v1037_v5, %s4422_s18 }
 0x170   : > { %786 = vmatprep.subr.bf16.mxu0 %v3965_v0  ;;  %v706_v7 = vpop.permute.xlu1 %705  ;;  %v1111_v38 = vpop.permute.xlu0 %1110 }
 0x171   : > { %787 = vmatpush1.bf16.msra.mxu0 %v3964_v1  ;;  %v1112_v55 = vrot.slane %v1111_v38, 4 }
 0x173   : > { %v4773_v62 = vsel %vm1113_vm10, %v1112_v55, %v1111_v38 }
 0x174   : > { %3971 = vmatmul.mubr.msk.bf16.vlgmr.msra.gmra.mxu0 %vm758_vm15, %v4257_v2  ;;  %v711_v11 = vpop.permute.xlu1 %710  ;;  %v909_v40 = vpop.permute.xlu0 %908  ;;  %vm6257_vm8 = vcmp.ne.s16.totalorder %v4773_v62, 0 }
 0x175   : > { %814 = vmatprep.mubr.bf16.mxu0 %v6267_v27  ;;  %v910_v5 = vrot.slane %v909_v40, 4 }
 0x177   : > { %vm4810_vm2 = vcmp.ne.s16.totalorder %v910_v5, 0 }
 0x17c   : > { %3972 = vmatmul.mubr.msk.bf16.gmra.mxu0 %vm758_vm15, %v4258_v4  ;;  %vm4782_vm15 = vcmp.ne.s16.totalorder %v1112_v55, 0 }
 0x17d   : > { %1859 = vmatprep.mubr.bf16.mxu0 %v6267_v27 }
 0x1d8   : > { %v1039_v39 = vpop.permute.xlu1 %1038 }
 0x1d9   : > { %v4752_v44 = vpop.permute.xlu0 %1238  ;;  %v1040_v59 = vrot.slane %v1039_v39, 4 }
 0x1db   : > { %v4786_v2 = vsel %vm1041_vm11, %v1040_v59, %v1039_v39  ;;  %vm4791_vm10 = vcmp.ne.s16.totalorder %v1040_v59, 0 }
 0x1dc   : > { %v1311_v41 = vpop.permute.xlu1 %1310  ;;  %vm6258_vm11 = vcmp.ne.s16.totalorder %v4786_v2, 0 }
 0x1e0   : > { %v4754_v45 = vpop.permute.xlu1 %1438 }
 0x234   : > { %v806_v8 = vpop.f32.mrf.mxu0 }
 0x235   : > { %v807_v9 = vadd.f32 %v806_v8, %v706_v7 }
 0x236   : > { %v808_v10 = vpop.f32.mrf.mxu0 }
 0x237   : > { %v809_v42 = vadd.f32 %v808_v10, %v706_v7  ;;  %v825_v12 = vmax.f32 %v807_v9, 0.0  ;;  %v1312_v9 = vrot.slane %v1311_v41, 4 }
 0x238   : > { %v810_v43 = vpop.f32.mrf.mxu0 }
 0x239   : > { %v826_v13 = vmax.f32 %v809_v42, 0.0  ;;  %v811_v14 = vadd.f32 %v810_v43, %v711_v11 }
 0x23a   : > { %v812_v15 = vpop.f32.mrf.mxu0 }
 0x23b   : > { %v4128_v16 = vpack.c.bf16 %v826_v13, %v825_v12  ;;  %v813_v17 = vadd.f32 %v812_v15, %v711_v11  ;;  %v827_v19 = vmax.f32 %v811_v14, 0.0  ;;  %v6324_v15 = vmov 0 }
 0x23c   : > { %v816_v18 = vpop.f32.mrf.mxu0 }
 0x23d   : > { %v828_v20 = vmax.f32 %v813_v17, 0.0  ;;  %v817_v36 = vadd.f32 %v816_v18, %v716_v6  ;;  %853 = vrot.lane.b32.xlu0 %v4128_v16, %s4406_s17 }
 0x23e   : > { %v818_v21 = vpop.f32.mrf.mxu0 }
 0x23f   : > { %v4129_v23 = vpack.c.bf16 %v828_v20, %v827_v19  ;;  %v819_v24 = vadd.f32 %v818_v21, %v716_v6  ;;  %v829_v28 = vmax.f32 %v817_v36, 0.0 }
 0x240   : > { %v820_v26 = vpop.f32.mrf.mxu0 }
 0x241   : > { %v830_v29 = vmax.f32 %v819_v24, 0.0  ;;  %855 = vrot.lane.b32.xlu1 %v4129_v23, %s4406_s17  ;;  %v821_v30 = vadd.f32 %v820_v26, %v721_v22 }
 0x242   : > { %v822_v31 = vpop.f32.mrf.mxu0 }
 0x243   : > { %v4130_v32 = vpack.c.bf16 %v830_v29, %v829_v28  ;;  %v831_v33 = vmax.f32 %v821_v30, 0.0  ;;  %v823_v34 = vadd.f32 %v822_v31, %v721_v22 }
 0x245   : > { %v832_v35 = vmax.f32 %v823_v34, 0.0  ;;  %857 = vrot.lane.b32.xlu0 %v4130_v32, %s4406_s17 }
 0x247   : > { %v4131_v37 = vpack.c.bf16 %v832_v35, %v831_v33 }
 0x249   : > { %859 = vrot.lane.b32.xlu1 %v4131_v37, %s4406_s17 }
 0x2af   : > { %v854_v46 = vpop.permute.xlu0 %853 }
 0x2b0   : > { %v861_v47 = vrot.slane %v854_v46, 4 }
 0x2b2   : > { %v866_v48 = vsel %vm6253_vm4, %v861_v47, %v854_v46  ;;  %879 = vst.msk [vmem:[#allocation4 + $0x8] sm:$0xf] %vm6252_vm0, %v861_v47 }
 0x2b3   : > { %878 = vst.msk [vmem:[#allocation4] sm:$0xff] %vm4599_vm5, %v866_v48  ;;  %v856_v49 = vpop.permute.xlu1 %855 }
 0x2b4   : > { %v862_v50 = vrot.slane %v856_v49, 4 }
 0x2b6   : > { %v867_v51 = vsel %vm6253_vm4, %v862_v50, %v856_v49  ;;  %881 = vst.msk [vmem:[#allocation4 + $0x14] sm:$0xf] %vm6252_vm0, %v862_v50 }
 0x2b7   : > { %880 = vst.msk [vmem:[#allocation4 + $0xc] sm:$0xff] %vm4599_vm5, %v867_v51  ;;  %v858_v52 = vpop.permute.xlu0 %857 }
 0x2b8   : > { %v863_v53 = vrot.slane %v858_v52, 4 }
 0x2b9   : > { %v973_v54 = vld [vmem:[#allocation4 + $0x8] sm:$0xf] }
 0x2ba   : > { %v868_v56 = vsel %vm6253_vm4, %v863_v53, %v858_v52  ;;  %883 = vst.msk [vmem:[#allocation4 + $0x20] sm:$0xf] %vm6252_vm0, %v863_v53  ;;  %990 = vrot.lane.b32.xlu1 %v973_v54, %s4414_s20  ;;  %v4767_v57 = vld [vmem:[#allocation4] sm:$0xff]  ;;  %v1375_v61 = vld [vmem:[#allocation4 + $0x8] sm:$0xf] }
 0x2bb   : > { %882 = vst.msk [vmem:[#allocation4 + $0x18] sm:$0xff] %vm4599_vm5, %v868_v56  ;;  %v860_v58 = vpop.permute.xlu1 %859  ;;  %988 = vrot.lane.b32.xlu0 %v4767_v57, %s4414_s20  ;;  %v1103_v0 = vld [vmem:[#allocation4 + $0x8] sm:$0xf]  ;;  %v1117_v7 = vsel %vm6257_vm8, %v4767_v57, 0  ;;  %v1045_v11 = vsel %vm6258_vm11, %v4767_v57, 0 }
 0x2bc   : > { %v864_v60 = vrot.slane %v860_v58, 4  ;;  %v1118_v4 = vsel %vm4782_vm15, %v1103_v0, 0  ;;  %v1029_v8 = vld [vmem:[#allocation4 + $0x8] sm:$0xf] }
 0x2bd   : > { %v1046_v10 = vsel %vm4791_vm10, %v1029_v8, 0  ;;  %v899_v43 = vld [vmem:[#allocation4 + $0x8] sm:$0xf]  ;;  %v975_v20 = vld [vmem:[#allocation4 + $0x14] sm:$0xf] }
 0x2be   : > { %v869_v63 = vsel %vm6253_vm4, %v864_v60, %v860_v58  ;;  %885 = vst.msk [vmem:[#allocation4 + $0x2c] sm:$0xf] %vm6252_vm0, %v864_v60  ;;  %1392 = vrot.lane.b32.xlu1 %v1375_v61, %s4413_s24  ;;  %vm911_vm0 = vcmask 121856   ;;  %vm1313_vm4 = vcmask 384000   ;;  %v916_v14 = vsel %vm4810_vm2, %v899_v43, 0  ;;  %v4837_v36 = vld [vmem:[#allocation4 + $0xc] sm:$0xff] }
 0x2bf   : > { %884 = vst.msk [vmem:[#allocation4 + $0x24] sm:$0xff] %vm4599_vm5, %v869_v63  ;;  %1390 = vrot.lane.b32.xlu0 %v4767_v57, %s4413_s24  ;;  %v4803_v42 = vsel %vm911_vm0, %v910_v5, %v909_v40  ;;  %v4814_v13 = vsel %vm1313_vm4, %v1312_v9, %v1311_v41  ;;  %vm4819_vm0 = vcmp.ne.s16.totalorder %v1312_v9, 0  ;;  %v1303_v17 = vld [vmem:[#allocation4 + $0x8] sm:$0xf]  ;;  %v1377_v21 = vld [vmem:[#allocation4 + $0x14] sm:$0xf] }
 0x2c0   : > { %vm6259_vm9 = vcmp.ne.s16.totalorder %v4803_v42, 0  ;;  %v6325_v15 = vsel %vm4819_vm0, 4294967295, %v6324_v15  ;;  %vm1315_vm12 = vcmp.ne.s16.totalorder %v4814_v13, 0  ;;  %v1318_v18 = vsel %vm4819_vm0, %v1303_v17, 0  ;;  %v1105_v22 = vld [vmem:[#allocation4 + $0x14] sm:$0xf] }
 0x2c1   : > { %6326 = vst [vmem:[#allocation18_spill] sm:$0xff] %v6325_v15  ;;  %v915_v16 = vsel %vm6259_vm9, %v4767_v57, 0  ;;  %v1317_v19 = vsel %vm1315_vm12, %v4767_v57, 0  ;;  %v1120_v23 = vsel %vm4782_vm15, %v1105_v22, 0  ;;  %v1119_v24 = vsel %vm6257_vm8, %v4837_v36, 0 }
 0x2c2   : > { %1135 = vrot.lane.b32.xlu1 %v1118_v4, %s6289_s23  ;;  %v1031_v26 = vld [vmem:[#allocation4 + $0x14] sm:$0xf]  ;;  %v1047_v29 = vsel %vm6258_vm11, %v4837_v36, 0  ;;  %v917_v32 = vsel %vm6259_vm9, %v4837_v36, 0  ;;  %v977_v33 = vld [vmem:[#allocation4 + $0x20] sm:$0xf] }
 0x2c3   : > { %1133 = vrot.lane.b32.xlu0 %v1117_v7, %s6289_s23  ;;  %v1048_v28 = vsel %vm4791_vm10, %v1031_v26, 0  ;;  %v901_v30 = vld [vmem:[#allocation4 + $0x14] sm:$0xf]  ;;  %v4866_v34 = vld [vmem:[#allocation4 + $0x18] sm:$0xff]  ;;  %v1379_v35 = vld [vmem:[#allocation4 + $0x20] sm:$0xf] }
 0x2c4   : > { %v918_v31 = vsel %vm4810_vm2, %v901_v30, 0  ;;  %v1107_v37 = vld [vmem:[#allocation4 + $0x20] sm:$0xf]  ;;  %v1121_v39 = vsel %vm6257_vm8, %v4866_v34, 0  ;;  %v1049_v46 = vsel %vm6258_vm11, %v4866_v34, 0  ;;  %v919_v49 = vsel %vm6259_vm9, %v4866_v34, 0 }
 0x2c5   : > { %v1122_v38 = vsel %vm4782_vm15, %v1107_v37, 0  ;;  %v1033_v40 = vld [vmem:[#allocation4 + $0x20] sm:$0xf]  ;;  %v1321_v52 = vsel %vm1315_vm12, %v4866_v34, 0  ;;  %v979_v53 = vld [vmem:[#allocation4 + $0x2c] sm:$0xf] }
 0x2c6   : > { %1063 = vrot.lane.b32.xlu1 %v1046_v10, %s6287_s21  ;;  %v1050_v41 = vsel %vm4791_vm10, %v1033_v40, 0  ;;  %v903_v47 = vld [vmem:[#allocation4 + $0x20] sm:$0xf]  ;;  %v4902_v54 = vld [vmem:[#allocation4 + $0x24] sm:$0xff]  ;;  %v1381_v55 = vld [vmem:[#allocation4 + $0x2c] sm:$0xf] }
 0x2c7   : > { %1061 = vrot.lane.b32.xlu0 %v1045_v11, %s6287_s21  ;;  %v920_v48 = vsel %vm4810_vm2, %v903_v47, 0  ;;  %v1307_v50 = vld [vmem:[#allocation4 + $0x20] sm:$0xf]  ;;  %v1109_v56 = vld [vmem:[#allocation4 + $0x2c] sm:$0xf]  ;;  %v1123_v59 = vsel %vm6257_vm8, %v4902_v54, 0 }
 0x2c8   : > { %v1322_v51 = vsel %vm4819_vm0, %v1307_v50, 0  ;;  %v1124_v58 = vsel %vm4782_vm15, %v1109_v56, 0  ;;  %v1035_v60 = vld [vmem:[#allocation4 + $0x2c] sm:$0xf]  ;;  %v1240_v63 = vrot.slane %v4752_v44, 4  ;;  %v1319_v0 = vsel %vm1315_vm12, %v4837_v36, 0 }
 0x2c9   : > { %v1052_v61 = vsel %vm4791_vm10, %v1035_v60, 0  ;;  %v905_v4 = vld [vmem:[#allocation4 + $0x2c] sm:$0xf]  ;;  %vm1241_vm4 = vcmask 269312   ;;  %v1051_v8 = vsel %vm6258_vm11, %v4902_v54, 0  ;;  %v6328_v17 = vmov 0 }
 0x2ca   : > { %933 = vrot.lane.b32.xlu1 %v916_v14, %s6285_s25  ;;  %v922_v5 = vsel %vm4810_vm2, %v905_v4, 0  ;;  %v4927_v7 = vsel %vm1241_vm4, %v1240_v63, %v4752_v44  ;;  %v1309_v9 = vld [vmem:[#allocation4 + $0x2c] sm:$0xf]  ;;  %v1305_v11 = vld [vmem:[#allocation4 + $0x14] sm:$0xf]  ;;  %vm4949_vm4 = vcmp.ne.s16.totalorder %v1240_v63, 0 }
 0x2cb   : > { %931 = vrot.lane.b32.xlu0 %v915_v16, %s6285_s25  ;;  %6327 = vst [vmem:[#allocation19_spill] sm:$0xff] %v4927_v7  ;;  %vm1243_vm8 = vcmp.ne.s16.totalorder %v4927_v7, 0  ;;  %v1324_v10 = vsel %vm4819_vm0, %v1309_v9, 0  ;;  %v1320_v43 = vsel %vm4819_vm0, %v1305_v11, 0  ;;  %v1235_v16 = vld [vmem:[#allocation4 + $0x20] sm:$0xf] }
 0x2cc   : > { %v1249_v44 = vsel %vm1243_vm8, %v4866_v34, 0  ;;  %v1245_v14 = vsel %vm1243_vm8, %v4767_v57, 0  ;;  %v6329_v17 = vsel %vm4949_vm4, 4294967295, %v6328_v17  ;;  %v921_v22 = vsel %vm6259_vm9, %v4902_v54, 0  ;;  %v1431_v60 = vld [vmem:[#allocation4 + $0x8] sm:$0xf] }
 0x2cd   : > { %6330 = vst [vmem:[#allocation20_spill] sm:$0xff] %v6329_v17  ;;  %v1440_v26 = vrot.slane %v4754_v45, 4  ;;  %vm1441_vm11 = vcmask 400384   ;;  %v1323_v37 = vsel %vm1315_vm12, %v4902_v54, 0  ;;  %v1251_v50 = vsel %vm1243_vm8, %v4902_v54, 0 }
 0x2ce   : > { %1335 = vrot.lane.b32.xlu1 %v1318_v18, %s6264_s22  ;;  %v1250_v18 = vsel %vm4949_vm4, %v1235_v16, 0 }
 0x2cf   : > { %1333 = vrot.lane.b32.xlu0 %v1317_v19, %s6264_s22  ;;  %v1247_v19 = vsel %vm1243_vm8, %v4837_v36, 0  ;;  %v4976_v30 = vsel %vm1441_vm11, %v1440_v26, %v4754_v45  ;;  %vm4996_vm11 = vcmp.ne.s16.totalorder %v1440_v26, 0 }
 0x2d0   : > { %6331 = vst [vmem:[#allocation21_spill] sm:$0xff] %v4976_v30  ;;  %vm6291_vm9 = vcmp.ne.s16.totalorder %v4976_v30, 0 }
 0x2d1   : > { %v1451_v4 = vsel %vm6291_vm9, %v4902_v54, 0 }
 0x2d2   : > { %994 = vrot.lane.b32.xlu1 %v975_v20, %s4414_s20  ;;  %v1237_v20 = vld [vmem:[#allocation4 + $0x2c] sm:$0xf] }
 0x2d3   : > { %992 = vrot.lane.b32.xlu0 %v4837_v36, %s4414_s20 }
 0x2d6   : > { %1396 = vrot.lane.b32.xlu1 %v1377_v21, %s4413_s24  ;;  %v1252_v21 = vsel %vm4949_vm4, %v1237_v20, 0 }
 0x2d7   : > { %1394 = vrot.lane.b32.xlu0 %v4837_v36, %s4413_s24 }
 0x2da   : > { %1139 = vrot.lane.b32.xlu1 %v1120_v23, %s6289_s23  ;;  %v1231_v23 = vld [vmem:[#allocation4 + $0x8] sm:$0xf] }
 0x2db   : > { %1137 = vrot.lane.b32.xlu0 %v1119_v24, %s6289_s23  ;;  %v1246_v24 = vsel %vm4949_vm4, %v1231_v23, 0 }
 0x2de   : > { %1067 = vrot.lane.b32.xlu1 %v1048_v28, %s6287_s21  ;;  %v1233_v28 = vld [vmem:[#allocation4 + $0x14] sm:$0xf] }
 0x2df   : > { %1065 = vrot.lane.b32.xlu0 %v1047_v29, %s6287_s21  ;;  %v1248_v29 = vsel %vm4949_vm4, %v1233_v28, 0 }
 0x2e2   : > { %937 = vrot.lane.b32.xlu1 %v918_v31, %s6285_s25  ;;  %v1179_v31 = vld [vmem:[#allocation4 + $0x20] sm:$0xf] }
 0x2e3   : > { %935 = vrot.lane.b32.xlu0 %v917_v32, %s6285_s25  ;;  %v1449_v32 = vsel %vm6291_vm9, %v4866_v34, 0 }
 0x2e6   : > { %998 = vrot.lane.b32.xlu1 %v977_v33, %s4414_s20 }
 0x2e7   : > { %996 = vrot.lane.b32.xlu0 %v4866_v34, %s4414_s20 }
 0x2ea   : > { %1400 = vrot.lane.b32.xlu1 %v1379_v35, %s4413_s24  ;;  %v1181_v35 = vld [vmem:[#allocation4 + $0x2c] sm:$0xf] }
 0x2eb   : > { %1398 = vrot.lane.b32.xlu0 %v4866_v34, %s4413_s24 }
 0x2ee   : > { %1143 = vrot.lane.b32.xlu1 %v1122_v38, %s6289_s23  ;;  %v1435_v38 = vld [vmem:[#allocation4 + $0x20] sm:$0xf] }
 0x2ef   : > { %1141 = vrot.lane.b32.xlu0 %v1121_v39, %s6289_s23  ;;  %v6333_v39 = vmov 0 }
 0x2f0   : > { %v6334_v39 = vsel %vm4996_vm11, 4294967295, %v6333_v39 }
 0x2f1   : > { %6335 = vst [vmem:[#allocation22_spill] sm:$0xff] %v6334_v39 }
 0x2f2   : > { %1071 = vrot.lane.b32.xlu1 %v1050_v41, %s6287_s21  ;;  %v1450_v41 = vsel %vm4996_vm11, %v1435_v38, 0 }
 0x2f3   : > { %1069 = vrot.lane.b32.xlu0 %v1049_v46, %s6287_s21  ;;  %v1437_v46 = vld [vmem:[#allocation4 + $0x2c] sm:$0xf] }
 0x2f6   : > { %941 = vrot.lane.b32.xlu1 %v920_v48, %s6285_s25 }
 0x2f7   : > { %939 = vrot.lane.b32.xlu0 %v919_v49, %s6285_s25  ;;  %v1452_v49 = vsel %vm4996_vm11, %v1437_v46, 0 }
 0x2fa   : > { %1343 = vrot.lane.b32.xlu1 %v1322_v51, %s6264_s22 }
 0x2fb   : > { %1341 = vrot.lane.b32.xlu0 %v1321_v52, %s6264_s22 }
 0x2fe   : > { %1002 = vrot.lane.b32.xlu1 %v979_v53, %s4414_s20  ;;  %v1175_v53 = vld [vmem:[#allocation4 + $0x8] sm:$0xf] }
 0x2ff   : > { %1000 = vrot.lane.b32.xlu0 %v4902_v54, %s4414_s20 }
 0x302   : > { %1404 = vrot.lane.b32.xlu1 %v1381_v55, %s4413_s24 }
 0x303   : > { %1402 = vrot.lane.b32.xlu0 %v4902_v54, %s4413_s24 }
 0x306   : > { %1147 = vrot.lane.b32.xlu1 %v1124_v58, %s6289_s23  ;;  %v1177_v58 = vld [vmem:[#allocation4 + $0x14] sm:$0xf] }
 0x307   : > { %1145 = vrot.lane.b32.xlu0 %v1123_v59, %s6289_s23  ;;  %v1445_v59 = vsel %vm6291_vm9, %v4767_v57, 0 }
 0x30a   : > { %1075 = vrot.lane.b32.xlu1 %v1052_v61, %s6287_s21 }
 0x30b   : > { %1337 = vrot.lane.b32.xlu0 %v1319_v0, %s6264_s22  ;;  %v1446_v0 = vsel %vm4996_vm11, %v1431_v60, 0 }
 0x30e   : > { %945 = vrot.lane.b32.xlu1 %v922_v5, %s6285_s25  ;;  %v1433_v5 = vld [vmem:[#allocation4 + $0x14] sm:$0xf] }
 0x30f   : > { %1073 = vrot.lane.b32.xlu0 %v1051_v8, %s6287_s21  ;;  %v1448_v9 = vsel %vm4996_vm11, %v1433_v5, 0 }
 0x312   : > { %1347 = vrot.lane.b32.xlu1 %v1324_v10, %s6264_s22  ;;  %v1447_v10 = vsel %vm6291_vm9, %v4837_v36, 0 }
 0x313   : > { %1269 = vrot.lane.b32.xlu0 %v1249_v44, %s6262_s27  ;;  %v897_v44 = vld [vmem:[%s6235_s4 + $0x18] sm:$0xff] }
 0x316   : > { %1339 = vrot.lane.b32.xlu1 %v1320_v43, %s6264_s22  ;;  %v896_v43 = vld [vmem:[%s6235_s4 + $0x10] sm:$0xff] }
 0x317   : > { %1261 = vrot.lane.b32.xlu0 %v1245_v14, %s6262_s27 }
 0x31a   : > { %1271 = vrot.lane.b32.xlu1 %v1250_v18, %s6262_s27  ;;  %v894_v18 = vld [vmem:[%s6235_s4] sm:$0xff] }
 0x31b   : > { %1265 = vrot.lane.b32.xlu0 %v1247_v19, %s6262_s27 }
 0x31e   : > { %1275 = vrot.lane.b32.xlu1 %v1252_v21, %s6262_s27 }
 0x31f   : > { %943 = vrot.lane.b32.xlu0 %v921_v22, %s6285_s25 }
 0x322   : > { %1263 = vrot.lane.b32.xlu1 %v1246_v24, %s6262_s27 }
 0x323   : > { %1198 = vrot.lane.b32.xlu0 %v4866_v34, %s6260_s28 }
 0x326   : > { %1267 = vrot.lane.b32.xlu1 %v1248_v29, %s6262_s27 }
 0x327   : > { %1202 = vrot.lane.b32.xlu0 %v4902_v54, %s6260_s28  ;;  %v4261_v54 = vld [vmem:[%s6234_s3 + $0x4] ss:$12 sps:$4 sm:$0xff]  }
 0x328   : > { %1806 = vmatprep.mubr.bf16.mxu1 %v4261_v54 }
 0x32a   : > { %1200 = vrot.lane.b32.xlu1 %v1179_v31, %s6260_s28 }
 0x32b   : > { %1469 = vrot.lane.b32.xlu0 %v1449_v32, %s6332_s1 }
 0x32c   : > { %v4987_v33 = vpop.permute.xlu1 %990 }
 0x32d   : > { %v4989_v45 = vpop.permute.xlu0 %988 }
 0x32e   : > { %1204 = vrot.lane.b32.xlu1 %v1181_v35, %s6260_s28 }
 0x32f   : > { %1345 = vrot.lane.b32.xlu0 %v1323_v37, %s6264_s22 }
 0x330   : > { %v5000_v34 = vpop.permute.xlu1 %1392 }
 0x331   : > { %v5002_v40 = vpop.permute.xlu0 %1390 }
 0x332   : > { %1471 = vrot.lane.b32.xlu1 %v1450_v41, %s6332_s1 }
 0x333   : > { %1190 = vrot.lane.b32.xlu0 %v4767_v57, %s6260_s28 }
 0x334   : > { %v5009_v47 = vpop.permute.xlu1 %1135 }
 0x335   : > { %v5011_v48 = vpop.permute.xlu0 %1133 }
 0x336   : > { %1475 = vrot.lane.b32.xlu1 %v1452_v49, %s6332_s1 }
 0x337   : > { %1273 = vrot.lane.b32.xlu0 %v1251_v50, %s6262_s27 }
 0x338   : > { %v5020_v51 = vpop.permute.xlu1 %1063 }
 0x339   : > { %v5022_v52 = vpop.permute.xlu0 %1061 }
 0x33a   : > { %1192 = vrot.lane.b32.xlu1 %v1175_v53, %s6260_s28 }
 0x33b   : > { %1194 = vrot.lane.b32.xlu0 %v4837_v36, %s6260_s28  ;;  %v895_v36 = vld [vmem:[%s6235_s4 + $0x8] sm:$0xff] }
 0x33c   : > { %v5027_v55 = vpop.permute.xlu1 %933 }
 0x33d   : > { %v5029_v56 = vpop.permute.xlu0 %931 }
 0x33e   : > { %1196 = vrot.lane.b32.xlu1 %v1177_v58, %s6260_s28  ;;  %s6371_s28 = smov 81  }
 0x33f   : > { %1461 = vrot.lane.b32.xlu0 %v1445_v59, %s6332_s1 }
 0x340   : > { %v5036_v61 = vpop.permute.xlu1 %1335 }
 0x341   : > { %v5038_v63 = vpop.permute.xlu0 %1333 }
 0x342   : > { %1463 = vrot.lane.b32.xlu1 %v1446_v0, %s6332_s1 }
 0x343   : > { %1473 = vrot.lane.b32.xlu0 %v1451_v4, %s6332_s1 }
 0x344   : > { %v5047_v57 = vpop.permute.xlu1 %994 }
 0x345   : > { %v5049_v8 = vpop.permute.xlu0 %992 }
 0x346   : > { %1467 = vrot.lane.b32.xlu1 %v1448_v9, %s6332_s1  ;;  %v1150_v9 = vrot.slane %v5009_v47, 4 }
 0x347   : > { %1465 = vrot.lane.b32.xlu0 %v1447_v10, %s6332_s1  ;;  %v1149_v10 = vrot.slane %v5011_v48, 4 }
 0x348   : > { %v5064_v11 = vpop.permute.xlu1 %1396 }
 0x349   : > { %v5069_v14 = vpop.permute.xlu0 %1394  ;;  %v1157_v27 = vsel %vm6284_vm1, %v1149_v10, %v1150_v9 }
 0x34a   : > { %1555 = vperm.xlu1 %4249, %v897_v44   ;;  %v1159_v9 = vsel %vm6283_vm13, %v5011_v48, %v1157_v27 }
 0x34b   : > { %1550 = vperm.xlu0 %4250, %v896_v43  }
 0x34c   : > { %v1140_v16 = vpop.permute.xlu1 %1139 }
 0x34d   : > { %v1138_v19 = vpop.permute.xlu0 %1137  ;;  %v1152_v59 = vrot.slane %v1140_v16, 4 }
 0x34e   : > { %1545 = vperm.xlu1 %4249, %v895_v36   ;;  %v1151_v60 = vrot.slane %v1138_v19, 4 }
 0x34f   : > { %1540 = vperm.xlu0 %4250, %v894_v18  }
 0x350   : > { %v1068_v20 = vpop.permute.xlu1 %1067  ;;  %v1160_v44 = vsel %vm6284_vm1, %v1151_v60, %v1152_v59 }
 0x351   : > { %v5077_v21 = vpop.permute.xlu0 %1065  ;;  %v1161_v16 = vsel %vm6283_vm13, %v1138_v19, %v1160_v44  ;;  %v1080_v30 = vrot.slane %v1068_v20, 4  ;;  %v1078_v19 = vrot.slane %v5020_v51, 4  ;;  %v1077_v20 = vrot.slane %v5022_v52, 4 }
 0x352   : > { %v3995_v48 = vcombine.low %v1159_v9, %v1161_v16  ;;  %v1007_v51 = vrot.slane %v5047_v57, 4 }
 0x353   : > { %v1085_v27 = vsel %vm6284_vm1, %v1077_v20, %v1078_v19 }
 0x354   : > { %v5079_v22 = vpop.permute.xlu1 %937 }
 0x355   : > { %v5081_v23 = vpop.permute.xlu0 %935 }
 0x358   : > { %v5083_v24 = vpop.permute.xlu1 %998 }
 0x359   : > { %v5085_v26 = vpop.permute.xlu0 %996 }
 0x35c   : > { %v5087_v28 = vpop.permute.xlu1 %1400 }
 0x35d   : > { %v5089_v29 = vpop.permute.xlu0 %1398 }
 0x360   : > { %v1144_v31 = vpop.permute.xlu1 %1143 }
 0x361   : > { %v1142_v32 = vpop.permute.xlu0 %1141  ;;  %v1154_v4 = vrot.slane %v1144_v31, 4  ;;  %v1079_v31 = vrot.slane %v5077_v21, 4 }
 0x362   : > { %v1153_v5 = vrot.slane %v1142_v32, 4 }
 0x364   : > { %v1072_v35 = vpop.permute.xlu1 %1071  ;;  %v1162_v18 = vsel %vm6284_vm1, %v1153_v5, %v1154_v4 }
 0x365   : > { %v1070_v37 = vpop.permute.xlu0 %1069  ;;  %v1163_v17 = vsel %vm6283_vm13, %v1142_v32, %v1162_v18  ;;  %v1082_v7 = vrot.slane %v1072_v35, 4  ;;  %v1088_v32 = vsel %vm6284_vm1, %v1079_v31, %v1080_v30  ;;  %v1008_v18 = vrot.slane %v5085_v26, 4 }
 0x366   : > { %v1081_v15 = vrot.slane %v1070_v37, 4 }
 0x368   : > { %v5091_v38 = vpop.permute.xlu1 %941  ;;  %v1090_v35 = vsel %vm6284_vm1, %v1081_v15, %v1082_v7  ;;  %v1006_v7 = vrot.slane %v5049_v8, 4 }
 0x369   : > { %v5093_v41 = vpop.permute.xlu0 %939  ;;  %v1091_v31 = vsel %vm6282_vm7, %v1070_v37, %v1090_v35 }
 0x36a   : > { %v1014_v20 = vsel %vm6284_vm1, %v1006_v7, %v1007_v51 }
 0x36c   : > { %v5095_v46 = vpop.permute.xlu1 %1343 }
 0x36d   : > { %v5097_v49 = vpop.permute.xlu0 %1341 }
 0x370   : > { %v1003_v50 = vpop.permute.xlu1 %1002 }
 0x371   : > { %v5099_v53 = vpop.permute.xlu0 %1000 }
 0x374   : > { %v5101_v58 = vpop.permute.xlu1 %1404 }
 0x375   : > { %v5103_v0 = vpop.permute.xlu0 %1402 }
 0x378   : > { %v1148_v54 = vpop.permute.xlu1 %1147 }
 0x379   : > { %v1156_v43 = vrot.slane %v1148_v54, 4  ;;  %v1146_v36 = vpop.permute.xlu0 %1145  ;;  %v1011_v54 = vrot.slane %v1003_v50, 4  ;;  %v1089_v50 = vsel %vm6282_vm7, %v5077_v21, %v1088_v32 }
 0x37a   : > { %v1155_v25 = vrot.slane %v1146_v36, 4 }
 0x37c   : > { %v1164_v39 = vsel %vm6284_vm1, %v1155_v25, %v1156_v43  ;;  %v1076_v47 = vpop.permute.xlu1 %1075  ;;  %v3996_v25 = vcombine.high %v1159_v9, %v1161_v16  ;;  %v1004_v9 = vrot.slane %v4989_v45, 4 }
 0x37d   : > { %v1165_v59 = vsel %vm6283_vm13, %v1146_v36, %v1164_v39  ;;  %v5115_v60 = vpop.permute.xlu0 %1337  ;;  %v1084_v44 = vrot.slane %v1076_v47, 4  ;;  %v1009_v36 = vrot.slane %v5083_v24, 4 }
 0x37e   : > { %v3998_v4 = vcombine.high %v1163_v17, %v1165_v59  ;;  %v3997_v5 = vcombine.low %v1163_v17, %v1165_v59  ;;  %v1010_v17 = vrot.slane %v5099_v53, 4 }
 0x37f   : > { %v1016_v21 = vsel %vm6284_vm1, %v1008_v18, %v1009_v36  ;;  %v947_v36 = vrot.slane %v5029_v56, 4 }
 0x380   : > { %v5121_v10 = vpop.permute.xlu1 %945  ;;  %1774 = vmatprep.subr.bf16.mxu1 %v3998_v4  ;;  %v1018_v57 = vsel %vm6284_vm1, %v1010_v17, %v1011_v54  ;;  %v1087_v4 = vsel %vm6282_vm7, %v5022_v52, %v1085_v27  ;;  %v951_v27 = vrot.slane %v5093_v41, 4 }
 0x381   : > { %v1074_v39 = vpop.permute.xlu0 %1073  ;;  %1775 = vmatpush1.bf16.msra.mxu1 %v3997_v5  ;;  %v1005_v5 = vrot.slane %v4987_v33, 4  ;;  %v3992_v37 = vcombine.high %v1087_v4, %v1089_v50  ;;  %v1017_v33 = vsel %vm6281_vm6, %v5085_v26, %v1016_v21  ;;  %v3991_v52 = vcombine.low %v1087_v4, %v1089_v50 }
 0x382   : > { %v1083_v43 = vrot.slane %v1074_v39, 4  ;;  %1776 = vmatprep.subr.bf16.mxu1 %v3996_v25  ;;  %v1019_v25 = vsel %vm6281_vm6, %v5099_v53, %v1018_v57  ;;  %v949_v53 = vrot.slane %v5081_v23, 4  ;;  %v1413_v50 = vrot.slane %v5101_v58, 4 }
 0x383   : > { %v1012_v35 = vsel %vm6284_vm1, %v1004_v9, %v1005_v5  ;;  %v3990_v17 = vcombine.high %v1017_v33, %v1019_v25  ;;  %v3989_v51 = vcombine.low %v1017_v33, %v1019_v25  ;;  %v1409_v9 = vrot.slane %v5064_v11, 4 }
 0x384   : > { %v1092_v30 = vsel %vm6284_vm1, %v1083_v43, %v1084_v44  ;;  %v5131_v15 = vpop.permute.xlu1 %1347  ;;  %v950_v44 = vrot.slane %v5079_v22, 4  ;;  %v952_v43 = vrot.slane %v5091_v38, 4  ;;  %v1013_v26 = vsel %vm6281_vm6, %v4989_v45, %v1012_v35 }
 0x385   : > { %v1093_v47 = vsel %vm6282_vm7, %v1074_v39, %v1092_v30  ;;  %v5138_v16 = vpop.permute.xlu0 %1269  ;;  %1777 = vmatpush1.bf16.msra.mxu1 %v3995_v48  ;;  %v1015_v39 = vsel %vm6281_vm6, %v5049_v8, %v1014_v20  ;;  %v948_v8 = vrot.slane %v5027_v55, 4  ;;  %v954_v45 = vrot.slane %v5121_v10, 4 }
 0x386   : > { %v3994_v24 = vcombine.high %v1091_v31, %v1093_v47  ;;  %v3993_v59 = vcombine.low %v1091_v31, %v1093_v47  ;;  %v3988_v22 = vcombine.high %v1013_v26, %v1015_v39  ;;  %v958_v30 = vsel %vm6284_vm1, %v949_v53, %v950_v44 }
 0x387   : > { %v960_v38 = vsel %vm6284_vm1, %v951_v27, %v952_v43  ;;  %v1412_v31 = vrot.slane %v5103_v0, 4  ;;  %v3987_v55 = vcombine.low %v1013_v26, %v1015_v39  ;;  %v955_v57 = vsel %vm6284_vm1, %v947_v36, %v948_v8 }
 0x388   : > { %v5146_v19 = vpop.permute.xlu1 %1339  ;;  %1778 = vmatprep.subr.bf16.mxu1 %v3994_v24  ;;  %v1411_v24 = vrot.slane %v5087_v28, 4  ;;  %v959_v58 = vsel %vm6280_vm14, %v5081_v23, %v958_v30  ;;  %v961_v10 = vsel %vm6280_vm14, %v5093_v41, %v960_v38  ;;  %v1408_v28 = vrot.slane %v5069_v14, 4 }
 0x389   : > { %v5151_v32 = vpop.permute.xlu0 %1261  ;;  %1779 = vmatpush1.bf16.msra.mxu1 %v3993_v59  ;;  %v1410_v59 = vrot.slane %v5089_v29, 4  ;;  %v1420_v20 = vsel %vm6284_vm1, %v1412_v31, %v1413_v50  ;;  %v957_v11 = vsel %vm6280_vm14, %v5029_v56, %v955_v57  ;;  %v1406_v23 = vrot.slane %v5002_v40, 4 }
 0x38a   : > { %1780 = vmatprep.subr.bf16.mxu1 %v3992_v37  ;;  %v3984_v39 = vcombine.high %v957_v11, %v959_v58  ;;  %v1416_v53 = vsel %vm6284_vm1, %v1408_v28, %v1409_v9  ;;  %v1353_v36 = vrot.slane %v5097_v49, 4  ;;  %v1350_v38 = vrot.slane %v5036_v61, 4 }
 0x38b   : > { %v1418_v41 = vsel %vm6284_vm1, %v1410_v59, %v1411_v24 }
 0x38c   : > { %v5158_v54 = vpop.permute.xlu1 %1271  ;;  %v1419_v56 = vsel %vm6279_vm3, %v5089_v29, %v1418_v41 }
 0x38d   : > { %v5164_v48 = vpop.permute.xlu0 %1265  ;;  %1781 = vmatpush1.bf16.msra.mxu1 %v3991_v52  ;;  %v1407_v52 = vrot.slane %v5000_v34, 4  ;;  %v3983_v34 = vcombine.low %v957_v11, %v959_v58  ;;  %v1282_v9 = vrot.slane %v5158_v54, 4  ;;  %v1277_v11 = vrot.slane %v5151_v32, 4 }
 0x38e   : > { %1782 = vmatprep.subr.bf16.mxu1 %v3990_v17  ;;  %v1421_v17 = vsel %vm6279_vm3, %v5103_v0, %v1420_v20  ;;  %v1354_v0 = vrot.slane %v5095_v46, 4 }
 0x38f   : > { %v1414_v43 = vsel %vm6284_vm1, %v1406_v23, %v1407_v52  ;;  %v4014_v26 = vcombine.high %v1419_v56, %v1421_v17  ;;  %v4013_v30 = vcombine.low %v1419_v56, %v1421_v17 }
 0x390   : > { %v5170_v18 = vpop.permute.xlu1 %1275  ;;  %v1415_v29 = vsel %vm6279_vm3, %v5002_v40, %v1414_v43  ;;  %v1362_v46 = vsel %vm6284_vm1, %v1353_v36, %v1354_v0 }
 0x391   : > { %v944_v7 = vpop.permute.xlu0 %943  ;;  %1783 = vmatpush1.bf16.msra.mxu1 %v3989_v51  ;;  %v1417_v51 = vsel %vm6279_vm3, %v5069_v14, %v1416_v53  ;;  %v1351_v14 = vrot.slane %v5115_v60, 4  ;;  %vm6336_vm3 = vcmask 662528   ;;  %v1284_v41 = vrot.slane %v5170_v18, 4 }
 0x392   : > { %v953_v47 = vrot.slane %v944_v7, 4  ;;  %1784 = vmatprep.subr.bf16.mxu1 %v3988_v22  ;;  %v1352_v22 = vrot.slane %v5146_v19, 4  ;;  %v4012_v31 = vcombine.high %v1415_v29, %v1417_v51  ;;  %v4011_v40 = vcombine.low %v1415_v29, %v1417_v51  ;;  %vm6338_vm6 = vmmov %vm6336_vm3 }
 0x393   : > { %v1363_v59 = vsel %vm6336_vm3, %v5097_v49, %v1362_v46  ;;  %vm6339_vm7 = vmmov %vm6336_vm3  ;;  %v1279_v49 = vrot.slane %v5164_v48, 4 }
 0x394   : > { %v962_v4 = vsel %vm6284_vm1, %v953_v47, %v954_v45  ;;  %v5181_v5 = vpop.permute.xlu1 %1263  ;;  %v1356_v47 = vrot.slane %v5131_v15, 4  ;;  %v1360_v19 = vsel %vm6284_vm1, %v1351_v14, %v1352_v22 }
 0x395   : > { %v963_v21 = vsel %vm6280_vm14, %v944_v7, %v962_v4  ;;  %v5189_v37 = vpop.permute.xlu0 %1198  ;;  %1785 = vmatpush1.bf16.msra.mxu1 %v3987_v55  ;;  %v1349_v7 = vrot.slane %v5038_v63, 4  ;;  %vm6337_vm14 = vmmov %vm6336_vm3 }
 0x396   : > { %v3986_v25 = vcombine.high %v961_v10, %v963_v21  ;;  %v3985_v33 = vcombine.low %v961_v10, %v963_v21  ;;  %v1361_v4 = vsel %vm6337_vm14, %v5115_v60, %v1360_v19  ;;  %vm6340_vm14 = vcmask 777216  }
 0x397   : > { %v1357_v57 = vsel %vm6284_vm1, %v1349_v7, %v1350_v38  ;;  %vm6341_vm3 = vmmov %vm6340_vm14  ;;  %v1210_v36 = vrot.slane %v5189_v37, 4 }
 0x398   : > { %v1268_v35 = vpop.permute.xlu1 %1267  ;;  %1786 = vmatprep.subr.bf16.mxu1 %v3986_v25  ;;  %v1359_v20 = vsel %vm6339_vm7, %v5038_v63, %v1357_v57  ;;  %v1281_v25 = vrot.slane %v5138_v16, 4  ;;  %vm6343_vm7 = vmmov %vm6341_vm3 }
 0x399   : > { %v5200_v44 = vpop.permute.xlu0 %1202  ;;  %1787 = vmatpush1.bf16.msra.mxu1 %v3985_v33  ;;  %v1280_v10 = vrot.slane %v1268_v35, 4  ;;  %v1278_v33 = vrot.slane %v5181_v5, 4  ;;  %v4008_v54 = vcombine.high %v1359_v20, %v1361_v4  ;;  %v4007_v17 = vcombine.low %v1359_v20, %v1361_v4 }
 0x39a   : > { %1788 = vmatprep.subr.bf16.mxu1 %v3984_v39  ;;  %v1290_v52 = vsel %vm6284_vm1, %v1281_v25, %v1282_v9  ;;  %v1212_v5 = vrot.slane %v5200_v44, 4 }
 0x39b   : > { %v1288_v35 = vsel %vm6284_vm1, %v1279_v49, %v1280_v10  ;;  %v1285_v53 = vsel %vm6284_vm1, %v1277_v11, %v1278_v33 }
 0x39c   : > { %v5206_v27 = vpop.permute.xlu1 %1200  ;;  %v1289_v18 = vsel %vm6341_vm3, %v5164_v48, %v1288_v35 }
 0x39d   : > { %v5210_v8 = vpop.permute.xlu0 %1469  ;;  %1789 = vmatpush1.bf16.msra.mxu1 %v3983_v34  ;;  %v1211_v56 = vrot.slane %v5206_v27, 4  ;;  %v1287_v27 = vsel %vm6343_vm7, %v5151_v32, %v1285_v53  ;;  %v4263_v53 = vld [vmem:[%s6234_s3 + $0x1c] ss:$12 sps:$4 sm:$0xff]  }
 0x39e   : > { %1790 = vmatprep.subr.bf16.mxu1 %v4014_v26  ;;  %v1291_v26 = vsel %vm6340_vm14, %v5138_v16, %v1290_v52  ;;  %v4004_v14 = vcombine.high %v1287_v27, %v1289_v18  ;;  %vm6344_vm14 = vcmask 785408  }
 0x39f   : > { %v1218_v38 = vsel %vm6284_vm1, %v1210_v36, %v1211_v56 }
 0x3a0   : > { %v1205_v50 = vpop.permute.xlu1 %1204 }
 0x3a1   : > { %v1346_v45 = vpop.permute.xlu0 %1345  ;;  %1791 = vmatpush2.bf16.msra.mxu1 %v4013_v30  ;;  %v1213_v63 = vrot.slane %v1205_v50, 4 }
 0x3a2   : > { %v1355_v55 = vrot.slane %v1346_v45, 4  ;;  %1792 = vmatprep.subr.bf16.mxu1 %v4012_v31 }
 0x3a3   : > { %v1220_v22 = vsel %vm6284_vm1, %v1212_v5, %v1213_v63 }
 0x3a4   : > { %v1364_v61 = vsel %vm6284_vm1, %v1355_v55, %v1356_v47  ;;  %v5225_v24 = vpop.permute.xlu1 %1471  ;;  %v1221_v48 = vsel %vm6344_vm14, %v5200_v44, %v1220_v22  ;;  %v4003_v55 = vcombine.low %v1287_v27, %v1289_v18  ;;  %v4266_v18 = vld [vmem:[%s6234_s3 + $0x20] ss:$12 sps:$4 sm:$0xff]  }
 0x3a5   : > { %v1365_v15 = vsel %vm6338_vm6, %v1346_v45, %v1364_v61  ;;  %v5233_v58 = vpop.permute.xlu0 %1190  ;;  %1793 = vmatpush2.bf16.msra.mxu1 %v4011_v40  ;;  %vm6342_vm6 = vmmov %vm6341_vm3  ;;  %v1482_v46 = vrot.slane %v5225_v24, 4  ;;  %v1481_v40 = vrot.slane %v5210_v8, 4 }
 0x3a6   : > { %v4010_v21 = vcombine.high %v1363_v59, %v1365_v15  ;;  %v4009_v28 = vcombine.low %v1363_v59, %v1365_v15  ;;  %v1206_v47 = vrot.slane %v5233_v58, 4  ;;  %vm6345_vm3 = vmmov %vm6344_vm14  ;;  %vm6348_vm14 = vcmask 646144  }
 0x3a7   : > { %v1219_v32 = vsel %vm6345_vm3, %v5189_v37, %v1218_v38  ;;  %v1490_v24 = vsel %vm6284_vm1, %v1481_v40, %v1482_v46  ;;  %vm6347_vm7 = vmmov %vm6345_vm3 }
 0x3a8   : > { %v1476_v60 = vpop.permute.xlu1 %1475  ;;  %1794 = vmatprep.subr.bf16.mxu1 %v4010_v21  ;;  %v4002_v61 = vcombine.high %v1219_v32, %v1221_v48  ;;  %v4001_v21 = vcombine.low %v1219_v32, %v1221_v48  ;;  %v1491_v33 = vsel %vm6348_vm14, %v5210_v8, %v1490_v24 }
 0x3a9   : > { %v1274_v23 = vpop.permute.xlu0 %1273  ;;  %1795 = vmatpush2.bf16.msra.mxu1 %v4009_v28  ;;  %v1484_v9 = vrot.slane %v1476_v60, 4 }
 0x3aa   : > { %v1283_v39 = vrot.slane %v1274_v23, 4  ;;  %1796 = vmatprep.subr.bf16.mxu1 %v4008_v54 }
 0x3ac   : > { %v1292_v34 = vsel %vm6284_vm1, %v1283_v39, %v1284_v41  ;;  %v1193_v43 = vpop.permute.xlu1 %1192  ;;  %v4259_v39 = vld [vmem:[%s6234_s3] ss:$12 sps:$4 sm:$0xff]  }
 0x3ad   : > { %v1293_v51 = vsel %vm6342_vm6, %v1274_v23, %v1292_v34  ;;  %v1195_v0 = vpop.permute.xlu0 %1194  ;;  %1797 = vmatpush2.bf16.msra.mxu1 %v4007_v17  ;;  %v1207_v7 = vrot.slane %v1193_v43, 4  ;;  %vm6346_vm6 = vmmov %vm6345_vm3  ;;  %v4262_v34 = vld [vmem:[%s6234_s3 + $0x8] ss:$12 sps:$4 sm:$0xff]   ;;  %v4265_v43 = vld [vmem:[%s6234_s3 + $0x18] ss:$12 sps:$4 sm:$0xff]  }
 0x3ae   : > { %v4006_v29 = vcombine.high %v1291_v26, %v1293_v51  ;;  %v4005_v30 = vcombine.low %v1291_v26, %v1293_v51  ;;  %v1208_v50 = vrot.slane %v1195_v0, 4  ;;  %vm6349_vm3 = vmmov %vm6348_vm14  ;;  %vm6352_vm14 = vcmask 261120  }
 0x3af   : > { %v1214_v57 = vsel %vm6284_vm1, %v1206_v47, %v1207_v7  ;;  %v6353_v26 = vmov 0  }
 0x3b0   : > { %v1197_v16 = vpop.permute.xlu1 %1196  ;;  %1798 = vmatprep.subr.bf16.mxu1 %v4006_v29  ;;  %v1215_v37 = vsel %vm6347_vm7, %v5233_v58, %v1214_v57  ;;  %vm6351_vm7 = vmmov %vm6349_vm3 }
 0x3b1   : > { %v1209_v31 = vrot.slane %v1197_v16, 4  ;;  %v1462_v45 = vpop.permute.xlu0 %1461  ;;  %1799 = vmatpush2.bf16.msra.mxu1 %v4005_v30 }
 0x3b2   : > { %1800 = vmatprep.subr.bf16.mxu1 %v4004_v14  ;;  %v1477_v28 = vrot.slane %v1462_v45, 4 }
 0x3b3   : > { %v1216_v19 = vsel %vm6284_vm1, %v1208_v50, %v1209_v31 }
 0x3b4   : > { %v1464_v44 = vpop.permute.xlu1 %1463  ;;  %v1217_v59 = vsel %vm6346_vm6, %v1195_v0, %v1216_v19  ;;  %vm6350_vm6 = vmmov %vm6349_vm3 }
 0x3b5   : > { %v1474_v4 = vpop.permute.xlu0 %1473  ;;  %1801 = vmatpush2.bf16.msra.mxu1 %v4003_v55  ;;  %v1478_v15 = vrot.slane %v1464_v44, 4  ;;  %v4000_v49 = vcombine.high %v1215_v37, %v1217_v59  ;;  %v3999_v35 = vcombine.low %v1215_v37, %v1217_v59 }
 0x3b6   : > { %v1483_v10 = vrot.slane %v1474_v4, 4  ;;  %1802 = vmatprep.subr.bf16.mxu1 %v4002_v61 }
 0x3b7   : > { %v1485_v60 = vsel %vm6284_vm1, %v1477_v28, %v1478_v15 }
 0x3b8   : > { %v1492_v20 = vsel %vm6284_vm1, %v1483_v10, %v1484_v9  ;;  %v1468_v25 = vpop.permute.xlu1 %1467  ;;  %v1487_v8 = vsel %vm6350_vm6, %v1462_v45, %v1485_v60 }
 0x3b9   : > { %v1493_v54 = vsel %vm6349_vm3, %v1474_v4, %v1492_v20  ;;  %v1480_v11 = vrot.slane %v1468_v25, 4  ;;  %v1466_v52 = vpop.permute.xlu0 %1465  ;;  %1803 = vmatpush2.bf16.msra.mxu1 %v4001_v21  ;;  %vm6354_vm3 = vmmov %vm6352_vm14 }
 0x3ba   : > { %v1479_v23 = vrot.slane %v1466_v52, 4  ;;  %1804 = vmatprep.subr.bf16.mxu1 %v4000_v49  ;;  %v4018_v41 = vcombine.high %v1491_v33, %v1493_v54  ;;  %v4017_v58 = vcombine.low %v1491_v33, %v1493_v54  ;;  %vm6355_vm6 = vmmov %vm6354_vm3 }
 0x3bb   : > { %vm6359_vm13 = vmmov %vm6355_vm6 }
 0x3bc   : > { %v1488_v63 = vsel %vm6284_vm1, %v1479_v23, %v1480_v11  ;;  %1839 = vmatprep.subr.bf16.mxu0 %v4018_v41 }
 0x3bd   : > { %v1489_v17 = vsel %vm6351_vm7, %v1466_v52, %v1488_v63  ;;  %1805 = vmatpush2.bf16.msra.mxu1 %v3999_v35  ;;  %1840 = vmatpush1.bf16.msra.mxu0 %v4017_v58  ;;  %vm6356_vm7 = vcmask 257024  }
 0x3be   : > { %v4016_v5 = vcombine.high %v1487_v8, %v1489_v17  ;;  %v4015_v56 = vcombine.low %v1487_v8, %v1489_v17 }
 0x3c0   : > { %1807 = vmatmul.mubr.bf16.vlgmr.msra.gmra.mxu1 %v4259_v39  ;;  %1841 = vmatprep.subr.bf16.mxu0 %v4016_v5 }
 0x3c1   : > { %1842 = vmatpush1.bf16.msra.mxu0 %v4015_v56  ;;  %1816 = vmatprep.mubr.bf16.mxu1 %v4263_v53 }
 0x3c4   : > { %4019 = vmatmul.mubr.msk.bf16.vlgmr.msra.gmra.mxu0 %vm6352_vm14, %v4262_v34  ;;  %vm6357_vm14 = vmmov %vm6354_vm3 }
 0x3c5   : > { %1869 = vmatprep.mubr.bf16.mxu0 %v6353_v26  ;;  %v1556_v16 = vpop.permute.xlu1 %1555 }
 0x3c6   : > { %v1551_v29 = vpop.permute.xlu0 %1550 }
 0x3c8   : > { %1817 = vmatmul.mubr.bf16.gmra.mxu1 %v4265_v43 }
 0x3c9   : > { %v1546_v44 = vpop.permute.xlu1 %1545 }
 0x3ca   : > { %v1541_v50 = vpop.permute.xlu0 %1540 }
 0x3cc   : > { %4020 = vmatmul.mubr.msk.bf16.gmra.mxu0 %vm6354_vm3, %v4266_v18  ;;  %vm6358_vm3 = vmmov %vm6356_vm7 }
 0x3cd   : > { %vm6360_vm1 = vmmov %vm6358_vm3 }
 0x480   : > { %v1808_v51 = vpop.f32.mrf.mxu1 }
 0x481   : > { %v1809_v55 = vadd.f32 %v1808_v51, %v1541_v50 }
 0x482   : > { %v1810_v0 = vpop.f32.mrf.mxu1 }
 0x483   : > { %v1811_v47 = vadd.f32 %v1810_v0, %v1541_v50 }
 0x484   : > { %v1812_v36 = vpop.f32.mrf.mxu1  ;;  %v1861_v22 = vpop.f32.mrf.mxu0 }
 0x485   : > { %v1862_v24 = vadd.f32 %v1861_v22, %v1809_v55  ;;  %v1813_v20 = vadd.f32 %v1812_v36, %v1546_v44 }
 0x486   : > { %v1814_v30 = vpop.f32.mrf.mxu1  ;;  %v1863_v27 = vpop.f32.mrf.mxu0 }
 0x487   : > { %v1864_v61 = vadd.f32 %v1863_v27, %v1811_v47  ;;  %v1815_v9 = vadd.f32 %v1814_v30, %v1546_v44  ;;  %v1880_v52 = vmax.f32 %v1862_v24, 0.0 }
 0x488   : > { %v1818_v38 = vpop.f32.mrf.mxu1  ;;  %v1865_v7 = vpop.f32.mrf.mxu0 }
 0x489   : > { %v1819_v31 = vadd.f32 %v1818_v38, %v1551_v29  ;;  %v1881_v49 = vmax.f32 %v1864_v61, 0.0  ;;  %v1866_v60 = vadd.f32 %v1865_v7, %v1813_v20 }
 0x48a   : > { %v1820_v14 = vpop.f32.mrf.mxu1  ;;  %v1867_v48 = vpop.f32.mrf.mxu0 }
 0x48b   : > { %v1821_v32 = vadd.f32 %v1820_v14, %v1551_v29  ;;  %v1868_v33 = vadd.f32 %v1867_v48, %v1815_v9  ;;  %v4132_v58 = vpack.c.bf16 %v1881_v49, %v1880_v52  ;;  %v1882_v39 = vmax.f32 %v1866_v60, 0.0 }
 0x48c   : > { %v1822_v45 = vpop.f32.mrf.mxu1  ;;  %v1871_v46 = vpop.f32.mrf.mxu0 }
 0x48d   : > { %v1872_v19 = vadd.f32 %v1871_v46, %v1819_v31  ;;  %v1823_v59 = vadd.f32 %v1822_v45, %v1556_v16  ;;  %v1883_v35 = vmax.f32 %v1868_v33, 0.0 }
 0x48e   : > { %v1824_v40 = vpop.f32.mrf.mxu1  ;;  %v1873_v57 = vpop.f32.mrf.mxu0 }
 0x48f   : > { %v1874_v4 = vadd.f32 %v1873_v57, %v1821_v32  ;;  %v1884_v10 = vmax.f32 %v1872_v19, 0.0  ;;  %v1825_v37 = vadd.f32 %v1824_v40, %v1556_v16  ;;  %v4133_v8 = vpack.c.bf16 %v1883_v35, %v1882_v39 }
 0x490   : > { %v1875_v15 = vpop.f32.mrf.mxu0 }
 0x491   : > { %v1885_v21 = vmax.f32 %v1874_v4, 0.0  ;;  %v1876_v28 = vadd.f32 %v1875_v15, %v1823_v59 }
 0x492   : > { %v1877_v25 = vpop.f32.mrf.mxu0 }
 0x493   : > { %v4134_v54 = vpack.c.bf16 %v1885_v21, %v1884_v10  ;;  %v1878_v11 = vadd.f32 %v1877_v25, %v1825_v37  ;;  %v1886_v23 = vmax.f32 %v1876_v28, 0.0 }
 0x495   : > { %v1887_v41 = vmax.f32 %v1878_v11, 0.0  ;;  %1912 = vrot.lane.b32.xlu0 %v4134_v54, %s4406_s17 }
 0x497   : > { %v4135_v63 = vpack.c.bf16 %v1887_v41, %v1886_v23 }
 0x499   : > { %1914 = vrot.lane.b32.xlu1 %v4135_v63, %s4406_s17  ;;  %1908 = vrot.lane.b32.xlu0 %v4132_v58, %s4406_s17 }
 0x49d   : > { %1910 = vrot.lane.b32.xlu1 %v4133_v8, %s4406_s17 }
 0x507   : > { %v1913_v17 = vpop.permute.xlu0 %1912 }
 0x508   : > { %v1918_v53 = vrot.slane %v1913_v17, 4 }
 0x50a   : > { %v1922_v5 = vsel %vm6355_vm6, %v1918_v53, %v1913_v17  ;;  %1937 = vst.msk [vmem:[#allocation5 + $0x20] sm:$0xf] %vm6356_vm7, %v1918_v53  ;;  %vm6361_vm7 = vmmov %vm6360_vm1 }
 0x50b   : > { %1936 = vst.msk [vmem:[#allocation5 + $0x18] sm:$0xff] %vm4599_vm5, %v1922_v5  ;;  %v1915_v56 = vpop.permute.xlu1 %1914  ;;  %v1909_v34 = vpop.permute.xlu0 %1908 }
 0x50c   : > { %v1919_v43 = vrot.slane %v1915_v56, 4  ;;  %v1916_v18 = vrot.slane %v1909_v34, 4 }
 0x50e   : > { %v1923_v51 = vsel %vm6357_vm14, %v1919_v43, %v1915_v56  ;;  %1939 = vst.msk [vmem:[#allocation5 + $0x2c] sm:$0xf] %vm6358_vm3, %v1919_v43  ;;  %v1920_v0 = vsel %vm6359_vm13, %v1916_v18, %v1909_v34  ;;  %vm6362_vm13 = vcmp.ne.s16.totalorder %v4773_v62, 0  ;;  %vm6364_vm14 = vcmp.ne.s16.totalorder %v4803_v42, 0 }
 0x50f   : > { %1933 = vst.msk [vmem:[#allocation5 + $0x8] sm:$0xf] %vm6360_vm1, %v1916_v18  ;;  %v1911_v36 = vpop.permute.xlu1 %1910  ;;  %vm6363_vm1 = vcmp.ne.s16.totalorder %v4786_v2, 0  ;;  %vm6365_vm3 = vmmov %vm6362_vm13 }
 0x510   : > { %1938 = vst.msk [vmem:[#allocation5 + $0x24] sm:$0xff] %vm4599_vm5, %v1923_v51  ;;  %1932 = vst.msk [vmem:[#allocation5] sm:$0xff] %vm4599_vm5, %v1920_v0  ;;  %v1917_v22 = vrot.slane %v1911_v36, 4 }
 0x511   : > { %v2021_v15 = vld [vmem:[#allocation5 + $0x20] sm:$0xf] }
 0x512   : > { %v1921_v29 = vsel %vm6355_vm6, %v1917_v22, %v1911_v36  ;;  %1935 = vst.msk [vmem:[#allocation5 + $0x14] sm:$0xf] %vm6361_vm7, %v1917_v22  ;;  %vm6366_vm6 = vmmov %vm6363_vm1  ;;  %v5373_v10 = vld [vmem:[#allocation5 + $0x18] sm:$0xff]  ;;  %v2389_v37 = vld [vmem:[#allocation5 + $0x20] sm:$0xf] }
 0x513   : > { %1934 = vst.msk [vmem:[#allocation5 + $0xc] sm:$0xff] %vm4599_vm5, %v1921_v29  ;;  %vm6367_vm7 = vmmov %vm6364_vm14  ;;  %v2141_v21 = vld [vmem:[#allocation5 + $0x20] sm:$0xf]  ;;  %v2084_v33 = vsel %vm6363_vm1, %v5373_v10, 0  ;;  %v2332_v34 = vsel %vm1315_vm12, %v5373_v10, 0 }
 0x514   : > { %v2149_v28 = vsel %vm4782_vm15, %v2141_v21, 0  ;;  %v2077_v25 = vld [vmem:[#allocation5 + $0x20] sm:$0xf] }
 0x515   : > { %v2085_v49 = vsel %vm4791_vm10, %v2077_v25, 0  ;;  %v1957_v54 = vld [vmem:[#allocation5 + $0x20] sm:$0xf]  ;;  %v2023_v60 = vld [vmem:[#allocation5 + $0x2c] sm:$0xf] }
 0x516   : > { %v2017_v30 = vld [vmem:[#allocation5 + $0x8] sm:$0xf]  ;;  %v1965_v11 = vsel %vm4810_vm2, %v1957_v54, 0  ;;  %v2391_v41 = vld [vmem:[#allocation5 + $0x2c] sm:$0xf] }
 0x517   : > { %2034 = vrot.lane.b32.xlu1 %v2017_v30, %s4414_s20  ;;  %v5318_v27 = vld [vmem:[#allocation5] sm:$0xff]  ;;  %v2385_v38 = vld [vmem:[#allocation5 + $0x8] sm:$0xf]  ;;  %v2143_v58 = vld [vmem:[#allocation5 + $0x2c] sm:$0xf] }
 0x518   : > { %2032 = vrot.lane.b32.xlu0 %v5318_v27, %s4414_s20  ;;  %v2137_v7 = vld [vmem:[#allocation5 + $0x8] sm:$0xf]  ;;  %v2144_v14 = vsel %vm6362_vm13, %v5318_v27, 0  ;;  %v2080_v31 = vsel %vm6363_vm1, %v5318_v27, 0  ;;  %v1960_v47 = vsel %vm6364_vm14, %v5318_v27, 0  ;;  %vm6368_vm13 = vmmov %vm6365_vm3  ;;  %v2151_v35 = vsel %vm4782_vm15, %v2143_v58, 0 }
 0x519   : > { %v2145_v16 = vsel %vm4782_vm15, %v2137_v7, 0  ;;  %v2073_v48 = vld [vmem:[#allocation5 + $0x8] sm:$0xf]  ;;  %v2019_v32 = vld [vmem:[#allocation5 + $0x14] sm:$0xf]  ;;  %v2148_v20 = vsel %vm6368_vm13, %v5373_v10, 0  ;;  %vm6369_vm14 = vmmov %vm6367_vm7 }
 0x51a   : > { %v2081_v50 = vsel %vm4791_vm10, %v2073_v48, 0  ;;  %v1953_v45 = vld [vmem:[#allocation5 + $0x8] sm:$0xf]  ;;  %v5347_v19 = vld [vmem:[#allocation5 + $0xc] sm:$0xff]  ;;  %v2139_v55 = vld [vmem:[#allocation5 + $0x14] sm:$0xf] }
 0x51b   : > { %2402 = vrot.lane.b32.xlu1 %v2385_v38, %s4413_s24  ;;  %v1961_v46 = vsel %vm4810_vm2, %v1953_v45, 0  ;;  %v2147_v40 = vsel %vm4782_vm15, %v2139_v55, 0  ;;  %v2146_v57 = vsel %vm6365_vm3, %v5347_v19, 0  ;;  %v2075_v44 = vld [vmem:[#allocation5 + $0x14] sm:$0xf]  ;;  %v2082_v59 = vsel %vm6366_vm6, %v5347_v19, 0  ;;  %vm6370_vm6 = vmmov %vm6363_vm1 }
 0x51c   : > { %2400 = vrot.lane.b32.xlu0 %v5318_v27, %s4413_s24  ;;  %v2083_v61 = vsel %vm4791_vm10, %v2075_v44, 0  ;;  %v1955_v4 = vld [vmem:[#allocation5 + $0x14] sm:$0xf]  ;;  %v1962_v9 = vsel %vm6367_vm7, %v5347_v19, 0  ;;  %v1964_v52 = vsel %vm6369_vm14, %v5373_v10, 0  ;;  %v5402_v23 = vld [vmem:[#allocation5 + $0x24] sm:$0xff] }
 0x51d   : > { %v1963_v24 = vsel %vm4810_vm2, %v1955_v4, 0  ;;  %v2150_v63 = vsel %vm6365_vm3, %v5402_v23, 0  ;;  %v2079_v39 = vld [vmem:[#allocation5 + $0x2c] sm:$0xf]  ;;  %v2086_v5 = vsel %vm6370_vm6, %v5402_v23, 0  ;;  %v2328_v0 = vsel %vm1315_vm12, %v5318_v27, 0 }
 0x51e   : > { %v2087_v8 = vsel %vm4791_vm10, %v2079_v39, 0  ;;  %v1959_v17 = vld [vmem:[#allocation5 + $0x2c] sm:$0xf]  ;;  %v2387_v56 = vld [vmem:[#allocation5 + $0x14] sm:$0xf]  ;;  %v2330_v29 = vsel %vm1315_vm12, %v5347_v19, 0 }
 0x51f   : > { %2162 = vrot.lane.b32.xlu1 %v2145_v16, %s6289_s23  ;;  %v1967_v53 = vsel %vm4810_vm2, %v1959_v17, 0  ;;  %v2325_v43 = vld [vmem:[#allocation5 + $0x20] sm:$0xf]  ;;  %v2327_v36 = vld [vmem:[#allocation5 + $0x2c] sm:$0xf]  ;;  %v1966_v7 = vsel %vm6367_vm7, %v5402_v23, 0 }
 0x520   : > { %2160 = vrot.lane.b32.xlu0 %v2144_v14, %s6289_s23  ;;  %v2333_v51 = vsel %vm4819_vm0, %v2325_v43, 0  ;;  %v2335_v22 = vsel %vm4819_vm0, %v2327_v36, 0  ;;  %v2321_v30 = vld [vmem:[#allocation5 + $0x8] sm:$0xf]  ;;  %v2323_v16 = vld [vmem:[#allocation5 + $0x14] sm:$0xf] }
 0x521   : > { %v2329_v38 = vsel %vm4819_vm0, %v2321_v30, 0  ;;  %v2331_v14 = vsel %vm4819_vm0, %v2323_v16, 0  ;;  %v2207_v21 = vld [vmem:[#allocation5 + $0x2c] sm:$0xf]  ;;  %v2201_v25 = vld [vmem:[#allocation5 + $0x8] sm:$0xf] }
 0x522   : > { %v2203_v54 = vld [vmem:[#allocation5 + $0x14] sm:$0xf]  ;;  %v2447_v39 = vld [vmem:[#allocation5 + $0x2c] sm:$0xf]  ;;  %v2450_v30 = vsel %vm6291_vm9, %v5347_v19, 0  ;;  %vm6379_vm13 = vcmask 1043456  }
 0x523   : > { %2098 = vrot.lane.b32.xlu1 %v2081_v50, %s6287_s21  ;;  %v2268_v50 = vsel %vm1243_vm8, %v5373_v10, 0  ;;  %v2443_v36 = vld [vmem:[#allocation5 + $0x14] sm:$0xf]  ;;  %vm6380_vm1 = vmmov %vm6379_vm13  ;;  %vm6382_vm3 = vcmask 793600  }
 0x524   : > { %2096 = vrot.lane.b32.xlu0 %v2080_v31, %s6287_s21  ;;  %v2261_v31 = vld [vmem:[#allocation5 + $0x20] sm:$0xf]  ;;  %vm6381_vm14 = vmmov %vm6380_vm1 }
 0x525   : > { %vm6383_vm6 = vmmov %vm6380_vm1 }
 0x526   : > { %vm6384_vm7 = vmmov %vm6382_vm3 }
 0x527   : > { %1978 = vrot.lane.b32.xlu1 %v1961_v46, %s6285_s25  ;;  %v2269_v46 = vsel %vm4949_vm4, %v2261_v31, 0 }
 0x528   : > { %1976 = vrot.lane.b32.xlu0 %v1960_v47, %s6285_s25  ;;  %v2264_v47 = vsel %vm1243_vm8, %v5318_v27, 0 }
 0x52b   : > { %2038 = vrot.lane.b32.xlu1 %v2019_v32, %s4414_s20  ;;  %v2263_v32 = vld [vmem:[#allocation5 + $0x2c] sm:$0xf] }
 0x52c   : > { %2036 = vrot.lane.b32.xlu0 %v5347_v19, %s4414_s20  ;;  %v2271_v55 = vsel %vm4949_vm4, %v2263_v32, 0 }
 0x52f   : > { %2166 = vrot.lane.b32.xlu1 %v2147_v40, %s6289_s23  ;;  %v2266_v40 = vsel %vm1243_vm8, %v5347_v19, 0 }
 0x530   : > { %2164 = vrot.lane.b32.xlu0 %v2146_v57, %s6289_s23  ;;  %v2257_v57 = vld [vmem:[#allocation5 + $0x8] sm:$0xf] }
 0x531   : > { %v2265_v44 = vsel %vm4949_vm4, %v2257_v57, 0 }
 0x533   : > { %2102 = vrot.lane.b32.xlu1 %v2083_v61, %s6287_s21  ;;  %v2334_v61 = vsel %vm1315_vm12, %v5402_v23, 0 }
 0x534   : > { %2100 = vrot.lane.b32.xlu0 %v2082_v59, %s6287_s21  ;;  %v2259_v59 = vld [vmem:[#allocation5 + $0x14] sm:$0xf] }
 0x535   : > { %v2267_v4 = vsel %vm4949_vm4, %v2259_v59, 0 }
 0x537   : > { %1982 = vrot.lane.b32.xlu1 %v1963_v24, %s6285_s25  ;;  %v2205_v24 = vld [vmem:[#allocation5 + $0x20] sm:$0xf] }
 0x538   : > { %1980 = vrot.lane.b32.xlu0 %v1962_v9, %s6285_s25  ;;  %v2270_v9 = vsel %vm1243_vm8, %v5402_v23, 0 }
 0x53b   : > { %2042 = vrot.lane.b32.xlu1 %v2021_v15, %s4414_s20 }
 0x53c   : > { %2040 = vrot.lane.b32.xlu0 %v5373_v10, %s4414_s20 }
 0x53f   : > { %2410 = vrot.lane.b32.xlu1 %v2389_v37, %s4413_s24 }
 0x540   : > { %2408 = vrot.lane.b32.xlu0 %v5373_v10, %s4413_s24 }
 0x543   : > { %2170 = vrot.lane.b32.xlu1 %v2149_v28, %s6289_s23 }
 0x544   : > { %2168 = vrot.lane.b32.xlu0 %v2148_v20, %s6289_s23 }
 0x547   : > { %2106 = vrot.lane.b32.xlu1 %v2085_v49, %s6287_s21 }
 0x548   : > { %2104 = vrot.lane.b32.xlu0 %v2084_v33, %s6287_s21 }
 0x54b   : > { %1986 = vrot.lane.b32.xlu1 %v1965_v11, %s6285_s25  ;;  %v2445_v11 = vld [vmem:[#allocation5 + $0x20] sm:$0xf] }
 0x54c   : > { %1984 = vrot.lane.b32.xlu0 %v1964_v52, %s6285_s25  ;;  %v2453_v58 = vsel %vm4996_vm11, %v2445_v11, 0 }
 0x54f   : > { %2046 = vrot.lane.b32.xlu1 %v2023_v60, %s4414_s20 }
 0x550   : > { %2044 = vrot.lane.b32.xlu0 %v5402_v23, %s4414_s20 }
 0x553   : > { %2414 = vrot.lane.b32.xlu1 %v2391_v41, %s4413_s24  ;;  %v2943_v41 = vld [vmem:[%s6239_s8] sm:$0xf] }
 0x554   : > { %2412 = vrot.lane.b32.xlu0 %v5402_v23, %s4413_s24 }
 0x557   : > { %2174 = vrot.lane.b32.xlu1 %v2151_v35, %s6289_s23  ;;  %v6378_v35 = vld [vmem:[#allocation21_spill] sm:$0xff] }
 0x558   : > { %2172 = vrot.lane.b32.xlu0 %v2150_v63, %s6289_s23  ;;  %v2452_v63 = vsel %vm6291_vm9, %v5373_v10, 0 }
 0x55b   : > { %2110 = vrot.lane.b32.xlu1 %v2087_v8, %s6287_s21 }
 0x55c   : > { %2404 = vrot.lane.b32.xlu0 %v5347_v19, %s4413_s24 }
 0x55f   : > { %1990 = vrot.lane.b32.xlu1 %v1967_v53, %s6285_s25  ;;  %v2455_v53 = vsel %vm4996_vm11, %v2447_v39, 0 }
 0x560   : > { %2108 = vrot.lane.b32.xlu0 %v2086_v5, %s6287_s21  ;;  %v4269_v5 = vld [vmem:[%s6236_s5 + $0x4] ss:$12 sps:$4 sm:$0xff]   ;;  %s6457_s21 = smov 111  }
 0x561   : > { %2808 = vmatprep.mubr.bf16.mxu0 %v4269_v5 }
 0x563   : > { %2406 = vrot.lane.b32.xlu1 %v2387_v56, %s4413_s24  ;;  %v2441_v56 = vld [vmem:[#allocation5 + $0x8] sm:$0xf] }
 0x564   : > { %2352 = vrot.lane.b32.xlu0 %v2332_v34, %s6371_s28 }
 0x567   : > { %2354 = vrot.lane.b32.xlu1 %v2333_v51, %s6371_s28  ;;  %v2449_v51 = vsel %vm4996_vm11, %v2441_v56, 0 }
 0x568   : > { %2344 = vrot.lane.b32.xlu0 %v2328_v0, %s6371_s28  ;;  %v2454_v0 = vsel %vm6291_vm9, %v5402_v23, 0 }
 0x56b   : > { %2358 = vrot.lane.b32.xlu1 %v2335_v22, %s6371_s28 }
 0x56c   : > { %2348 = vrot.lane.b32.xlu0 %v2330_v29, %s6371_s28  ;;  %v2451_v29 = vsel %vm4996_vm11, %v2443_v36, 0 }
 0x56f   : > { %2346 = vrot.lane.b32.xlu1 %v2329_v38, %s6371_s28 }
 0x570   : > { %1988 = vrot.lane.b32.xlu0 %v1966_v7, %s6285_s25  ;;  %v1950_v7 = vld [vmem:[%s6237_s6 + $0x10] sm:$0xff]  ;;  %s3845_s25 = scalar_lea.sflag [#allocation8], %s4582_s26 }
 0x573   : > { %2350 = vrot.lane.b32.xlu1 %v2331_v14, %s6371_s28  ;;  %v1949_v14 = vld [vmem:[%s6237_s6 + $0x8] sm:$0xff] }
 0x574   : > { %2288 = vrot.lane.b32.xlu0 %v2268_v50, %s6374_s15  ;;  %v1948_v50 = vld [vmem:[%s6237_s6] sm:$0xff] }
 0x577   : > { %2290 = vrot.lane.b32.xlu1 %v2269_v46, %s6374_s15 }
 0x578   : > { %2280 = vrot.lane.b32.xlu0 %v2264_v47, %s6374_s15 }
 0x57b   : > { %2294 = vrot.lane.b32.xlu1 %v2271_v55, %s6374_s15 }
 0x57c   : > { %2284 = vrot.lane.b32.xlu0 %v2266_v40, %s6374_s15 }
 0x57f   : > { %2282 = vrot.lane.b32.xlu1 %v2265_v44, %s6374_s15 }
 0x580   : > { %2356 = vrot.lane.b32.xlu0 %v2334_v61, %s6371_s28 }
 0x583   : > { %2286 = vrot.lane.b32.xlu1 %v2267_v4, %s6374_s15 }
 0x584   : > { %2224 = vrot.lane.b32.xlu0 %v5373_v10, %s6376_s19  ;;  %v2448_v10 = vsel %vm6291_vm9, %v5318_v27, 0 }
 0x587   : > { %2226 = vrot.lane.b32.xlu1 %v2205_v24, %s6376_s19 }
 0x588   : > { %2292 = vrot.lane.b32.xlu0 %v2270_v9, %s6374_s15 }
 0x589   : > { %v5492_v15 = vpop.permute.xlu1 %2034 }
 0x58a   : > { %v5494_v37 = vpop.permute.xlu0 %2032 }
 0x58b   : > { %2230 = vrot.lane.b32.xlu1 %v2207_v21, %s6376_s19 }
 0x58c   : > { %2228 = vrot.lane.b32.xlu0 %v5402_v23, %s6376_s19  ;;  %v1951_v23 = vld [vmem:[%s6237_s6 + $0x18] sm:$0xff] }
 0x58d   : > { %v5499_v28 = vpop.permute.xlu1 %2402 }
 0x58e   : > { %v5501_v20 = vpop.permute.xlu0 %2400 }
 0x58f   : > { %2218 = vrot.lane.b32.xlu1 %v2201_v25, %s6376_s19 }
 0x590   : > { %2216 = vrot.lane.b32.xlu0 %v5318_v27, %s6376_s19 }
 0x591   : > { %v5506_v49 = vpop.permute.xlu1 %2162 }
 0x592   : > { %v5508_v33 = vpop.permute.xlu0 %2160  ;;  %v2177_v39 = vrot.slane %v5506_v49, 4 }
 0x593   : > { %2222 = vrot.lane.b32.xlu1 %v2203_v54, %s6376_s19 }
 0x594   : > { %2220 = vrot.lane.b32.xlu0 %v5347_v19, %s6376_s19 }
 0x595   : > { %v5513_v52 = vpop.permute.xlu1 %2098 }
 0x596   : > { %v5515_v60 = vpop.permute.xlu0 %2096 }
 0x597   : > { %2474 = vrot.lane.b32.xlu1 %v2453_v58, %s6332_s1 }
 0x598   : > { %2472 = vrot.lane.b32.xlu0 %v2452_v63, %s6332_s1 }
 0x599   : > { %v5524_v8 = vpop.permute.xlu1 %1978 }
 0x59a   : > { %v5526_v17 = vpop.permute.xlu0 %1976 }
 0x59b   : > { %2478 = vrot.lane.b32.xlu1 %v2455_v53, %s6332_s1  ;;  %v2176_v53 = vrot.slane %v5508_v33, 4 }
 0x59c   : > { %2464 = vrot.lane.b32.xlu0 %v2448_v10, %s6332_s1 }
 0x59d   : > { %v5538_v34 = vpop.permute.xlu1 %2038 }
 0x59e   : > { %v5540_v43 = vpop.permute.xlu0 %2036 }
 0x59f   : > { %2466 = vrot.lane.b32.xlu1 %v2449_v51, %s6332_s1 }
 0x5a0   : > { %2476 = vrot.lane.b32.xlu0 %v2454_v0, %s6332_s1 }
 0x5a1   : > { %v2167_v27 = vpop.permute.xlu1 %2166 }
 0x5a2   : > { %v2165_v22 = vpop.permute.xlu0 %2164  ;;  %v2179_v25 = vrot.slane %v2167_v27, 4 }
 0x5a3   : > { %2470 = vrot.lane.b32.xlu1 %v2451_v29, %s6332_s1  ;;  %v2178_v54 = vrot.slane %v2165_v22, 4  ;;  %v2184_v29 = vsel %vm6381_vm14, %v2176_v53, %v2177_v39  ;;  %vm6387_vm14 = vmmov %vm6383_vm6 }
 0x5a4   : > { %2468 = vrot.lane.b32.xlu0 %v2450_v30, %s6332_s1 }
 0x5a5   : > { %v2103_v38 = vpop.permute.xlu1 %2102  ;;  %v2186_v10 = vsel %vm6379_vm13, %v2178_v54, %v2179_v25  ;;  %vm6385_vm13 = vmmov %vm6382_vm3 }
 0x5a6   : > { %v5562_v16 = vpop.permute.xlu0 %2100  ;;  %v2187_v27 = vsel %vm6382_vm3, %v2165_v22, %v2186_v10  ;;  %v2115_v30 = vrot.slane %v2103_v38, 4  ;;  %v2113_v22 = vrot.slane %v5513_v52, 4  ;;  %v2112_v38 = vrot.slane %v5515_v60, 4 }
 0x5a7   : > { %2557 = vperm.xlu1 %4249, %v1951_v23   ;;  %v2114_v23 = vrot.slane %v5562_v16, 4 }
 0x5a8   : > { %2552 = vperm.xlu0 %4250, %v1950_v7  }
 0x5a9   : > { %v5567_v19 = vpop.permute.xlu1 %1982 }
 0x5aa   : > { %v5572_v31 = vpop.permute.xlu0 %1980 }
 0x5ab   : > { %2547 = vperm.xlu1 %4249, %v1949_v14  }
 0x5ac   : > { %2542 = vperm.xlu0 %4250, %v1948_v50  }
 0x5ad   : > { %v5574_v46 = vpop.permute.xlu1 %2042 }
 0x5ae   : > { %v5576_v47 = vpop.permute.xlu0 %2040 }
 0x5b1   : > { %v5578_v32 = vpop.permute.xlu1 %2410 }
 0x5b2   : > { %v5580_v55 = vpop.permute.xlu0 %2408 }
 0x5b5   : > { %v2171_v40 = vpop.permute.xlu1 %2170 }
 0x5b6   : > { %v2169_v57 = vpop.permute.xlu0 %2168  ;;  %v2181_v58 = vrot.slane %v2171_v40, 4 }
 0x5b7   : > { %v2180_v63 = vrot.slane %v2169_v57, 4 }
 0x5b9   : > { %v2107_v44 = vpop.permute.xlu1 %2106  ;;  %v2188_v0 = vsel %vm6380_vm1, %v2180_v63, %v2181_v58  ;;  %vm6386_vm1 = vmmov %vm6382_vm3 }
 0x5ba   : > { %v2105_v61 = vpop.permute.xlu0 %2104  ;;  %v2189_v14 = vsel %vm6384_vm7, %v2169_v57, %v2188_v0  ;;  %v2117_v50 = vrot.slane %v2107_v44, 4  ;;  %v2185_v39 = vsel %vm6386_vm1, %v5508_v33, %v2184_v29  ;;  %v2122_v57 = vsel %vm6387_vm14, %v2114_v23, %v2115_v30  ;;  %vm6388_vm3 = vmmov %vm6383_vm6 }
 0x5bb   : > { %v2116_v40 = vrot.slane %v2105_v61, 4  ;;  %v4043_v52 = vcombine.low %v2185_v39, %v2187_v27  ;;  %v2051_v29 = vrot.slane %v5538_v34, 4  ;;  %vm6390_vm7 = vmmov %vm6388_vm3 }
 0x5bd   : > { %v5582_v59 = vpop.permute.xlu1 %1986  ;;  %v2124_v44 = vsel %vm6388_vm3, %v2116_v40, %v2117_v50 }
 0x5be   : > { %v5584_v4 = vpop.permute.xlu0 %1984 }
 0x5c1   : > { %v2047_v24 = vpop.permute.xlu1 %2046 }
 0x5c2   : > { %v5586_v9 = vpop.permute.xlu0 %2044 }
 0x5c5   : > { %v5588_v21 = vpop.permute.xlu1 %2414 }
 0x5c6   : > { %v5590_v11 = vpop.permute.xlu0 %2412 }
 0x5c9   : > { %v2175_v5 = vpop.permute.xlu1 %2174 }
 0x5ca   : > { %v2183_v56 = vrot.slane %v2175_v5, 4  ;;  %v2173_v51 = vpop.permute.xlu0 %2172  ;;  %v4044_v5 = vcombine.high %v2185_v39, %v2187_v27  ;;  %v2048_v39 = vrot.slane %v5494_v37, 4 }
 0x5cb   : > { %v2182_v36 = vrot.slane %v2173_v51, 4 }
 0x5cd   : > { %v2190_v7 = vsel %vm6383_vm6, %v2182_v36, %v2183_v56  ;;  %v2111_v49 = vpop.permute.xlu1 %2110  ;;  %v2055_v56 = vrot.slane %v2047_v24, 4  ;;  %vm6389_vm6 = vmmov %vm6388_vm3  ;;  %v2050_v24 = vrot.slane %v5540_v43, 4 }
 0x5ce   : > { %v2191_v25 = vsel %vm6385_vm13, %v2173_v51, %v2190_v7  ;;  %v5602_v54 = vpop.permute.xlu0 %2404  ;;  %v2054_v51 = vrot.slane %v5586_v9, 4  ;;  %v2119_v0 = vrot.slane %v2111_v49, 4  ;;  %v2120_v33 = vsel %vm6389_vm6, %v2112_v38, %v2113_v22 }
 0x5cf   : > { %v4046_v58 = vcombine.high %v2189_v14, %v2191_v25  ;;  %v4045_v63 = vcombine.low %v2189_v14, %v2191_v25  ;;  %v2053_v7 = vrot.slane %v5574_v46, 4  ;;  %v2052_v14 = vrot.slane %v5576_v47, 4 }
 0x5d0   : > { %vm6391_vm13 = vcmask 908288   ;;  %v2062_v34 = vsel %vm6388_vm3, %v2054_v51, %v2055_v56 }
 0x5d1   : > { %v5608_v53 = vpop.permute.xlu1 %1990  ;;  %2776 = vmatprep.subr.bf16.mxu0 %v4046_v58  ;;  %v2123_v49 = vsel %vm6391_vm13, %v5562_v16, %v2122_v57  ;;  %vm6392_vm1 = vmmov %vm6391_vm13 }
 0x5d2   : > { %v2109_v10 = vpop.permute.xlu0 %2108  ;;  %2777 = vmatpush1.bf16.msra.mxu0 %v4045_v63  ;;  %v2125_v50 = vsel %vm6392_vm1, %v2105_v61, %v2124_v44  ;;  %vm6393_vm14 = vmmov %vm6392_vm1  ;;  %v2049_v63 = vrot.slane %v5492_v15, 4 }
 0x5d3   : > { %v2118_v36 = vrot.slane %v2109_v10, 4  ;;  %2778 = vmatprep.subr.bf16.mxu0 %v4044_v5  ;;  %vm6394_vm6 = vmmov %vm6392_vm1  ;;  %vm6397_vm1 = vcmask 916480  }
 0x5d4   : > { %v2121_v58 = vsel %vm6394_vm6, %v5515_v60, %v2120_v33  ;;  %vm6396_vm13 = vmmov %vm6388_vm3  ;;  %v2063_v5 = vsel %vm6397_vm1, %v5586_v9, %v2062_v34  ;;  %v2056_v44 = vsel %vm6388_vm3, %v2048_v39, %v2049_v63  ;;  %v1994_v9 = vrot.slane %v5572_v31, 4 }
 0x5d5   : > { %v2126_v30 = vsel %vm6390_vm7, %v2118_v36, %v2119_v0  ;;  %v5618_v23 = vpop.permute.xlu1 %2406  ;;  %vm6395_vm7 = vmmov %vm6388_vm3  ;;  %v4040_v61 = vcombine.high %v2121_v58, %v2123_v49  ;;  %v2058_v38 = vsel %vm6396_vm13, %v2050_v24, %v2051_v29  ;;  %v4039_v60 = vcombine.low %v2121_v58, %v2123_v49 }
 0x5d6   : > { %v2127_v40 = vsel %vm6393_vm14, %v2109_v10, %v2126_v30  ;;  %v5625_v27 = vpop.permute.xlu0 %2352  ;;  %2779 = vmatpush1.bf16.msra.mxu0 %v4043_v52  ;;  %v2060_v16 = vsel %vm6395_vm7, %v2052_v14, %v2053_v7  ;;  %vm6398_vm14 = vmmov %vm6397_vm1  ;;  %v1995_v0 = vrot.slane %v5567_v19, 4  ;;  %v1997_v36 = vrot.slane %v5582_v59, 4 }
 0x5d7   : > { %v4042_v46 = vcombine.high %v2125_v50, %v2127_v40  ;;  %v4041_v25 = vcombine.low %v2125_v50, %v2127_v40  ;;  %v2061_v15 = vsel %vm6398_vm14, %v5576_v47, %v2060_v16  ;;  %vm6399_vm6 = vmmov %vm6397_vm1  ;;  %v1996_v33 = vrot.slane %v5584_v4, 4 }
 0x5d8   : > { %v2059_v10 = vsel %vm6399_vm6, %v5540_v43, %v2058_v38  ;;  %v4038_v51 = vcombine.high %v2061_v15, %v2063_v5  ;;  %vm6400_vm7 = vmmov %vm6397_vm1  ;;  %v4037_v29 = vcombine.low %v2061_v15, %v2063_v5  ;;  %v1993_v43 = vrot.slane %v5524_v8, 4 }
 0x5d9   : > { %v5633_v22 = vpop.permute.xlu1 %2354  ;;  %2780 = vmatprep.subr.bf16.mxu0 %v4042_v46  ;;  %v2057_v47 = vsel %vm6400_vm7, %v5494_v37, %v2056_v44  ;;  %v1992_v7 = vrot.slane %v5526_v17, 4  ;;  %vm6401_vm13 = vmmov %vm6388_vm3  ;;  %v2423_v49 = vrot.slane %v5588_v21, 4  ;;  %v2422_v50 = vrot.slane %v5590_v11, 4 }
 0x5da   : > { %v5638_v57 = vpop.permute.xlu0 %2344  ;;  %2781 = vmatpush1.bf16.msra.mxu0 %v4041_v25  ;;  %v4036_v19 = vcombine.high %v2057_v47, %v2059_v10  ;;  %v2002_v30 = vsel %vm6401_vm13, %v1994_v9, %v1995_v0  ;;  %vm6402_vm1 = vmmov %vm6388_vm3  ;;  %v1999_v37 = vrot.slane %v5608_v53, 4  ;;  %v4035_v8 = vcombine.low %v2057_v47, %v2059_v10 }
 0x5db   : > { %2782 = vmatprep.subr.bf16.mxu0 %v4040_v61  ;;  %v2004_v59 = vsel %vm6402_vm1, %v1996_v33, %v1997_v36  ;;  %vm6403_vm14 = vmmov %vm6402_vm1  ;;  %v2421_v46 = vrot.slane %v5578_v32, 4  ;;  %v2420_v25 = vrot.slane %v5580_v55, 4  ;;  %vm6405_vm6 = vcmask 924672  }
 0x5dc   : > { %v2000_v34 = vsel %vm6403_vm14, %v1992_v7, %v1993_v43  ;;  %vm6404_vm3 = vmmov %vm6402_vm1  ;;  %v2003_v39 = vsel %vm6405_vm6, %v5572_v31, %v2002_v30  ;;  %v2430_v61 = vsel %vm6402_vm1, %v2422_v50, %v2423_v49  ;;  %v2419_v32 = vrot.slane %v5618_v23, 4 }
 0x5dd   : > { %v5645_v56 = vpop.permute.xlu1 %2358  ;;  %vm6406_vm7 = vmmov %vm6405_vm6  ;;  %v2417_v15 = vrot.slane %v5499_v28, 4  ;;  %v2416_v31 = vrot.slane %v5501_v20, 4  ;;  %v2418_v44 = vrot.slane %v5602_v54, 4 }
 0x5de   : > { %v5651_v52 = vpop.permute.xlu0 %2348  ;;  %2783 = vmatpush1.bf16.msra.mxu0 %v4039_v60  ;;  %v2005_v21 = vsel %vm6406_vm7, %v5584_v4, %v2004_v59  ;;  %vm6407_vm13 = vmmov %vm6405_vm6 }
 0x5df   : > { %2784 = vmatprep.subr.bf16.mxu0 %v4038_v51  ;;  %vm6408_vm14 = vmmov %vm6405_vm6  ;;  %vm6410_vm6 = vcmask 654336   ;;  %v2424_v36 = vsel %vm6402_vm1, %v2416_v31, %v2417_v15  ;;  %v2362_v59 = vrot.slane %v5651_v52, 4 }
 0x5e0   : > { %v2001_v60 = vsel %vm6408_vm14, %v5526_v17, %v2000_v34  ;;  %v2431_v0 = vsel %vm6410_vm6, %v5590_v11, %v2430_v61  ;;  %vm6411_vm7 = vmmov %vm6402_vm1  ;;  %v2365_v11 = vrot.slane %v5633_v22, 4 }
 0x5e1   : > { %v5657_v14 = vpop.permute.xlu1 %2346  ;;  %v4032_v51 = vcombine.high %v2001_v60, %v2003_v39  ;;  %v2426_v28 = vsel %vm6411_vm7, %v2418_v44, %v2419_v32  ;;  %v4031_v9 = vcombine.low %v2001_v60, %v2003_v39  ;;  %vm6413_vm14 = vmmov %vm6410_vm6 }
 0x5e2   : > { %v1989_v24 = vpop.permute.xlu0 %1988  ;;  %2785 = vmatpush1.bf16.msra.mxu0 %v4037_v29  ;;  %v2427_v29 = vsel %vm6413_vm14, %v5602_v54, %v2426_v28  ;;  %v2360_v54 = vrot.slane %v5638_v57, 4  ;;  %vm6416_vm7 = vmmov %vm6402_vm1  ;;  %vm6418_vm14 = vcmask 662528  }
 0x5e3   : > { %v1998_v40 = vrot.slane %v1989_v24, 4  ;;  %2786 = vmatprep.subr.bf16.mxu0 %v4036_v19 }
 0x5e5   : > { %v2006_v58 = vsel %vm6404_vm3, %v1998_v40, %v1999_v37  ;;  %v2351_v63 = vpop.permute.xlu1 %2350  ;;  %vm6409_vm3 = vmmov %vm6402_vm1  ;;  %v2367_v40 = vrot.slane %v5645_v56, 4 }
 0x5e6   : > { %v2007_v53 = vsel %vm6407_vm13, %v1989_v24, %v2006_v58  ;;  %v5673_v16 = vpop.permute.xlu0 %2288  ;;  %2787 = vmatpush1.bf16.msra.mxu0 %v4035_v8  ;;  %v2428_v4 = vsel %vm6409_vm3, %v2420_v25, %v2421_v46  ;;  %vm6412_vm13 = vmmov %vm6410_vm6  ;;  %v2363_v7 = vrot.slane %v2351_v63, 4  ;;  %v2361_v24 = vrot.slane %v5657_v14, 4 }
 0x5e7   : > { %v4034_v38 = vcombine.high %v2005_v21, %v2007_v53  ;;  %v4033_v5 = vcombine.low %v2005_v21, %v2007_v53  ;;  %v2429_v17 = vsel %vm6412_vm13, %v5580_v55, %v2428_v4  ;;  %vm6414_vm3 = vmmov %vm6410_vm6  ;;  %v2364_v55 = vrot.slane %v5625_v27, 4 }
 0x5e8   : > { %v4062_v47 = vcombine.high %v2429_v17, %v2431_v0  ;;  %v2425_v19 = vsel %vm6414_vm3, %v5501_v20, %v2424_v36  ;;  %v4061_v30 = vcombine.low %v2429_v17, %v2431_v0  ;;  %vm6415_vm6 = vmmov %vm6402_vm1  ;;  %v2370_v8 = vsel %vm6416_vm7, %v2362_v59, %v2363_v7 }
 0x5e9   : > { %v2291_v10 = vpop.permute.xlu1 %2290  ;;  %2788 = vmatprep.subr.bf16.mxu0 %v4034_v38  ;;  %v4060_v50 = vcombine.high %v2425_v19, %v2427_v29  ;;  %v2372_v22 = vsel %vm6415_vm6, %v2364_v55, %v2365_v11  ;;  %v4059_v34 = vcombine.low %v2425_v19, %v2427_v29  ;;  %vm6417_vm13 = vmmov %vm6402_vm1 }
 0x5ea   : > { %v5685_v23 = vpop.permute.xlu0 %2280  ;;  %2789 = vmatpush1.bf16.msra.mxu0 %v4033_v5  ;;  %v2368_v46 = vsel %vm6417_vm13, %v2360_v54, %v2361_v24  ;;  %v2373_v58 = vsel %vm6418_vm14, %v5625_v27, %v2372_v22  ;;  %vm6419_vm3 = vmmov %vm6418_vm14  ;;  %v2301_v56 = vrot.slane %v2291_v10, 4  ;;  %v2300_v5 = vrot.slane %v5673_v16, 4 }
 0x5eb   : > { %2790 = vmatprep.subr.bf16.mxu0 %v4032_v51  ;;  %v2371_v63 = vsel %vm6419_vm3, %v5651_v52, %v2370_v8  ;;  %vm6420_vm9 = vmmov %vm6419_vm3  ;;  %v2296_v52 = vrot.slane %v5685_v23, 4  ;;  %vm6425_vm14 = vcmask 777216  }
 0x5ec   : > { %vm6421_vm6 = vmmov %vm6419_vm3 }
 0x5ed   : > { %v2295_v33 = vpop.permute.xlu1 %2294  ;;  %v2369_v38 = vsel %vm6421_vm6, %v5638_v57, %v2368_v46  ;;  %vm6423_vm7 = vmmov %vm6402_vm1 }
 0x5ee   : > { %v2285_v43 = vpop.permute.xlu0 %2284  ;;  %2791 = vmatpush1.bf16.msra.mxu0 %v4031_v9  ;;  %v4056_v27 = vcombine.high %v2369_v38, %v2371_v63  ;;  %v2303_v10 = vrot.slane %v2295_v33, 4  ;;  %v4055_v28 = vcombine.low %v2369_v38, %v2371_v63  ;;  %vm6424_vm13 = vmmov %vm6402_vm1 }
 0x5ef   : > { %2792 = vmatprep.subr.bf16.mxu0 %v4062_v47  ;;  %v2298_v15 = vrot.slane %v2285_v43, 4  ;;  %vm6426_vm3 = vmmov %vm6425_vm14 }
 0x5f0   : > { %vm6427_vm6 = vmmov %vm6426_vm3 }
 0x5f1   : > { %v2283_v49 = vpop.permute.xlu1 %2282 }
 0x5f2   : > { %v2357_v37 = vpop.permute.xlu0 %2356  ;;  %2793 = vmatpush2.bf16.msra.mxu0 %v4061_v30  ;;  %v2297_v60 = vrot.slane %v2283_v49, 4 }
 0x5f3   : > { %v2366_v20 = vrot.slane %v2357_v37, 4  ;;  %2794 = vmatprep.subr.bf16.mxu0 %v4060_v50 }
 0x5f4   : > { %v2304_v57 = vsel %vm6424_vm13, %v2296_v52, %v2297_v60  ;;  %vm6430_vm13 = vmmov %vm6402_vm1 }
 0x5f5   : > { %v2374_v25 = vsel %vm6402_vm1, %v2366_v20, %v2367_v40  ;;  %v2287_v14 = vpop.permute.xlu1 %2286 }
 0x5f6   : > { %v2375_v39 = vsel %vm6420_vm9, %v2357_v37, %v2374_v25  ;;  %v2225_v21 = vpop.permute.xlu0 %2224  ;;  %2795 = vmatpush2.bf16.msra.mxu0 %v4059_v34  ;;  %v2299_v53 = vrot.slane %v2287_v14, 4  ;;  %vm6422_vm9 = vmmov %vm6402_vm1 }
 0x5f7   : > { %v4058_v61 = vcombine.high %v2373_v58, %v2375_v39  ;;  %v4057_v32 = vcombine.low %v2373_v58, %v2375_v39  ;;  %v2308_v44 = vsel %vm6422_vm9, %v2300_v5, %v2301_v56  ;;  %v2236_v19 = vrot.slane %v2225_v21, 4  ;;  %vm6428_vm9 = vmmov %vm6426_vm3 }
 0x5f8   : > { %v2306_v51 = vsel %vm6423_vm7, %v2298_v15, %v2299_v53  ;;  %v2309_v47 = vsel %vm6425_vm14, %v5673_v16, %v2308_v44  ;;  %v2305_v24 = vsel %vm6428_vm9, %v5685_v23, %v2304_v57  ;;  %vm6429_vm7 = vmmov %vm6402_vm1  ;;  %v4267_v15 = vld [vmem:[%s6236_s5] ss:$12 sps:$4 sm:$0xff]  }
 0x5f9   : > { %v2227_v31 = vpop.permute.xlu1 %2226  ;;  %2796 = vmatprep.subr.bf16.mxu0 %v4058_v61  ;;  %v2307_v29 = vsel %vm6426_vm3, %v2285_v43, %v2306_v51  ;;  %vm6433_vm3 = vmmov %vm6429_vm7 }
 0x5fa   : > { %v2293_v4 = vpop.permute.xlu0 %2292  ;;  %2797 = vmatpush2.bf16.msra.mxu0 %v4057_v32  ;;  %v2237_v17 = vrot.slane %v2227_v31, 4  ;;  %v4052_v16 = vcombine.high %v2305_v24, %v2307_v29  ;;  %v4051_v20 = vcombine.low %v2305_v24, %v2307_v29  ;;  %v4270_v31 = vld [vmem:[%s6236_s5 + $0x1c] ss:$12 sps:$4 sm:$0xff]  }
 0x5fb   : > { %v2302_v0 = vrot.slane %v2293_v4, 4  ;;  %2798 = vmatprep.subr.bf16.mxu0 %v4056_v27 }
 0x5fc   : > { %v2244_v49 = vsel %vm6429_vm7, %v2236_v19, %v2237_v17 }
 0x5fd   : > { %v2310_v9 = vsel %vm6402_vm1, %v2302_v0, %v2303_v10  ;;  %v2231_v36 = vpop.permute.xlu1 %2230  ;;  %vm6431_vm1 = vcmask 785408  }
 0x5fe   : > { %v2311_v11 = vsel %vm6427_vm6, %v2293_v4, %v2310_v9  ;;  %v2239_v7 = vrot.slane %v2231_v36, 4  ;;  %v2229_v33 = vpop.permute.xlu0 %2228  ;;  %2799 = vmatpush2.bf16.msra.mxu0 %v4055_v28  ;;  %vm6432_vm14 = vmmov %vm6431_vm1  ;;  %v4272_v36 = vld [vmem:[%s6236_s5 + $0x18] ss:$12 sps:$4 sm:$0xff]  }
 0x5ff   : > { %v2238_v30 = vrot.slane %v2229_v33, 4  ;;  %v4054_v55 = vcombine.high %v2309_v47, %v2311_v11  ;;  %v4053_v59 = vcombine.low %v2309_v47, %v2311_v11  ;;  %v2245_v8 = vsel %vm6432_vm14, %v2225_v21, %v2244_v49  ;;  %vm6434_vm6 = vmmov %vm6433_vm3 }
 0x600   : > { %vm6435_vm9 = vmmov %vm6431_vm1  ;;  %vm6439_vm14 = vcmask 646144  }
 0x601   : > { %v2246_v50 = vsel %vm6430_vm13, %v2238_v30, %v2239_v7  ;;  %v2219_v54 = vpop.permute.xlu1 %2218  ;;  %2800 = vmatprep.subr.bf16.mxu0 %v4054_v55  ;;  %vm6436_vm7 = vmmov %vm6431_vm1 }
 0x602   : > { %v2247_v43 = vsel %vm6431_vm1, %v2229_v33, %v2246_v50  ;;  %v2217_v37 = vpop.permute.xlu0 %2216  ;;  %2801 = vmatpush2.bf16.msra.mxu0 %v4053_v59  ;;  %v2233_v22 = vrot.slane %v2219_v54, 4  ;;  %vm6437_vm13 = vmmov %vm6433_vm3 }
 0x603   : > { %v2232_v40 = vrot.slane %v2217_v37, 4  ;;  %2802 = vmatprep.subr.bf16.mxu0 %v4052_v16  ;;  %v4050_v46 = vcombine.high %v2245_v8, %v2247_v43  ;;  %v4049_v63 = vcombine.low %v2245_v8, %v2247_v43  ;;  %vm6438_vm1 = vmmov %vm6433_vm3  ;;  %v4273_v16 = vld [vmem:[%s6236_s5 + $0x8] ss:$12 sps:$4 sm:$0xff]   ;;  %v4274_v43 = vld [vmem:[%s6236_s5 + $0x20] ss:$12 sps:$4 sm:$0xff]  }
 0x605   : > { %v2223_v34 = vpop.permute.xlu1 %2222  ;;  %v2240_v14 = vsel %vm6433_vm3, %v2232_v40, %v2233_v22  ;;  %vm6440_vm3 = vmmov %vm6439_vm14 }
 0x606   : > { %v2235_v23 = vrot.slane %v2223_v34, 4  ;;  %v2221_v25 = vpop.permute.xlu0 %2220  ;;  %2803 = vmatpush2.bf16.msra.mxu0 %v4051_v20  ;;  %v2241_v53 = vsel %vm6435_vm9, %v2217_v37, %v2240_v14  ;;  %vm6442_vm9 = vmmov %vm6438_vm1 }
 0x607   : > { %v2234_v58 = vrot.slane %v2221_v25, 4  ;;  %2804 = vmatprep.subr.bf16.mxu0 %v4050_v46 }
 0x609   : > { %v2242_v39 = vsel %vm6434_vm6, %v2234_v58, %v2235_v23  ;;  %v2475_v56 = vpop.permute.xlu1 %2474  ;;  %vm6441_vm6 = vmmov %vm6438_vm1 }
 0x60a   : > { %v2243_v61 = vsel %vm6436_vm7, %v2221_v25, %v2242_v39  ;;  %v2473_v32 = vpop.permute.xlu0 %2472  ;;  %2805 = vmatpush2.bf16.msra.mxu0 %v4049_v63  ;;  %v2485_v27 = vrot.slane %v2475_v56, 4  ;;  %vm6443_vm7 = vmmov %vm6440_vm3 }
 0x60b   : > { %v4048_v21 = vcombine.high %v2241_v53, %v2243_v61  ;;  %v4047_v38 = vcombine.low %v2241_v53, %v2243_v61  ;;  %v2484_v52 = vrot.slane %v2473_v32, 4 }
 0x60d   : > { %v2479_v5 = vpop.permute.xlu1 %2478  ;;  %2806 = vmatprep.subr.bf16.mxu0 %v4048_v21  ;;  %v2492_v10 = vsel %vm6437_vm13, %v2484_v52, %v2485_v27  ;;  %vm6444_vm13 = vmmov %vm6440_vm3 }
 0x60e   : > { %v2465_v60 = vpop.permute.xlu0 %2464  ;;  %2807 = vmatpush2.bf16.msra.mxu0 %v4047_v38  ;;  %v2487_v51 = vrot.slane %v2479_v5, 4  ;;  %v2493_v47 = vsel %vm6439_vm14, %v2473_v32, %v2492_v10 }
 0x60f   : > { %v2480_v57 = vrot.slane %v2465_v60, 4 }
 0x611   : > { %v2467_v4 = vpop.permute.xlu1 %2466  ;;  %2809 = vmatmul.mubr.bf16.vlgmr.msra.gmra.mxu0 %v4267_v15 }
 0x612   : > { %v2477_v44 = vpop.permute.xlu0 %2476  ;;  %2818 = vmatprep.mubr.bf16.mxu0 %v4270_v31  ;;  %v2481_v0 = vrot.slane %v2467_v4, 4 }
 0x613   : > { %v2486_v28 = vrot.slane %v2477_v44, 4 }
 0x614   : > { %v2488_v33 = vsel %vm6441_vm6, %v2480_v57, %v2481_v0  ;;  %vm6448_vm6 = vcmask 257024  }
 0x615   : > { %v2494_v17 = vsel %vm6438_vm1, %v2486_v28, %v2487_v51  ;;  %v2471_v9 = vpop.permute.xlu1 %2470  ;;  %v2489_v24 = vsel %vm6443_vm7, %v2465_v60, %v2488_v33  ;;  %vm6445_vm1 = vcmask 261120   ;;  %vm6450_vm7 = vmmov %vm6448_vm6 }
 0x616   : > { %v2495_v29 = vsel %vm6440_vm3, %v2477_v44, %v2494_v17  ;;  %v2483_v11 = vrot.slane %v2471_v9, 4  ;;  %v2469_v7 = vpop.permute.xlu0 %2468  ;;  %vm6446_vm14 = vmmov %vm6445_vm1 }
 0x617   : > { %v2482_v19 = vrot.slane %v2469_v7, 4  ;;  %v4066_v30 = vcombine.high %v2493_v47, %v2495_v29  ;;  %v4065_v55 = vcombine.low %v2493_v47, %v2495_v29  ;;  %vm6447_vm3 = vmmov %vm6445_vm1 }
 0x619   : > { %v2490_v59 = vsel %vm6442_vm9, %v2482_v19, %v2483_v11  ;;  %2819 = vmatmul.mubr.bf16.gmra.mxu0 %v4272_v36  ;;  %2841 = vmatprep.subr.bf16.mxu0 %v4066_v30  ;;  %vm6449_vm9 = vmmov %vm6445_vm1 }
 0x61a   : > { %v2491_v49 = vsel %vm6444_vm13, %v2469_v7, %v2490_v59  ;;  %2842 = vmatpush1.bf16.msra.mxu0 %v4065_v55  ;;  %2861 = vmatprep.mubr.bf16.mxu0 %v6353_v26  ;;  %vm6451_vm13 = vmmov %vm6445_vm1 }
 0x61b   : > { %v4064_v50 = vcombine.high %v2489_v24, %v2491_v49  ;;  %v4063_v54 = vcombine.low %v2489_v24, %v2491_v49 }
 0x61d   : > { %2843 = vmatprep.subr.bf16.mxu0 %v4064_v50 }
 0x61e   : > { %2844 = vmatpush1.bf16.msra.mxu0 %v4063_v54 }
 0x621   : > { %4067 = vmatmul.mubr.msk.bf16.vlgmr.msra.gmra.mxu0 %vm6445_vm1, %v4273_v16  ;;  %vm6452_vm1 = vmmov %vm6448_vm6 }
 0x622   : > { %2871 = vmatprep.mubr.bf16.mxu0 %v6353_v26  ;;  %v2558_v23 = vpop.permute.xlu1 %2557 }
 0x623   : > { %v2553_v20 = vpop.permute.xlu0 %2552 }
 0x626   : > { %v2548_v61 = vpop.permute.xlu1 %2547 }
 0x627   : > { %v2543_v14 = vpop.permute.xlu0 %2542 }
 0x629   : > { %4068 = vmatmul.mubr.msk.bf16.gmra.mxu0 %vm6446_vm14, %v4274_v43  ;;  %vm6453_vm14 = vmmov %vm6447_vm3 }
 0x62a   : > { %3812 = vmatprep.mubr.bf16.mxu0 %v6353_v26 }
 0x6d1   : > { %v2810_v37 = vpop.f32.mrf.mxu0 }
 0x6d2   : > { %v2811_v63 = vadd.f32 %v2810_v37, %v2543_v14 }
 0x6d3   : > { %v2812_v22 = vpop.f32.mrf.mxu0 }
 0x6d4   : > { %v2813_v56 = vadd.f32 %v2812_v22, %v2543_v14 }
 0x6d5   : > { %v2814_v40 = vpop.f32.mrf.mxu0 }
 0x6d6   : > { %v2815_v21 = vadd.f32 %v2814_v40, %v2548_v61 }
 0x6d7   : > { %v2816_v8 = vpop.f32.mrf.mxu0 }
 0x6d8   : > { %v2817_v5 = vadd.f32 %v2816_v8, %v2548_v61 }
 0x6d9   : > { %v2820_v34 = vpop.f32.mrf.mxu0 }
 0x6da   : > { %v2821_v52 = vadd.f32 %v2820_v34, %v2553_v20 }
 0x6db   : > { %v2822_v46 = vpop.f32.mrf.mxu0 }
 0x6dc   : > { %v2823_v51 = vadd.f32 %v2822_v46, %v2553_v20 }
 0x6dd   : > { %v2824_v25 = vpop.f32.mrf.mxu0 }
 0x6de   : > { %v2825_v9 = vadd.f32 %v2824_v25, %v2558_v23 }
 0x6df   : > { %v2826_v58 = vpop.f32.mrf.mxu0 }
 0x6e0   : > { %v2827_v11 = vadd.f32 %v2826_v58, %v2558_v23 }
 0x6e1   : > { %v2863_v39 = vpop.f32.mrf.mxu0 }
 0x6e2   : > { %v2864_v53 = vadd.f32 %v2863_v39, %v2811_v63 }
 0x6e3   : > { %v2865_v32 = vpop.f32.mrf.mxu0 }
 0x6e4   : > { %v2866_v38 = vadd.f32 %v2865_v32, %v2813_v56  ;;  %v2882_v15 = vmax.f32 %v2864_v53, 0.0 }
 0x6e5   : > { %v2867_v26 = vpop.f32.mrf.mxu0 }
 0x6e6   : > { %v2883_v60 = vmax.f32 %v2866_v38, 0.0  ;;  %v2868_v31 = vadd.f32 %v2867_v26, %v2815_v21 }
 0x6e7   : > { %v2869_v27 = vpop.f32.mrf.mxu0 }
 0x6e8   : > { %v4136_v4 = vpack.c.bf16 %v2883_v60, %v2882_v15  ;;  %v2870_v44 = vadd.f32 %v2869_v27, %v2817_v5  ;;  %v2884_v0 = vmax.f32 %v2868_v31, 0.0 }
 0x6e9   : > { %v2873_v10 = vpop.f32.mrf.mxu0 }
 0x6ea   : > { %v2885_v28 = vmax.f32 %v2870_v44, 0.0  ;;  %v2874_v57 = vadd.f32 %v2873_v10, %v2821_v52  ;;  %2910 = vrot.lane.b32.xlu0 %v4136_v4, %s4406_s17 }
 0x6eb   : > { %v2875_v17 = vpop.f32.mrf.mxu0 }
 0x6ec   : > { %v4137_v36 = vpack.c.bf16 %v2885_v28, %v2884_v0  ;;  %v2876_v47 = vadd.f32 %v2875_v17, %v2823_v51  ;;  %v2886_v7 = vmax.f32 %v2874_v57, 0.0 }
 0x6ed   : > { %v2877_v29 = vpop.f32.mrf.mxu0 }
 0x6ee   : > { %v2887_v33 = vmax.f32 %v2876_v47, 0.0  ;;  %v2878_v19 = vadd.f32 %v2877_v29, %v2825_v9  ;;  %2912 = vrot.lane.b32.xlu1 %v4137_v36, %s4406_s17 }
 0x6ef   : > { %v2879_v30 = vpop.f32.mrf.mxu0 }
 0x6f0   : > { %v4138_v55 = vpack.c.bf16 %v2887_v33, %v2886_v7  ;;  %v2880_v59 = vadd.f32 %v2879_v30, %v2827_v11  ;;  %v2888_v24 = vmax.f32 %v2878_v19, 0.0 }
 0x6f2   : > { %v2889_v49 = vmax.f32 %v2880_v59, 0.0  ;;  %2914 = vrot.lane.b32.xlu0 %v4138_v55, %s4406_s17 }
 0x6f4   : > { %v4139_v50 = vpack.c.bf16 %v2889_v49, %v2888_v24 }
 0x6f6   : > { %2916 = vrot.lane.b32.xlu1 %v4139_v50, %s4406_s17  ;;  %s6455_s17 = smov 97  }
 0x75c   : > { %v2911_v54 = vpop.permute.xlu0 %2910 }
 0x75d   : > { %v2918_v16 = vrot.slane %v2911_v54, 4 }
 0x75f   : > { %v2922_v43 = vsel %vm6447_vm3, %v2918_v16, %v2911_v54  ;;  %2935 = vst.msk [vmem:[#allocation4 + $0x8] sm:$0xf] %vm6448_vm6, %v2918_v16  ;;  %vm6454_vm3 = vmmov %vm6452_vm1  ;;  %vm6456_vm6 = vcmp.ne.s16.totalorder %v4773_v62, 0 }
 0x760   : > { %2934 = vst.msk [vmem:[#allocation4] sm:$0xff] %vm4599_vm5, %v2922_v43  ;;  %v2913_v37 = vpop.permute.xlu1 %2912 }
 0x761   : > { %v2919_v22 = vrot.slane %v2913_v37, 4 }
 0x763   : > { %v2923_v40 = vsel %vm6449_vm9, %v2919_v22, %v2913_v37  ;;  %2937 = vst.msk [vmem:[#allocation4 + $0x14] sm:$0xf] %vm6450_vm7, %v2919_v22  ;;  %vm6460_vm9 = vcmp.ne.s16.totalorder %v4803_v42, 0  ;;  %vm6461_vm7 = vmmov %vm6456_vm6 }
 0x764   : > { %2936 = vst.msk [vmem:[#allocation4 + $0xc] sm:$0xff] %vm4599_vm5, %v2923_v40  ;;  %v2915_v8 = vpop.permute.xlu0 %2914 }
 0x765   : > { %v2920_v20 = vrot.slane %v2915_v8, 4 }
 0x766   : > { %v3009_v34 = vld [vmem:[#allocation4 + $0x8] sm:$0xf] }
 0x767   : > { %v2924_v46 = vsel %vm6451_vm13, %v2920_v20, %v2915_v8  ;;  %2939 = vst.msk [vmem:[#allocation4 + $0x20] sm:$0xf] %vm6452_vm1, %v2920_v20  ;;  %3026 = vrot.lane.b32.xlu1 %v3009_v34, %s4414_s20  ;;  %v5775_v23 = vld [vmem:[#allocation4] sm:$0xff]  ;;  %v3377_v58 = vld [vmem:[#allocation4 + $0x8] sm:$0xf]  ;;  %vm6463_vm1 = vmmov %vm6460_vm9 }
 0x768   : > { %2938 = vst.msk [vmem:[#allocation4 + $0x18] sm:$0xff] %vm4599_vm5, %v2924_v46  ;;  %v2917_v25 = vpop.permute.xlu1 %2916  ;;  %3024 = vrot.lane.b32.xlu0 %v5775_v23, %s4414_s20  ;;  %v3129_v39 = vld [vmem:[#allocation4 + $0x8] sm:$0xf]  ;;  %v3136_v53 = vsel %vm6456_vm6, %v5775_v23, 0  ;;  %v2952_v26 = vsel %vm6460_vm9, %v5775_v23, 0  ;;  %v3320_v60 = vsel %vm1315_vm12, %v5775_v23, 0 }
 0x769   : > { %v2921_v14 = vrot.slane %v2917_v25, 4  ;;  %v3137_v56 = vsel %vm4782_vm15, %v3129_v39, 0  ;;  %v3065_v61 = vld [vmem:[#allocation4 + $0x8] sm:$0xf]  ;;  %vm6474_vm9 = vcmask 654336  }
 0x76a   : > { %v3073_v32 = vsel %vm4791_vm10, %v3065_v61, 0  ;;  %v2945_v21 = vld [vmem:[#allocation4 + $0x8] sm:$0xf]  ;;  %v3011_v31 = vld [vmem:[#allocation4 + $0x14] sm:$0xf] }
 0x76b   : > { %v2925_v63 = vsel %vm6453_vm14, %v2921_v14, %v2917_v25  ;;  %2941 = vst.msk [vmem:[#allocation4 + $0x2c] sm:$0xf] %vm6454_vm3, %v2921_v14  ;;  %3394 = vrot.lane.b32.xlu1 %v3377_v58, %s4413_s24  ;;  %v2953_v38 = vsel %vm4810_vm2, %v2945_v21, 0  ;;  %v3313_v5 = vld [vmem:[#allocation4 + $0x8] sm:$0xf]  ;;  %v5817_v27 = vld [vmem:[#allocation4 + $0xc] sm:$0xff]  ;;  %vm6464_vm14 = vmmov %vm6456_vm6 }
 0x76c   : > { %2940 = vst.msk [vmem:[#allocation4 + $0x24] sm:$0xff] %vm4599_vm5, %v2925_v63  ;;  %3392 = vrot.lane.b32.xlu0 %v5775_v23, %s4413_s24  ;;  %vm6458_vm5 = vcmp.ne.s16.totalorder %v4786_v2, 0  ;;  %v3321_v15 = vsel %vm4819_vm0, %v3313_v5, 0  ;;  %v3379_v52 = vld [vmem:[#allocation4 + $0x14] sm:$0xf]  ;;  %v3138_v10 = vsel %vm6461_vm7, %v5817_v27, 0  ;;  %vm6466_vm6 = vmmov %vm6463_vm1 }
 0x76d   : > { %v3072_v3 = vsel %vm6458_vm5, %v5775_v23, 0  ;;  %v3131_v4 = vld [vmem:[#allocation4 + $0x14] sm:$0xf]  ;;  %vm6462_vm13 = vmmov %vm6458_vm5  ;;  %v2954_v9 = vsel %vm6463_vm1, %v5817_v27, 0  ;;  %v3322_v25 = vsel %vm1315_vm12, %v5817_v27, 0  ;;  %v3256_v2 = vsel %vm1243_vm8, %v5775_v23, 0 }
 0x76e   : > { %v3139_v44 = vsel %vm4782_vm15, %v3131_v4, 0  ;;  %v3067_v51 = vld [vmem:[#allocation4 + $0x14] sm:$0xf]  ;;  %v3074_v28 = vsel %vm6462_vm13, %v5817_v27, 0  ;;  %v3013_v36 = vld [vmem:[#allocation4 + $0x20] sm:$0xf]  ;;  %vm6465_vm3 = vmmov %vm6458_vm5 }
 0x76f   : > { %3154 = vrot.lane.b32.xlu1 %v3137_v56, %s6455_s17  ;;  %v3075_v0 = vsel %vm4791_vm10, %v3067_v51, 0  ;;  %v2947_v57 = vld [vmem:[#allocation4 + $0x14] sm:$0xf]  ;;  %v5846_v47 = vld [vmem:[#allocation4 + $0x18] sm:$0xff]  ;;  %v3381_v29 = vld [vmem:[#allocation4 + $0x20] sm:$0xf] }
 0x770   : > { %3152 = vrot.lane.b32.xlu0 %v3136_v53, %s6455_s17  ;;  %v2955_v17 = vsel %vm4810_vm2, %v2947_v57, 0  ;;  %v3133_v11 = vld [vmem:[#allocation4 + $0x20] sm:$0xf]  ;;  %v3140_v33 = vsel %vm6464_vm14, %v5846_v47, 0  ;;  %v3076_v55 = vsel %vm6465_vm3, %v5846_v47, 0  ;;  %v2956_v49 = vsel %vm6466_vm6, %v5846_v47, 0  ;;  %vm6467_vm5 = vmmov %vm6461_vm7 }
 0x771   : > { %v3141_v7 = vsel %vm4782_vm15, %v3133_v11, 0  ;;  %v3069_v19 = vld [vmem:[#allocation4 + $0x20] sm:$0xf]  ;;  %v3324_v16 = vsel %vm1315_vm12, %v5846_v47, 0  ;;  %v3260_v63 = vsel %vm1243_vm8, %v5846_v47, 0  ;;  %v3258_v61 = vsel %vm1243_vm8, %v5817_v27, 0 }
 0x772   : > { %v3077_v30 = vsel %vm4791_vm10, %v3069_v19, 0  ;;  %v2949_v59 = vld [vmem:[#allocation4 + $0x20] sm:$0xf]  ;;  %v3015_v43 = vld [vmem:[#allocation4 + $0x2c] sm:$0xf]  ;;  %vm6476_vm13 = vcmask 793600  }
 0x773   : > { %3090 = vrot.lane.b32.xlu1 %v3073_v32, %s6457_s21  ;;  %v2957_v24 = vsel %vm4810_vm2, %v2949_v59, 0  ;;  %v3317_v50 = vld [vmem:[#allocation4 + $0x20] sm:$0xf]  ;;  %v5882_v37 = vld [vmem:[#allocation4 + $0x24] sm:$0xff]  ;;  %v3383_v22 = vld [vmem:[#allocation4 + $0x2c] sm:$0xf] }
 0x774   : > { %3088 = vrot.lane.b32.xlu0 %v3072_v3, %s6457_s21  ;;  %v3325_v54 = vsel %vm4819_vm0, %v3317_v50, 0  ;;  %v3135_v40 = vld [vmem:[#allocation4 + $0x2c] sm:$0xf]  ;;  %v3142_v20 = vsel %vm6467_vm5, %v5882_v37, 0  ;;  %v3315_v12 = vld [vmem:[#allocation4 + $0x14] sm:$0xf] }
 0x775   : > { %v3143_v8 = vsel %vm4782_vm15, %v3135_v40, 0  ;;  %v3071_v34 = vld [vmem:[#allocation4 + $0x2c] sm:$0xf]  ;;  %vm6468_vm15 = vmmov %vm6465_vm3  ;;  %v3323_v39 = vsel %vm4819_vm0, %v3315_v12, 0  ;;  %v3253_v56 = vld [vmem:[#allocation4 + $0x20] sm:$0xf] }
 0x776   : > { %v3079_v46 = vsel %vm4791_vm10, %v3071_v34, 0  ;;  %v2951_v1 = vld [vmem:[#allocation4 + $0x2c] sm:$0xf]  ;;  %v3078_v62 = vsel %vm6468_vm15, %v5882_v37, 0  ;;  %v3261_v53 = vsel %vm4949_vm4, %v3253_v56, 0  ;;  %vm6470_vm10 = vcmp.ne.s16.totalorder %v6378_v35, 0 }
 0x777   : > { %2970 = vrot.lane.b32.xlu1 %v2953_v38, %s6459_s16  ;;  %v2959_v14 = vsel %vm4810_vm2, %v2951_v1, 0  ;;  %v3319_v6 = vld [vmem:[#allocation4 + $0x2c] sm:$0xf]  ;;  %vm6469_vm2 = vmmov %vm6463_vm1  ;;  %v3249_v21 = vld [vmem:[#allocation4 + $0x8] sm:$0xf]  ;;  %vm6481_vm6 = vcmask 924672  }
 0x778   : > { %2968 = vrot.lane.b32.xlu0 %v2952_v26, %s6459_s16  ;;  %v3327_v58 = vsel %vm4819_vm0, %v3319_v6, 0  ;;  %v3255_v18 = vld [vmem:[#allocation4 + $0x2c] sm:$0xf]  ;;  %v2958_v3 = vsel %vm6469_vm2, %v5882_v37, 0  ;;  %v3257_v38 = vsel %vm4949_vm4, %v3249_v21, 0  ;;  %vm6471_vm0 = vcmask 1043456   ;;  %vm6479_vm14 = vmmov %vm6470_vm10 }
 0x779   : > { %v3263_v32 = vsel %vm4949_vm4, %v3255_v18, 0  ;;  %v3251_v26 = vld [vmem:[#allocation4 + $0x14] sm:$0xf]  ;;  %v3197_v42 = vld [vmem:[#allocation4 + $0x20] sm:$0xf]  ;;  %vm6475_vm7 = vmmov %vm6471_vm0  ;;  %vm6484_vm2 = vcmask 662528  }
 0x77a   : > { %v3259_v5 = vsel %vm4949_vm4, %v3251_v26, 0  ;;  %v3199_v4 = vld [vmem:[#allocation4 + $0x2c] sm:$0xf]  ;;  %vm6472_vm4 = vcmask 916480   ;;  %vm6477_vm1 = vmmov %vm6471_vm0  ;;  %v3195_v34 = vld [vmem:[#allocation4 + $0x14] sm:$0xf] }
 0x77b   : > { %3338 = vrot.lane.b32.xlu1 %v3321_v15, %s6371_s28  ;;  %v3444_v15 = vsel %vm6470_vm10, %v5846_v47, 0  ;;  %v3439_v13 = vld [vmem:[#allocation4 + $0x2c] sm:$0xf]  ;;  %v3433_v1 = vld [vmem:[#allocation4 + $0x8] sm:$0xf]  ;;  %vm6480_vm3 = vmmov %vm6471_vm0 }
 0x77c   : > { %3336 = vrot.lane.b32.xlu0 %v3320_v60, %s6371_s28  ;;  %v3447_v19 = vsel %vm4996_vm11, %v3439_v13, 0  ;;  %v3441_v12 = vsel %vm4996_vm11, %v3433_v1, 0  ;;  %vm6482_vm5 = vmmov %vm6470_vm10 }
 0x77d   : > { %vm6483_vm15 = vmmov %vm6471_vm0 }
 0x77e   : > { %vm6485_vm10 = vmmov %vm6482_vm5 }
 0x77f   : > { %3030 = vrot.lane.b32.xlu1 %v3011_v31, %s4414_s20 }
 0x780   : > { %3028 = vrot.lane.b32.xlu0 %v5817_v27, %s4414_s20 }
 0x783   : > { %3398 = vrot.lane.b32.xlu1 %v3379_v52, %s4413_s24 }
 0x784   : > { %3396 = vrot.lane.b32.xlu0 %v5817_v27, %s4413_s24 }
 0x787   : > { %3158 = vrot.lane.b32.xlu1 %v3139_v44, %s6455_s17  ;;  %v3326_v44 = vsel %vm1315_vm12, %v5882_v37, 0  ;;  %vm6473_vm12 = vmmov %vm6471_vm0 }
 0x788   : > { %3156 = vrot.lane.b32.xlu0 %v3138_v10, %s6455_s17  ;;  %v3437_v10 = vld [vmem:[#allocation4 + $0x20] sm:$0xf] }
 0x78b   : > { %3094 = vrot.lane.b32.xlu1 %v3075_v0, %s6457_s21 }
 0x78c   : > { %3092 = vrot.lane.b32.xlu0 %v3074_v28, %s6457_s21 }
 0x78f   : > { %2974 = vrot.lane.b32.xlu1 %v2955_v17, %s6459_s16 }
 0x790   : > { %2972 = vrot.lane.b32.xlu0 %v2954_v9, %s6459_s16  ;;  %v3445_v9 = vsel %vm4996_vm11, %v3437_v10, 0 }
 0x793   : > { %3034 = vrot.lane.b32.xlu1 %v3013_v36, %s4414_s20 }
 0x794   : > { %3032 = vrot.lane.b32.xlu0 %v5846_v47, %s4414_s20 }
 0x797   : > { %3402 = vrot.lane.b32.xlu1 %v3381_v29, %s4413_s24 }
 0x798   : > { %3400 = vrot.lane.b32.xlu0 %v5846_v47, %s4413_s24 }
 0x79b   : > { %3162 = vrot.lane.b32.xlu1 %v3141_v7, %s6455_s17 }
 0x79c   : > { %3160 = vrot.lane.b32.xlu0 %v3140_v33, %s6455_s17 }
 0x79f   : > { %3098 = vrot.lane.b32.xlu1 %v3077_v30, %s6457_s21 }
 0x7a0   : > { %3096 = vrot.lane.b32.xlu0 %v3076_v55, %s6457_s21  ;;  %v3262_v55 = vsel %vm1243_vm8, %v5882_v37, 0  ;;  %vm6478_vm8 = vcmask 908288  }
 0x7a3   : > { %2978 = vrot.lane.b32.xlu1 %v2957_v24, %s6459_s16 }
 0x7a4   : > { %2976 = vrot.lane.b32.xlu0 %v2956_v49, %s6459_s16 }
 0x7a7   : > { %3346 = vrot.lane.b32.xlu1 %v3325_v54, %s6371_s28 }
 0x7a8   : > { %3344 = vrot.lane.b32.xlu0 %v3324_v16, %s6371_s28  ;;  %v3193_v16 = vld [vmem:[#allocation4 + $0x8] sm:$0xf] }
 0x7ab   : > { %3038 = vrot.lane.b32.xlu1 %v3015_v43, %s4414_s20 }
 0x7ac   : > { %3036 = vrot.lane.b32.xlu0 %v5882_v37, %s4414_s20 }
 0x7af   : > { %3406 = vrot.lane.b32.xlu1 %v3383_v22, %s4413_s24 }
 0x7b0   : > { %3404 = vrot.lane.b32.xlu0 %v5882_v37, %s4413_s24 }
 0x7b3   : > { %3166 = vrot.lane.b32.xlu1 %v3143_v8, %s6455_s17 }
 0x7b4   : > { %3164 = vrot.lane.b32.xlu0 %v3142_v20, %s6455_s17 }
 0x7b7   : > { %3102 = vrot.lane.b32.xlu1 %v3079_v46, %s6457_s21 }
 0x7b8   : > { %3340 = vrot.lane.b32.xlu0 %v3322_v25, %s6371_s28  ;;  %v3440_v25 = vsel %vm6479_vm14, %v5775_v23, 0  ;;  %vm6495_vm14 = vmmov %vm6481_vm6 }
 0x7bb   : > { %2982 = vrot.lane.b32.xlu1 %v2959_v14, %s6459_s16 }
 0x7bc   : > { %3100 = vrot.lane.b32.xlu0 %v3078_v62, %s6457_s21 }
 0x7bf   : > { %3350 = vrot.lane.b32.xlu1 %v3327_v58, %s6371_s28 }
 0x7c0   : > { %3280 = vrot.lane.b32.xlu0 %v3260_v63, %s6374_s15 }
 0x7c3   : > { %3342 = vrot.lane.b32.xlu1 %v3323_v39, %s6371_s28 }
 0x7c4   : > { %3272 = vrot.lane.b32.xlu0 %v3256_v2, %s6374_s15  ;;  %v3435_v2 = vld [vmem:[#allocation4 + $0x14] sm:$0xf] }
 0x7c7   : > { %3282 = vrot.lane.b32.xlu1 %v3261_v53, %s6374_s15 }
 0x7c8   : > { %3276 = vrot.lane.b32.xlu0 %v3258_v61, %s6374_s15 }
 0x7cb   : > { %3286 = vrot.lane.b32.xlu1 %v3263_v32, %s6374_s15 }
 0x7cc   : > { %2980 = vrot.lane.b32.xlu0 %v2958_v3, %s6459_s16  ;;  %v3443_v3 = vsel %vm4996_vm11, %v3435_v2, 0  ;;  %vm6487_vm11 = vmmov %vm6472_vm4 }
 0x7cf   : > { %3274 = vrot.lane.b32.xlu1 %v3257_v38, %s6374_s15  ;;  %v4423_v38 = vmov 1983009808  }
 0x7d0   : > { %3216 = vrot.lane.b32.xlu0 %v5846_v47, %s6376_s19  ;;  %v3540_v26 = vunpack.c.l.s4 %v4423_v38 }
 0x7d3   : > { %3278 = vrot.lane.b32.xlu1 %v3259_v5, %s6374_s15  ;;  %v6486_v5 = vlaneseq }
 0x7d4   : > { %3220 = vrot.lane.b32.xlu0 %v5882_v37, %s6376_s19 }
 0x7d7   : > { %3218 = vrot.lane.b32.xlu1 %v3197_v42, %s6376_s19  ;;  %v3543_v42 = vshrl.u32 %v6486_v5, 7 }
 0x7d8   : > { %3464 = vrot.lane.b32.xlu0 %v3444_v15, %s6332_s1 }
 0x7d9   : > { %v3027_v60 = vpop.permute.xlu1 %3026 }
 0x7da   : > { %v3041_v31 = vrot.slane %v3027_v60, 4  ;;  %v3025_v52 = vpop.permute.xlu0 %3024 }
 0x7db   : > { %v3040_v45 = vrot.slane %v3025_v52, 4  ;;  %3222 = vrot.lane.b32.xlu1 %v3199_v4, %s6376_s19  ;;  %v3821_v4 = vld [vmem:[#allocation3] sm:$0xff] }
 0x7dc   : > { %3348 = vrot.lane.b32.xlu0 %v3326_v44, %s6371_s28  ;;  %v3541_v44 = vunpack.c.0.s8 %v3540_v26 }
 0x7dd   : > { %v3048_v51 = vsel %vm6471_vm0, %v3040_v45, %v3041_v31  ;;  %v3395_v0 = vpop.permute.xlu1 %3394  ;;  %v2942_v31 = vld [vmem:[%s6238_s7] sm:$0x3f] }
 0x7de   : > { %v5960_v28 = vsel %vm6472_vm4, %v3025_v52, %v3048_v51  ;;  %v3409_v57 = vrot.slane %v3395_v0, 4  ;;  %v3393_v17 = vpop.permute.xlu0 %3392  ;;  %v3538_v45 = vcombine.high %v2942_v31, %v2942_v31  ;;  %vm6488_vm4 = vmmov %vm6471_vm0 }
 0x7df   : > { %3060 = vst [vmem:[#allocation2 + $0x108] sm:$0xff] %v5960_v28  ;;  %v3408_v36 = vrot.slane %v3393_v17, 4  ;;  %3466 = vrot.lane.b32.xlu1 %v3445_v9, %s6332_s1  ;;  %v3825_v9 = vcombine.high %v3821_v4, %v3821_v4 }
 0x7e0   : > { %3208 = vrot.lane.b32.xlu0 %v5775_v23, %s6376_s19  ;;  %v3446_v23 = vsel %vm6482_vm5, %v5882_v37, 0  ;;  %v3442_v37 = vsel %vm6485_vm10, %v5817_v27, 0  ;;  %vm6498_vm5 = vmmov %vm6471_vm0 }
 0x7e1   : > { %v3416_v47 = vsel %vm6473_vm12, %v3408_v36, %v3409_v57  ;;  %v3155_v29 = vpop.permute.xlu1 %3154  ;;  %v3544_v57 = vsub.s32 %v3541_v44, %v3543_v42  ;;  %vm6489_vm12 = vmmov %vm6474_vm9 }
 0x7e2   : > { %v5970_v11 = vsel %vm6474_vm9, %v3393_v17, %v3416_v47  ;;  %v3169_v7 = vrot.slane %v3155_v29, 4  ;;  %v3153_v33 = vpop.permute.xlu0 %3152  ;;  %vm6490_vm9 = vmmov %vm6471_vm0 }
 0x7e3   : > { %v3168_v30 = vrot.slane %v3153_v33, 4  ;;  %3470 = vrot.lane.b32.xlu1 %v3447_v19, %s6332_s1  ;;  %v6040_v19 = vrot.slane %v3538_v45, %v3544_v57 }
 0x7e4   : > { %3284 = vrot.lane.b32.xlu0 %v3262_v55, %s6374_s15 }
 0x7e5   : > { %v3176_v59 = vsel %vm6475_vm7, %v3168_v30, %v3169_v7  ;;  %v3091_v24 = vpop.permute.xlu1 %3090  ;;  %v3822_v7 = vld [vmem:[#allocation3 + $0x8] sm:$0xf]  ;;  %vm6491_vm7 = vmmov %vm6476_vm13 }
 0x7e6   : > { %v5981_v49 = vsel %vm6476_vm13, %v3153_v33, %v3176_v59  ;;  %v3105_v50 = vrot.slane %v3091_v24, 4  ;;  %v3089_v54 = vpop.permute.xlu0 %3088  ;;  %v6038_v33 = vrot.slane %v2942_v31, %v3544_v57  ;;  %vm6492_vm13 = vmmov %vm6471_vm0 }
 0x7e7   : > { %v3104_v43 = vrot.slane %v3089_v54, 4  ;;  %3210 = vrot.lane.b32.xlu1 %v3193_v16, %s6376_s19  ;;  %vm6501_vm10 = vmmov %vm6491_vm7 }
 0x7e8   : > { %3212 = vrot.lane.b32.xlu0 %v5817_v27, %s6376_s19  ;;  %v3553_v24 = vcombine.high %v6038_v33, %v6038_v33 }
 0x7e9   : > { %v3112_v48 = vsel %vm6477_vm1, %v3104_v43, %v3105_v50  ;;  %v2971_v22 = vpop.permute.xlu1 %2970  ;;  %vm6493_vm1 = vmmov %vm6478_vm8 }
 0x7ea   : > { %v5988_v40 = vsel %vm6478_vm8, %v3089_v54, %v3112_v48  ;;  %v2985_v8 = vrot.slane %v2971_v22, 4  ;;  %v2969_v20 = vpop.permute.xlu0 %2968  ;;  %3771 = vmatprep.mubr.bf16.mxu1 %v3553_v24  ;;  %vm6494_vm8 = vmmov %vm6471_vm0 }
 0x7eb   : > { %v2984_v46 = vrot.slane %v2969_v20, 4  ;;  %3214 = vrot.lane.b32.xlu1 %v3195_v34, %s6376_s19 }
 0x7ec   : > { %3456 = vrot.lane.b32.xlu0 %v3440_v25, %s6332_s1 }
 0x7ed   : > { %v2992_v14 = vsel %vm6480_vm3, %v2984_v46, %v2985_v8  ;;  %v3339_v62 = vpop.permute.xlu1 %3338  ;;  %vm6496_vm3 = vmmov %vm6471_vm0 }
 0x7ee   : > { %v5997_v6 = vsel %vm6481_vm6, %v2969_v20, %v2992_v14  ;;  %v3353_v58 = vrot.slane %v3339_v62, 4  ;;  %v3337_v63 = vpop.permute.xlu0 %3336  ;;  %vm6497_vm6 = vmmov %vm6487_vm11 }
 0x7ef   : > { %3004 = vst [vmem:[#allocation2 + $0xb0] sm:$0xff] %v5997_v6  ;;  %v3352_v39 = vrot.slane %v3337_v63, 4  ;;  %3458 = vrot.lane.b32.xlu1 %v3441_v12, %s6332_s1 }
 0x7f0   : > { %3468 = vrot.lane.b32.xlu0 %v3446_v23, %s6332_s1 }
 0x7f1   : > { %v3360_v56 = vsel %vm6483_vm15, %v3352_v39, %v3353_v58  ;;  %v3031_v53 = vpop.permute.xlu1 %3030  ;;  %vm6499_vm15 = vmmov %vm6489_vm12 }
 0x7f2   : > { %v6009_v61 = vsel %vm6484_vm2, %v3337_v63, %v3360_v56  ;;  %v3043_v18 = vrot.slane %v3031_v53, 4  ;;  %v3029_v32 = vpop.permute.xlu0 %3028  ;;  %vm6500_vm2 = vmmov %vm6471_vm0 }
 0x7f3   : > { %v3042_v21 = vrot.slane %v3029_v32, 4  ;;  %3462 = vrot.lane.b32.xlu1 %v3443_v3, %s6332_s1 }
 0x7f4   : > { %3460 = vrot.lane.b32.xlu0 %v3442_v37, %s6332_s1  ;;  %s4140_s1 = sshll.u32 %s4496_s13, 7  ;;  %s4424_s13 = smov [#allocation11]  }
 0x7f5   : > { %v3050_v15 = vsel %vm6471_vm0, %v3042_v21, %v3043_v18  ;;  %v3399_v60 = vpop.permute.xlu1 %3398  ;;  %s3857_s23 = scalar_lea.hbm %s6240_s9, %s4140_s1  ;;  %s4335_s21 = sshll.u32 %s4424_s13, 4  ;;  %s4336_s21 = int_to_ptr.vmem [resolvable:$false] %s4335_s21 }
 0x7f6   : > { %v6027_v35 = vsel %vm6487_vm11, %v3029_v32, %v3050_v15  ;;  %v3411_v27 = vrot.slane %v3399_v60, 4  ;;  %v3397_v52 = vpop.permute.xlu0 %3396  ;;  %vm6502_vm11 = vmmov %vm6493_vm1  ;;  %s4337_s16 = scalar_lea.vmem %s4336_s21, 256 }
 0x7f7   : > { %v3410_v10 = vrot.slane %v3397_v52, 4  ;;  %3826 = vrot.lane.b32.xlu1 %v3821_v4, %s6376_s19  ;;  %v4077_v51 = vcombine.low %v5960_v28, %v6027_v35  ;;  %v4078_v0 = vcombine.high %v5960_v28, %v6027_v35 }
 0x7f8   : > { %3534 = vperm.xlu0 %4250, %v2943_v41  }
 0x7f9   : > { %v3418_v17 = vsel %vm6488_vm4, %v3410_v10, %v3411_v27  ;;  %v3159_v36 = vpop.permute.xlu1 %3158  ;;  %vm6503_vm4 = vmmov %vm6471_vm0 }
 0x7fa   : > { %v6036_v13 = vsel %vm6489_vm12, %v3397_v52, %v3418_v17  ;;  %v3171_v47 = vrot.slane %v3159_v36, 4  ;;  %v3157_v29 = vpop.permute.xlu0 %3156  ;;  %vm6504_vm12 = vmmov %vm6495_vm14 }
 0x7fb   : > { %v3170_v30 = vrot.slane %v3157_v29, 4  ;;  %3830 = vrot.lane.b32.xlu1 %v3822_v7, %s6376_s19  ;;  %v4101_v55 = vcombine.low %v5970_v11, %v6036_v13  ;;  %v4102_v59 = vcombine.high %v5970_v11, %v6036_v13 }
 0x7fc   : > { %3828 = vrot.lane.b32.xlu0 %v3825_v9, %s6376_s19  ;;  %s6545_s19 = sshll.u32 %s4582_s26, 3 }
 0x7fd   : > { %v3178_v50 = vsel %vm6490_vm9, %v3170_v30, %v3171_v47  ;;  %v3095_v54 = vpop.permute.xlu1 %3094  ;;  %vm6505_vm9 = vmmov %vm6471_vm0  ;;  %s363_s27 = scalar_lea.vmem [#allocation11], %s6545_s19 }
 0x7fe   : > { %v6052_v16 = vsel %vm6491_vm7, %v3157_v29, %v3178_v50  ;;  %v3107_v43 = vrot.slane %v3095_v54, 4  ;;  %v3093_v48 = vpop.permute.xlu0 %3092  ;;  %vm6506_vm7 = vcmask 662528   ;;  %s3859_s22 = sshll.u32 %s363_s27, 4  ;;  %s3860_s22 = int_to_ptr.vmem [resolvable:$true] %s3859_s22 }
 0x7ff   : > { %v3106_v22 = vrot.slane %v3093_v48, 4  ;;  %s4331_s17 = scalar_lea.vmem %s3860_s22, 128  ;;  %p4338_p10 = scmp.lt.s32.totalorder %s3860_s22, %s4336_s21 }
 0x800   : > { %p4332_p8 = scmp.ne.s32.totalorder %s3860_s22, %s4331_s17  ;;  %p4339_p2 = scmp.lt.s32.totalorder %s4337_s16, %s4331_s17 }
 0x801   : > { %v3114_v8 = vsel %vm6492_vm13, %v3106_v22, %v3107_v43  ;;  %v2975_v20 = vpop.permute.xlu1 %2974  ;;  %vm6507_vm13 = vmmov %vm6471_vm0 }
 0x802   : > { %v6056_v34 = vsel %vm6493_vm1, %v3093_v48, %v3114_v8  ;;  %v2987_v46 = vrot.slane %v2975_v20, 4  ;;  %v2973_v25 = vpop.permute.xlu0 %2972  ;;  %vm6508_vm1 = vmmov %vm6497_vm6  ;;  %p4333_p11 = pnand %p4332_p8, %p6546_p3  ;;  %p4340_p13 = por %p4339_p2, %p4338_p10 }
 0x803   : > { %v2986_v1 = vrot.slane %v2973_v25, 4 }
 0x804   : > { %p4334_p7 = pneg %p4333_p11 }
 0x805   : > { %v2994_v14 = vsel %vm6494_vm8, %v2986_v1, %v2987_v46  ;;  %v3035_v62 = vpop.permute.xlu1 %3034  ;;  %vm6509_vm8 = vmmov %vm6471_vm0 }
 0x806   : > { %v6060_v58 = vsel %vm6495_vm14, %v2973_v25, %v2994_v14  ;;  %v3045_v63 = vrot.slane %v3035_v62, 4  ;;  %v3033_v12 = vpop.permute.xlu0 %3032  ;;  %vm6510_vm14 = vmmov %vm6499_vm15  ;;  %p4341_p0 = pnand %p4340_p13, %p4334_p7 }
 0x807   : > { %3005 = vst [vmem:[#allocation2 + $0xd0] sm:$0xff] %v6060_v58  ;;  %v3044_v39 = vrot.slane %v3033_v12, 4  ;;  %v4073_v23 = vcombine.low %v5997_v6, %v6060_v58 }
 0x809   : > { %v3052_v2 = vsel %vm6496_vm3, %v3044_v39, %v3045_v63  ;;  %v3403_v56 = vpop.permute.xlu1 %3402  ;;  %vm6511_vm3 = vmmov %vm6471_vm0 }
 0x80a   : > { %v6067_v53 = vsel %vm6497_vm6, %v3033_v12, %v3052_v2  ;;  %v3413_v18 = vrot.slane %v3403_v56, 4  ;;  %v3401_v32 = vpop.permute.xlu0 %3400  ;;  %vm6512_vm6 = vmmov %vm6501_vm10 }
 0x80b   : > { %v3412_v3 = vrot.slane %v3401_v32, 4 }
 0x80d   : > { %v3420_v21 = vsel %vm6498_vm5, %v3412_v3, %v3413_v18  ;;  %v3163_v37 = vpop.permute.xlu1 %3162  ;;  %vm6513_vm5 = vmmov %vm6471_vm0 }
 0x80e   : > { %v6071_v38 = vsel %vm6499_vm15, %v3401_v32, %v3420_v21  ;;  %v3173_v26 = vrot.slane %v3163_v37, 4  ;;  %v3161_v5 = vpop.permute.xlu0 %3160  ;;  %vm6514_vm15 = vmmov %vm6502_vm11 }
 0x80f   : > { %v3172_v42 = vrot.slane %v3161_v5, 4 }
 0x811   : > { %v3180_v15 = vsel %vm6500_vm2, %v3172_v42, %v3173_v26  ;;  %v3099_v60 = vpop.permute.xlu1 %3098  ;;  %v4086_v42 = vcombine.high %v5981_v49, %v6052_v16  ;;  %vm6515_vm2 = vmmov %vm6471_vm0 }
 0x812   : > { %v3181_v41 = vsel %vm6501_vm10, %v3161_v5, %v3180_v15  ;;  %v3109_v31 = vrot.slane %v3099_v60, 4  ;;  %v3097_v27 = vpop.permute.xlu0 %3096  ;;  %vm6516_vm10 = vmmov %vm6506_vm7 }
 0x813   : > { %v3108_v52 = vrot.slane %v3097_v27, 4 }
 0x815   : > { %v3116_v4 = vsel %vm6471_vm0, %v3108_v52, %v3109_v31  ;;  %v2979_v45 = vpop.permute.xlu1 %2978 }
 0x816   : > { %v3117_v44 = vsel %vm6502_vm11, %v3097_v27, %v3116_v4  ;;  %v2989_v10 = vrot.slane %v2979_v45, 4  ;;  %v2977_v57 = vpop.permute.xlu0 %2976  ;;  %v4085_v27 = vcombine.low %v5981_v49, %v6052_v16  ;;  %v4081_v16 = vcombine.low %v5988_v40, %v6056_v34 }
 0x817   : > { %v2988_v17 = vrot.slane %v2977_v57, 4  ;;  %vm6517_vm11 = vcmask 777216  }
 0x819   : > { %v2996_v9 = vsel %vm6503_vm4, %v2988_v17, %v2989_v10  ;;  %v3347_v36 = vpop.permute.xlu1 %3346  ;;  %vm6518_vm4 = vmmov %vm6471_vm0 }
 0x81a   : > { %v6079_v47 = vsel %vm6504_vm12, %v2977_v57, %v2996_v9  ;;  %v3357_v29 = vrot.slane %v3347_v36, 4  ;;  %v3345_v7 = vpop.permute.xlu0 %3344  ;;  %v4082_v9 = vcombine.high %v5988_v40, %v6056_v34 }
 0x81b   : > { %3006 = vst [vmem:[#allocation2 + $0x10] sm:$0xff] %v6079_v47  ;;  %v3356_v30 = vrot.slane %v3345_v7, 4 }
 0x81d   : > { %v3364_v24 = vsel %vm6505_vm9, %v3356_v30, %v3357_v29  ;;  %v3039_v50 = vpop.permute.xlu1 %3038  ;;  %vm6519_vm9 = vmmov %vm6471_vm0 }
 0x81e   : > { %v6084_v54 = vsel %vm6506_vm7, %v3345_v7, %v3364_v24  ;;  %v3047_v43 = vrot.slane %v3039_v50, 4  ;;  %v3037_v48 = vpop.permute.xlu0 %3036  ;;  %vm6520_vm7 = vmmov %vm6517_vm11 }
 0x81f   : > { %v3046_v22 = vrot.slane %v3037_v48, 4 }
 0x821   : > { %v3054_v8 = vsel %vm6507_vm13, %v3046_v22, %v3047_v43  ;;  %v3407_v20 = vpop.permute.xlu1 %3406  ;;  %vm6521_vm13 = vmmov %vm6471_vm0 }
 0x822   : > { %v3055_v46 = vsel %vm6508_vm1, %v3037_v48, %v3054_v8  ;;  %v3415_v25 = vrot.slane %v3407_v20, 4  ;;  %v3405_v1 = vpop.permute.xlu0 %3404  ;;  %vm6522_vm1 = vmmov %vm6520_vm7 }
 0x823   : > { %v3414_v14 = vrot.slane %v3405_v1, 4  ;;  %v4079_v8 = vcombine.low %v6067_v53, %v3055_v46 }
 0x825   : > { %v3422_v62 = vsel %vm6509_vm8, %v3414_v14, %v3415_v25  ;;  %v3167_v63 = vpop.permute.xlu1 %3166  ;;  %vm6523_vm8 = vmmov %vm6471_vm0 }
 0x826   : > { %v6090_v12 = vsel %vm6510_vm14, %v3405_v1, %v3422_v62  ;;  %v3175_v39 = vrot.slane %v3167_v63, 4  ;;  %v3165_v2 = vpop.permute.xlu0 %3164  ;;  %vm6524_vm14 = vcmask 785408  }
 0x827   : > { %v3174_v56 = vrot.slane %v3165_v2, 4 }
 0x829   : > { %v3182_v18 = vsel %vm6511_vm3, %v3174_v56, %v3175_v39  ;;  %v3103_v32 = vpop.permute.xlu1 %3102  ;;  %vm6525_vm3 = vmmov %vm6471_vm0 }
 0x82a   : > { %v3183_v3 = vsel %vm6512_vm6, %v3165_v2, %v3182_v18  ;;  %v3341_v21 = vpop.permute.xlu0 %3340  ;;  %v3111_v60 = vrot.slane %v3103_v32, 4  ;;  %vm6526_vm6 = vmmov %vm6524_vm14 }
 0x82b   : > { %v4087_v37 = vcombine.low %v3181_v41, %v3183_v3  ;;  %v4088_v26 = vcombine.high %v3181_v41, %v3183_v3  ;;  %v3354_v36 = vrot.slane %v3341_v21, 4  ;;  %v4074_v3 = vcombine.high %v5997_v6, %v6060_v58 }
 0x82d   : > { %v2983_v5 = vpop.permute.xlu1 %2982  ;;  %3739 = vmatprep.subr.bf16.mxu1 %v4088_v26 }
 0x82e   : > { %v3101_v15 = vpop.permute.xlu0 %3100  ;;  %3740 = vmatpush1.bf16.msra.mxu1 %v4087_v37  ;;  %v2991_v34 = vrot.slane %v2983_v5, 4 }
 0x82f   : > { %v3110_v31 = vrot.slane %v3101_v15, 4  ;;  %3741 = vmatprep.subr.bf16.mxu1 %v4086_v42 }
 0x831   : > { %v3118_v52 = vsel %vm6513_vm5, %v3110_v31, %v3111_v60  ;;  %v6099_v4 = vpop.permute.xlu1 %3350  ;;  %v4103_v31 = vcombine.low %v6071_v38, %v6090_v12  ;;  %vm6527_vm5 = vmmov %vm6471_vm0 }
 0x832   : > { %v3119_v45 = vsel %vm6514_vm15, %v3101_v15, %v3118_v52  ;;  %v3281_v41 = vpop.permute.xlu0 %3280  ;;  %3742 = vmatpush1.bf16.msra.mxu1 %v4085_v27  ;;  %vm6528_vm15 = vmmov %vm6516_vm10 }
 0x833   : > { %v4083_v10 = vcombine.low %v3117_v44, %v3119_v45  ;;  %v4084_v57 = vcombine.high %v3117_v44, %v3119_v45  ;;  %v4080_v44 = vcombine.high %v6067_v53, %v3055_v46  ;;  %v3292_v50 = vrot.slane %v3281_v41, 4 }
 0x835   : > { %v3343_v17 = vpop.permute.xlu1 %3342  ;;  %3743 = vmatprep.subr.bf16.mxu1 %v4084_v57  ;;  %v3359_v57 = vrot.slane %v6099_v4, 4 }
 0x836   : > { %v3355_v29 = vrot.slane %v3343_v17, 4  ;;  %v3273_v7 = vpop.permute.xlu0 %3272  ;;  %3744 = vmatpush1.bf16.msra.mxu1 %v4083_v10 }
 0x837   : > { %3745 = vmatprep.subr.bf16.mxu1 %v4082_v9  ;;  %v3288_v63 = vrot.slane %v3273_v7, 4 }
 0x838   : > { %v3362_v49 = vsel %vm6515_vm2, %v3354_v36, %v3355_v29  ;;  %vm6529_vm2 = vmmov %vm6471_vm0 }
 0x839   : > { %v6108_v30 = vsel %vm6516_vm10, %v3341_v21, %v3362_v49  ;;  %v3283_v24 = vpop.permute.xlu1 %3282  ;;  %vm6530_vm10 = vcmask 646144  }
 0x83a   : > { %v3293_v43 = vrot.slane %v3283_v24, 4  ;;  %v3277_v48 = vpop.permute.xlu0 %3276  ;;  %3746 = vmatpush1.bf16.msra.mxu1 %v4081_v16  ;;  %v4098_v24 = vcombine.high %v6009_v61, %v6108_v30  ;;  %v4097_v11 = vcombine.low %v6009_v61, %v6108_v30 }
 0x83b   : > { %3747 = vmatprep.subr.bf16.mxu1 %v4080_v44  ;;  %v3290_v21 = vrot.slane %v3277_v48, 4 }
 0x83c   : > { %v3300_v22 = vsel %vm6471_vm0, %v3292_v50, %v3293_v43 }
 0x83d   : > { %v6114_v20 = vsel %vm6517_vm11, %v3281_v41, %v3300_v22  ;;  %v6116_v25 = vpop.permute.xlu1 %3286  ;;  %vm6531_vm11 = vmmov %vm6522_vm1 }
 0x83e   : > { %v2981_v40 = vpop.permute.xlu0 %2980  ;;  %3748 = vmatpush1.bf16.msra.mxu1 %v4079_v8  ;;  %v3295_v50 = vrot.slane %v6116_v25, 4 }
 0x83f   : > { %v2990_v1 = vrot.slane %v2981_v40, 4  ;;  %3749 = vmatprep.subr.bf16.mxu1 %v4078_v0 }
 0x841   : > { %v2998_v14 = vsel %vm6518_vm4, %v2990_v1, %v2991_v34  ;;  %v3275_v62 = vpop.permute.xlu1 %3274  ;;  %vm6532_vm4 = vmmov %vm6471_vm0 }
 0x842   : > { %v2999_v39 = vsel %vm6504_vm12, %v2981_v40, %v2998_v14  ;;  %v3289_v53 = vrot.slane %v3275_v62, 4  ;;  %v3217_v46 = vpop.permute.xlu0 %3216  ;;  %3750 = vmatpush1.bf16.msra.mxu1 %v4077_v51  ;;  %vm6533_vm12 = vmmov %vm6526_vm6 }
 0x843   : > { %3007 = vst [vmem:[#allocation2 + $0x48] sm:$0xff] %v2999_v39  ;;  %v4075_v2 = vcombine.low %v6079_v47, %v2999_v39  ;;  %v4076_v56 = vcombine.high %v6079_v47, %v2999_v39  ;;  %v4104_v47 = vcombine.high %v6071_v38, %v6090_v12  ;;  %v3228_v5 = vrot.slane %v3217_v46, 4 }
 0x844   : > { %v3296_v18 = vsel %vm6519_vm9, %v3288_v63, %v3289_v53  ;;  %vm6534_vm9 = vmmov %vm6471_vm0 }
 0x845   : > { %v6130_v0 = vsel %vm6520_vm7, %v3273_v7, %v3296_v18  ;;  %v3279_v32 = vpop.permute.xlu1 %3278  ;;  %3751 = vmatprep.subr.bf16.mxu1 %v4076_v56  ;;  %vm6535_vm7 = vmmov %vm6526_vm6 }
 0x846   : > { %v3291_v37 = vrot.slane %v3279_v32, 4  ;;  %v3221_v26 = vpop.permute.xlu0 %3220  ;;  %3752 = vmatpush1.bf16.msra.mxu1 %v4075_v2 }
 0x847   : > { %3753 = vmatprep.subr.bf16.mxu1 %v4074_v3  ;;  %v3230_v45 = vrot.slane %v3221_v26, 4 }
 0x848   : > { %v3298_v28 = vsel %vm6521_vm13, %v3290_v21, %v3291_v37  ;;  %vm6536_vm13 = vmmov %vm6471_vm0 }
 0x849   : > { %v6136_v35 = vsel %vm6522_vm1, %v3277_v48, %v3298_v28  ;;  %v3219_v51 = vpop.permute.xlu1 %3218  ;;  %vm6537_vm1 = vmmov %vm6530_vm10 }
 0x84a   : > { %v3229_v42 = vrot.slane %v3219_v51, 4  ;;  %v3465_v15 = vpop.permute.xlu0 %3464  ;;  %3754 = vmatpush1.bf16.msra.mxu1 %v4073_v23  ;;  %v4094_v61 = vcombine.high %v6130_v0, %v6136_v35  ;;  %v4093_v53 = vcombine.low %v6130_v0, %v6136_v35 }
 0x84b   : > { %3755 = vmatprep.subr.bf16.mxu1 %v4104_v47  ;;  %v3476_v12 = vrot.slane %v3465_v15, 4 }
 0x84c   : > { %v3236_v60 = vsel %vm6523_vm8, %v3228_v5, %v3229_v42  ;;  %vm6538_vm8 = vmmov %vm6471_vm0 }
 0x84d   : > { %v6147_v27 = vsel %vm6524_vm14, %v3217_v46, %v3236_v60  ;;  %v3223_v52 = vpop.permute.xlu1 %3222  ;;  %vm6539_vm14 = vmmov %vm6537_vm1 }
 0x84e   : > { %v3231_v41 = vrot.slane %v3223_v52, 4  ;;  %v3349_v10 = vpop.permute.xlu0 %3348  ;;  %3756 = vmatpush2.bf16.msra.mxu1 %v4103_v31 }
 0x84f   : > { %v3358_v17 = vrot.slane %v3349_v10, 4  ;;  %3757 = vmatprep.subr.bf16.mxu1 %v4102_v59 }
 0x850   : > { %v3238_v6 = vsel %vm6525_vm3, %v3230_v45, %v3231_v41  ;;  %vm6540_vm3 = vmmov %vm6471_vm0 }
 0x851   : > { %v3239_v58 = vsel %vm6526_vm6, %v3221_v26, %v3238_v6  ;;  %v3366_v23 = vsel %vm6527_vm5, %v3358_v17, %v3359_v57  ;;  %v3467_v38 = vpop.permute.xlu1 %3466  ;;  %vm6541_vm6 = vmmov %vm6537_vm1  ;;  %vm6542_vm5 = vcmask 261120  }
 0x852   : > { %v3367_v9 = vsel %vm6528_vm15, %v3349_v10, %v3366_v23  ;;  %v3477_v36 = vrot.slane %v3467_v38, 4  ;;  %v3209_v29 = vpop.permute.xlu0 %3208  ;;  %3758 = vmatpush2.bf16.msra.mxu1 %v4101_v55  ;;  %v4092_v2 = vcombine.high %v6147_v27, %v3239_v58  ;;  %v4091_v26 = vcombine.low %v6147_v27, %v3239_v58  ;;  %vm6543_vm15 = vmmov %vm6535_vm7 }
 0x853   : > { %v4099_v4 = vcombine.low %v6084_v54, %v3367_v9  ;;  %v4100_v59 = vcombine.high %v6084_v54, %v3367_v9  ;;  %v3224_v54 = vrot.slane %v3209_v29, 4 }
 0x854   : > { %v3484_v7 = vsel %vm6529_vm2, %v3476_v12, %v3477_v36  ;;  %vm6544_vm2 = vmmov %vm6535_vm7 }
 0x855   : > { %v3485_v49 = vsel %vm6530_vm10, %v3465_v15, %v3484_v7  ;;  %v3471_v16 = vpop.permute.xlu1 %3470  ;;  %3759 = vmatprep.subr.bf16.mxu1 %v4100_v59 }
 0x856   : > { %v3285_v44 = vpop.permute.xlu0 %3284  ;;  %3760 = vmatpush2.bf16.msra.mxu1 %v4099_v4  ;;  %v3479_v3 = vrot.slane %v3471_v16, 4 }
 0x857   : > { %v3294_v43 = vrot.slane %v3285_v44, 4  ;;  %3761 = vmatprep.subr.bf16.mxu1 %v4098_v24 }
 0x859   : > { %v3302_v13 = vsel %vm6471_vm0, %v3294_v43, %v3295_v50  ;;  %v3211_v55 = vpop.permute.xlu1 %3210 }
 0x85a   : > { %v3303_v48 = vsel %vm6531_vm11, %v3285_v44, %v3302_v13  ;;  %v3225_v22 = vrot.slane %v3211_v55, 4  ;;  %v3213_v8 = vpop.permute.xlu0 %3212  ;;  %3762 = vmatpush2.bf16.msra.mxu1 %v4097_v11 }
 0x85b   : > { %v4095_v40 = vcombine.low %v6114_v20, %v3303_v48  ;;  %v4096_v34 = vcombine.high %v6114_v20, %v3303_v48  ;;  %v3226_v30 = vrot.slane %v3213_v8, 4 }
 0x85c   : > { %v3232_v25 = vsel %vm6532_vm4, %v3224_v54, %v3225_v22 }
 0x85d   : > { %v3233_v1 = vsel %vm6533_vm12, %v3209_v29, %v3232_v25  ;;  %v3215_v14 = vpop.permute.xlu1 %3214  ;;  %3763 = vmatprep.subr.bf16.mxu1 %v4096_v34 }
 0x85e   : > { %v3227_v62 = vrot.slane %v3215_v14, 4  ;;  %v3457_v63 = vpop.permute.xlu0 %3456  ;;  %3764 = vmatpush2.bf16.msra.mxu1 %v4095_v40 }
 0x85f   : > { %3765 = vmatprep.subr.bf16.mxu1 %v4094_v61  ;;  %v3472_v56 = vrot.slane %v3457_v63, 4 }
 0x860   : > { %v3234_v39 = vsel %vm6534_vm9, %v3226_v30, %v3227_v62 }
 0x861   : > { %v3235_v20 = vsel %vm6535_vm7, %v3213_v8, %v3234_v39  ;;  %v3459_v46 = vpop.permute.xlu1 %3458 }
 0x862   : > { %v3473_v18 = vrot.slane %v3459_v46, 4  ;;  %v3469_v32 = vpop.permute.xlu0 %3468  ;;  %3766 = vmatpush2.bf16.msra.mxu1 %v4093_v53  ;;  %v4090_v51 = vcombine.high %v3233_v1, %v3235_v20  ;;  %v4089_v52 = vcombine.low %v3233_v1, %v3235_v20 }
 0x863   : > { %v3478_v21 = vrot.slane %v3469_v32, 4  ;;  %3767 = vmatprep.subr.bf16.mxu1 %v4092_v2 }
 0x864   : > { %v3480_v37 = vsel %vm6536_vm13, %v3472_v56, %v3473_v18 }
 0x865   : > { %v3481_v28 = vsel %vm6537_vm1, %v3457_v63, %v3480_v37  ;;  %v3486_v0 = vsel %vm6538_vm8, %v3478_v21, %v3479_v3  ;;  %v3463_v35 = vpop.permute.xlu1 %3462 }
 0x866   : > { %v3487_v47 = vsel %vm6539_vm14, %v3469_v32, %v3486_v0  ;;  %v3475_v5 = vrot.slane %v3463_v35, 4  ;;  %v3461_v42 = vpop.permute.xlu0 %3460  ;;  %3768 = vmatpush2.bf16.msra.mxu1 %v4091_v26 }
 0x867   : > { %v3474_v15 = vrot.slane %v3461_v42, 4  ;;  %3769 = vmatprep.subr.bf16.mxu1 %v4090_v51  ;;  %v4107_v60 = vcombine.low %v3485_v49, %v3487_v47  ;;  %v4108_v31 = vcombine.high %v3485_v49, %v3487_v47 }
 0x869   : > { %v3482_v45 = vsel %vm6540_vm3, %v3474_v15, %v3475_v5  ;;  %3792 = vmatprep.subr.bf16.mxu0 %v4108_v31  ;;  %v3827_v6 = vpop.permute.xlu1 %3826 }
 0x86a   : > { %v3483_v27 = vsel %vm6541_vm6, %v3461_v42, %v3482_v45  ;;  %3770 = vmatpush2.bf16.msra.mxu1 %v4089_v52  ;;  %3793 = vmatpush1.bf16.msra.mxu0 %v4107_v60 }
 0x86b   : > { %v4105_v41 = vcombine.low %v3481_v28, %v3483_v27  ;;  %v4106_v10 = vcombine.high %v3481_v28, %v3483_v27 }
 0x86d   : > { %3772 = vmatmul.mubr.bf16.vlgmr.msra.gmra.mxu1 %v6038_v33  ;;  %3794 = vmatprep.subr.bf16.mxu0 %v4106_v10  ;;  %v3831_v33 = vpop.permute.xlu1 %3830 }
 0x86e   : > { %3795 = vmatpush1.bf16.msra.mxu0 %v4105_v41 }
 0x871   : > { %4109 = vmatmul.mubr.msk.bf16.vlgmr.msra.gmra.mxu0 %vm6542_vm5, %v6040_v19 }
 0x873   : > { %v3535_v57 = vpop.permute.xlu0 %3534 }
 0x877   : > { %v3829_v9 = vpop.permute.xlu0 %3828 }
 0x878   : > { %v3833_v49 = vsel %vm6543_vm15, %v3827_v6, %v3829_v9  ;;  %v3834_v19 = vsel %vm6544_vm2, %v3829_v9, %v3831_v33 }
 0x92d   : > { %v3773_v17 = vpop.f32.mrf.mxu1 }
 0x92e   : > { %v3774_v23 = vadd.f32 %v3773_v17, %v3535_v57 }
 0x92f   : > { %v3775_v58 = vpop.f32.mrf.mxu1 }
 0x930   : > { %v3776_v36 = vadd.f32 %v3775_v58, %v3535_v57 }
 0x931   : > { %v3814_v38 = vpop.f32.mrf.mxu0  ;;  %v3777_v12 = vpop.f32.mrf.mxu1 }
 0x932   : > { %v3815_v29 = vadd.f32 %v3814_v38, %v3774_v23 }
 0x933   : > { %v3816_v4 = vpop.f32.mrf.mxu0  ;;  %v3778_v59 = vpop.f32.mrf.mxu1 }
 0x934   : > { %v3817_v7 = vadd.f32 %v3816_v4, %v3776_v36  ;;  %v3837_v24 = vadd.f32 %v3833_v49, %v3815_v29 }
 0x935   : > { %v3818_v16 = vpop.f32.mrf.mxu0 }
 0x936   : > { %v3838_v44 = vadd.f32 %v3834_v19, %v3817_v7 }
 0x937   : > { %v3819_v50 = vpop.f32.mrf.mxu0 }
 0x938   : > { %v3841_v43 = vcombine.low %v3837_v24, %v3838_v44 }
 0x93a   : > { %3843 = vst [vmem:[%s363_s27] sm:$0xff] %v3841_v43 }
 0x93b   : > { %4344 = shalt.err (!%p4341_p0)
}
 0x93c   : > { %s4345_s24 = scalar_lea.hbm %s3857_s23, 128  ;;  %s4349_s28 = scalar_lea.hbm %s6240_s9, 256 }
 0x93d   : > { %p4346_p5 = scmp.ne.s32.totalorder %s3857_s23, %s4345_s24  ;;  %p4350_p1 = scmp.lt.s32.totalorder %s3857_s23, %s6240_s9 }
 0x93e   : > { %p4351_p4 = scmp.lt.s32.totalorder %s4349_s28, %s4345_s24 }
 0x93f   : > { %p4347_p9 = pnand %p4346_p5, %p6546_p3 }
 0x940   : > { %p4352_p6 = por %p4351_p4, %p4350_p1 }
 0x941   : > { %p4348_p12 = pneg %p4347_p9 }
 0x943   : > { %p4353_p8 = pnand %p4352_p6, %p4348_p12 }
 0x945   : > { %4356 = shalt.err (!%p4353_p8)
}
 0x946   : > { %4147 = dma.vmem_to_hbm [thread:$0]  (%p6546_p3), %s3860_s22, 128, %s3857_s23, %s3845_s25  }
 0x947 PF: > { %s6547_s19 = sld [smem:[#allocation15_spill]]  ;;  %s3871_s27 = sand.u32 1, %s4387_s30  }
 0x948   : > { %p6549_p7 = scmp.ge.s32.totalorder %s4399_s12, 2  ;;  %s3872_s18 = scalar_lea.sflag [#allocation8], %s3871_s27 }
 0x94d   : > { %p6548_p11 = scmp.ne.s32.totalorder %s6547_s19, 0 }
 0x94f   : > { %p4158_p10 = pnand %p6549_p7, %p6548_p11 }
 0x951   : > { %p4159_p2 = pneg %p4158_p10 }
 0x953   : > { %4382 = dma.done.wait (%p4159_p2), %s3872_s18, 128  }
 0x954   : > { %4384 = vsyncadd (%p4159_p2), %s3872_s18, 4294967168  ;;  %s6550_s12 = sld [smem:[#allocation16_spill]]  ;;  %s6552_s30 = smov %s4391_s10 }
 0x955   : > { %s6551_s29 = sld [smem:[#allocation17_spill]]  ;;  %s6553_s10 = smov %s4395_s11 }
 0x95a   : > { %p23_p13 = scmp.ge.s32.totalorder %s6550_s12, 4  }
 0x95b   : > { %s6554_s11 = smov %s6551_s29 }
 0x95c   :  { %25 = sbr.rel (!%p23_p13) target bundleno = 8 (0x8), region = 105 }
 0x961   :  { %3877 = vsyncpa [#allocation7], 1 }
 0x962   :  { %3879 = vsyncpa [#allocation7 + $0x1], 1 }
 0x963   :  { %3880 = vsyncpa [#allocation10], 1 }
 0x964   :  { %3881 = vsyncpa [#allocation8], 1 }
 0x965   :  { %3883 = vsyncpa [#allocation8 + $0x1], 1 }

</bundles_post_ra>
